<compile_context>
chip_gen: v6e
topology: v6e:2x2x1
jax: 0.10.0
libtpu: 0.0.40
codegen_flags: <defaults>
</compile_context>

<pallas_src>
import jax
import jax.numpy as jnp
from jax import lax
from jax.experimental import pallas as pl
from jax.experimental.pallas import tpu as pltpu

_D_IN = 512    # instance feature dim
_D_ATT = 128   # attention hidden dim
_D_CLS = 256   # classifier hidden dim
_NEG_BIG = -1e30


def _default_tile():
    """Rows of H per grid step: big enough to amortize ~0.35us/step overhead."""
    try:
        kind = jax.devices()[0].device_kind.lower()
    except Exception:  # pragma: no cover - interpret / CPU fallback
        return 512
    if "v7" in kind:
        return 2048    # ~4-8 MiB double-buffered, well inside v7x's 64 MiB VMEM
    if "v6" in kind:
        return 1024
    return 512         # v5e and default


def _theirnet_kernel(n_ref,                                # scalar prefetch (SMEM)
                     h_ref, w1_ref, b1_ref, w2_ref,
                     wc1_ref, bc1_ref, wc2_ref, bc2_ref,   # inputs
                     a_ref, scal_ref,                      # outputs
                     m_scr, l_scr, acc_scr):               # scratch
    i = pl.program_id(0)
    last = pl.num_programs(0) - 1
    tile = h_ref.shape[0]
    n_valid = n_ref[0]

    @pl.when(i == 0)
    def _init():
        m_scr[...] = jnp.full(m_scr.shape, _NEG_BIG, m_scr.dtype)
        l_scr[...] = jnp.zeros(l_scr.shape, l_scr.dtype)
        acc_scr[...] = jnp.zeros(acc_scr.shape, acc_scr.dtype)

    # H tile in bf16 (no-op cast if the bag is already streamed as bf16).
    h_bf = h_ref[...].astype(jnp.bfloat16)                            # (T, 512)

    # --- attention hidden layer: bf16 MXU matmul, f32 accumulate, f32 tanh ---
    hid = jnp.tanh(
        jnp.dot(h_bf, w1_ref[...],
                preferred_element_type=jnp.float32) + b1_ref[...])    # (T, 128)

    # --- attention logits, lane-dense (1, T): contract the (1,128) weight row
    # against hid's feature axis (avoids a 1-column MXU output + transpose) ---
    logits = lax.dot_general(w2_ref[...], hid, (((1,), (1,)), ((), ())),
                             preferred_element_type=jnp.float32)      # (1, T)
    # (attention bias b2 omitted: softmax is shift-invariant)

    # mask rows beyond the true bag size (wrapper zero-pads H)
    row = i * tile + lax.broadcasted_iota(jnp.int32, (1, tile), 1)
    logits = jnp.where(row < n_valid, logits, _NEG_BIG)

    # stash raw logits in the VMEM-resident (1, N_pad) A row; normalized later
    start = pl.multiple_of(i * tile, tile)
    a_ref[:, pl.ds(start, tile)] = logits

    # --- online softmax update of the pooled accumulator ---
    m_prev = m_scr[...]                                               # (1, 1)
    m_new = jnp.maximum(m_prev, jnp.max(logits, axis=-1, keepdims=True))
    corr = jnp.exp(m_prev - m_new)                                    # (1, 1)
    p = jnp.exp(logits - m_new)                                       # (1, T)
    l_scr[...] = corr * l_scr[...] + jnp.sum(p, axis=-1, keepdims=True)
    acc_scr[...] = corr * acc_scr[...] + jnp.dot(
        p.astype(jnp.bfloat16), h_bf,
        preferred_element_type=jnp.float32)                           # (1, 512)
    m_scr[...] = m_new

    @pl.when(i == last)
    def _epilogue():
        inv_l = 1.0 / l_scr[...]                 # exact: one-off, keeps sum(A)=1
        # final attention weights: A = exp(logit - m) / l   (lane-dense)
        a_ref[...] = jnp.exp(a_ref[...] - m_scr[...]) * inv_l
        # pooled bag representation M = (sum_n e_n * H_n) / l
        m_vec = acc_scr[...] * inv_l                                  # (1, 512)
        # classifier: Linear(512,256) -> ReLU -> Linear(256,1) -> Sigmoid
        c = jnp.maximum(
            jnp.dot(m_vec.astype(jnp.bfloat16), wc1_ref[...],
                    preferred_element_type=jnp.float32) + bc1_ref[...], 0.0)
        logit = (jnp.sum(c * wc2_ref[...], axis=-1, keepdims=True)
                 + bc2_ref[0])                                        # (1,1) VPU reduce
        y_prob = 1.0 / (1.0 + jnp.exp(-logit))
        y_hat = (y_prob >= 0.5).astype(jnp.float32)
        lane = lax.broadcasted_iota(jnp.int32, scal_ref.shape, 1)
        scal_ref[...] = jnp.where(lane == 0, y_prob,
                                  jnp.where(lane == 1, y_hat, 0.0))


def prepare_params(params):
    """One-time host-side prep (call once, outside the per-bag forward):
    pre-cast the MXU weights to bf16, drop b2 (softmax shift-invariant),
    flatten bc2 for SMEM."""
    w1, b1, w2, b2, wc1, bc1, wc2, bc2 = params
    del b2
    return (w1.astype(jnp.bfloat16), b1, w2,
            wc1.astype(jnp.bfloat16), bc1, wc2, bc2.reshape(-1))


def theirnet_forward(x, prepared_params, *, n_tile=None):
    """x: (N, 512) f32 (or bf16) bag. Returns (Y_prob (1,1), Y_hat (1,1), A (1,N))."""
    n, d = x.shape
    assert d == _D_IN
    w1_bf, b1, w2, wc1_bf, bc1, wc2, bc2_flat = prepared_params

    if n_tile is None:
        # per-generation tile, but never pad tiny bags up to a huge tile
        n_tile = min(_default_tile(), max(512, pl.next_power_of_2(n)))

    # Bucket bag sizes (power-of-two, >= one tile, multiple of the tile) so the
    # Mosaic kernel is compiled once per (bucket, tile) instead of per bag size.
    bucket = max(n_tile, pl.next_power_of_2(n))
    bucket = pl.cdiv(bucket, n_tile) * n_tile
    if bucket != n:
        x = jnp.concatenate([x, jnp.zeros((bucket - n, _D_IN), x.dtype)], axis=0)
    grid = (bucket // n_tile,)
    n_valid = jnp.array([n], dtype=jnp.int32)   # SMEM scalar, not baked in

    h_map = lambda i, n_ref: (i, 0)
    const = lambda i, n_ref: (0, 0)

    itemsize = jnp.dtype(x.dtype).itemsize
    vmem_bytes = int(
        2 * n_tile * _D_IN * itemsize                 # H tile, double-buffered
        + _D_IN * _D_ATT * 2 + _D_IN * _D_CLS * 2     # bf16 weights (resident)
        + 4 * (2 * _D_ATT + 2 * _D_CLS)               # bias / weight rows
        + 2 * 4 * (bucket + 128)                      # resident outputs
        + 4 * (2 + _D_IN)                             # scratch
    ) + (8 << 20)                                     # headroom for compiler temps
    vmem_bytes = min(max(vmem_bytes, 16 << 20), 64 << 20)

    cost = pl.CostEstimate(
        flops=2 * bucket * _D_IN * _D_ATT + 2 * bucket * _D_ATT
              + 2 * bucket * _D_IN + 2 * _D_IN * _D_CLS + 2 * _D_CLS,
        transcendentals=bucket * _D_ATT + 3 * bucket + 4,
        bytes_accessed=itemsize * bucket * _D_IN + 2 * _D_IN * (_D_ATT + _D_CLS)
                       + 4 * (2 * _D_ATT + 2 * _D_CLS + 1) + 4 * (bucket + 128),
    )

    a_row, scalars = pl.pallas_call(
        _theirnet_kernel,
        out_shape=(
            jax.ShapeDtypeStruct((1, bucket), jnp.float32),  # A (lane-dense row)
            jax.ShapeDtypeStruct((1, 128), jnp.float32),     # [Y_prob, Y_hat, 0...]
        ),
        grid_spec=pltpu.PrefetchScalarGridSpec(
            num_scalar_prefetch=1,                           # n_valid -> SMEM
            grid=grid,
            in_specs=[
                pl.BlockSpec((n_tile, _D_IN), h_map),               # H tile
                pl.BlockSpec((_D_IN, _D_ATT), const),               # W1 (bf16)
                pl.BlockSpec((1, _D_ATT), const),                   # b1
                pl.BlockSpec((1, _D_ATT), const),                   # w2 row
                pl.BlockSpec((_D_IN, _D_CLS), const),               # Wc1 (bf16)
                pl.BlockSpec((1, _D_CLS), const),                   # bc1
                pl.BlockSpec((1, _D_CLS), const),                   # wc2 row
                pl.BlockSpec(memory_space=pltpu.MemorySpace.SMEM),  # bc2 scalar
            ],
            out_specs=(
                pl.BlockSpec((1, bucket), const),   # A: VMEM-resident across grid
                pl.BlockSpec((1, 128), const),      # packed scalar outputs
            ),
            scratch_shapes=[
                pltpu.VMEM((1, 1), jnp.float32),       # running max m
                pltpu.VMEM((1, 1), jnp.float32),       # running denom l
                pltpu.VMEM((1, _D_IN), jnp.float32),   # unnormalized pooled acc
            ],
        ),
        compiler_params=pltpu.CompilerParams(
            dimension_semantics=("arbitrary",),     # online softmax carries state
            vmem_limit_bytes=vmem_bytes,
        ),
        cost_estimate=cost,
    )(n_valid, x, w1_bf, b1, w2, wc1_bf, bc1, wc2, bc2_flat)

    y_prob = scalars[:, 0:1]
    y_hat = scalars[:, 1:2]
    return y_prob, y_hat, a_row[:, :n]


def _xavier_uniform(key, shape, fan_in, fan_out):
    bound = (6.0 / (fan_in + fan_out)) ** 0.5
    return jax.random.uniform(key, shape, jnp.float32, -bound, bound)


def _linear_bias(key, shape, fan_in):
    bound = 1.0 / (fan_in ** 0.5)
    return jax.random.uniform(key, shape, jnp.float32, -bound, bound)


def init_params(key):
    ks = jax.random.split(key, 8)
    # weights stored as (in, out) so the kernel computes x @ W; the 1-output
    # heads keep the torch (1, in) row layout for lane-dense reductions.
    w1 = _xavier_uniform(ks[0], (_D_IN, _D_ATT), _D_IN, _D_ATT)   # Linear(512,128)
    b1 = _linear_bias(ks[1], (1, _D_ATT), _D_IN)
    w2 = _xavier_uniform(ks[2], (1, _D_ATT), _D_ATT, 1)           # Linear(128,1)
    b2 = _linear_bias(ks[3], (1, 1), _D_ATT)
    wc1 = _xavier_uniform(ks[4], (_D_IN, _D_CLS), _D_IN, _D_CLS)  # Linear(512,256)
    bc1 = _linear_bias(ks[5], (1, _D_CLS), _D_IN)
    wc2 = _xavier_uniform(ks[6], (1, _D_CLS), _D_CLS, 1)          # Linear(256,1)
    bc2 = _linear_bias(ks[7], (1, 1), _D_CLS)
    return (w1, b1, w2, b2, wc1, bc1, wc2, bc2)


def _reference(x, params):
    w1, b1, w2, b2, wc1, bc1, wc2, bc2 = params
    hid = jnp.tanh(x @ w1 + b1)
    logits = (hid @ w2.T + b2).T                  # (1, N)
    A = jax.nn.softmax(logits, axis=1)
    M = A @ x
    c = jnp.maximum(M @ wc1 + bc1, 0.0)
    y_prob = jax.nn.sigmoid(c @ wc2.T + bc2)
    return y_prob, A


if __name__ == "__main__":
    key = jax.random.PRNGKey(0)
    k_param, k_x1, k_x2, k_x3 = jax.random.split(key, 4)
    params = init_params(k_param)
    prepared = prepare_params(params)   # one-time bf16 cast, outside the hot path

    # small single-tile bag (heavy padding), a 4-step grid with a fully masked
    # tail tile (exercises online-softmax accumulation + masking), and a
    # multi-tile bag at the production tile size.
    cases = (
        (8, 512, k_x1),
        (300, 128, k_x2),
        (1200, 512, k_x3),
    )
    for n, tile, kx in cases:
        x = jax.random.normal(kx, (n, _D_IN), dtype=jnp.float32)
        y_prob, y_hat, A = theirnet_forward(x, prepared, n_tile=tile)
        jax.block_until_ready((y_prob, y_hat, A))

        yp_ref, A_ref = _reference(x, params)
        assert y_prob.shape == (1, 1) and y_hat.shape == (1, 1) and A.shape == (1, n)
        assert jnp.allclose(A, A_ref, rtol=2e-2, atol=1e-3), (n, tile)
        assert abs(float(jnp.sum(A)) - 1.0) < 1e-3, (n, tile, float(jnp.sum(A)))
        assert jnp.allclose(y_prob, yp_ref, atol=1e-2), (n, tile)
        # threshold consistency with the kernel's own probability
        assert jnp.array_equal(y_hat, (y_prob >= 0.5).astype(jnp.float32))

    print("KERNEL_OK")
</pallas_src>

<mosaic_0001>
module attributes {stable_mosaic.version = 11 : i64} {
  func.func @_theirnet_kernel(%arg0: i32, %arg1: memref<1xi32, #tpu.memory_space<smem>>, %arg2: memref<512x512xf32, #tpu.memory_space<vmem>>, %arg3: memref<512x128xbf16, #tpu.memory_space<vmem>>, %arg4: memref<1x128xf32, #tpu.memory_space<vmem>>, %arg5: memref<1x128xf32, #tpu.memory_space<vmem>>, %arg6: memref<512x256xbf16, #tpu.memory_space<vmem>>, %arg7: memref<1x256xf32, #tpu.memory_space<vmem>>, %arg8: memref<1x256xf32, #tpu.memory_space<vmem>>, %arg9: memref<1xf32, #tpu.memory_space<smem>>, %arg10: memref<1x512xf32, #tpu.memory_space<vmem>>, %arg11: memref<1x128xf32, #tpu.memory_space<vmem>>, %arg12: memref<1x1xf32, #tpu.memory_space<vmem>>, %arg13: memref<1x1xf32, #tpu.memory_space<vmem>>, %arg14: memref<1x512xf32, #tpu.memory_space<vmem>>) attributes {dimension_semantics = [#tpu.dimension_semantics<arbitrary>], iteration_bounds = array<i64: 1>, scalar_prefetch = 1 : i64, scratch_operands = 3 : i64, tpu.core_type = #tpu.core_type<tc>, window_params = [{transform_indices = @transform_0, window_bounds = array<i64: 512, 512>}, {pipeline_mode = #tpu.pipeline_mode<synchronous>, transform_indices = @transform_1, window_bounds = array<i64: 512, 128>}, {pipeline_mode = #tpu.pipeline_mode<synchronous>, transform_indices = @transform_2, window_bounds = array<i64: 1, 128>}, {pipeline_mode = #tpu.pipeline_mode<synchronous>, transform_indices = @transform_3, window_bounds = array<i64: 1, 128>}, {pipeline_mode = #tpu.pipeline_mode<synchronous>, transform_indices = @transform_4, window_bounds = array<i64: 512, 256>}, {pipeline_mode = #tpu.pipeline_mode<synchronous>, transform_indices = @transform_5, window_bounds = array<i64: 1, 256>}, {pipeline_mode = #tpu.pipeline_mode<synchronous>, transform_indices = @transform_6, window_bounds = array<i64: 1, 256>}, {transform_indices = @transform_7, window_bounds = array<i64: 1>}, {pipeline_mode = #tpu.pipeline_mode<synchronous>, transform_indices = @transform_8, window_bounds = array<i64: 1, 512>}, {pipeline_mode = #tpu.pipeline_mode<synchronous>, transform_indices = @transform_9, window_bounds = array<i64: 1, 128>}]} {
    %c0 = arith.constant 0 : index
    %0 = memref.load %arg1[%c0] : memref<1xi32, #tpu.memory_space<smem>>
    %c0_i32 = arith.constant 0 : i32
    %1 = arith.cmpi eq, %arg0, %c0_i32 : i32
    %2 = arith.extui %1 : i1 to i32
    %c0_i32_0 = arith.constant 0 : i32
    %3 = arith.cmpi ne, %2, %c0_i32_0 : i32
    scf.if %3 {
      %cst_30 = arith.constant -1.000000e+30 : f32
      %52 = vector.broadcast %cst_30 : f32 to vector<1x1xf32>
      %c0_31 = arith.constant 0 : index
      %c0_32 = arith.constant 0 : index
      %53 = vector.load %arg12[%c0_31, %c0_32] : memref<1x1xf32, #tpu.memory_space<vmem>>, vector<1x1xf32>
      tpu.vector_store %arg12[%c0_31, %c0_32], %52 {strides = array<i32>} : memref<1x1xf32, #tpu.memory_space<vmem>>, vector<1x1xf32>,
      %cst_33 = arith.constant 0.000000e+00 : f32
      %54 = vector.broadcast %cst_33 : f32 to vector<1x1xf32>
      %c0_34 = arith.constant 0 : index
      %c0_35 = arith.constant 0 : index
      %55 = vector.load %arg13[%c0_34, %c0_35] : memref<1x1xf32, #tpu.memory_space<vmem>>, vector<1x1xf32>
      tpu.vector_store %arg13[%c0_34, %c0_35], %54 {strides = array<i32>} : memref<1x1xf32, #tpu.memory_space<vmem>>, vector<1x1xf32>,
      %cst_36 = arith.constant 0.000000e+00 : f32
      %56 = vector.broadcast %cst_36 : f32 to vector<1x512xf32>
      %c0_37 = arith.constant 0 : index
      %c0_38 = arith.constant 0 : index
      %57 = vector.load %arg14[%c0_37, %c0_38] : memref<1x512xf32, #tpu.memory_space<vmem>>, vector<1x512xf32>
      tpu.vector_store %arg14[%c0_37, %c0_38], %56 {strides = array<i32>} : memref<1x512xf32, #tpu.memory_space<vmem>>, vector<1x512xf32>,
    } else {
    }
    %c0_1 = arith.constant 0 : index
    %c0_2 = arith.constant 0 : index
    %4 = vector.load %arg2[%c0_1, %c0_2] : memref<512x512xf32, #tpu.memory_space<vmem>>, vector<512x512xf32>
    %5 = arith.truncf %4 : vector<512x512xf32> to vector<512x512xbf16>
    %c0_3 = arith.constant 0 : index
    %c0_4 = arith.constant 0 : index
    %6 = vector.load %arg3[%c0_3, %c0_4] : memref<512x128xbf16, #tpu.memory_space<vmem>>, vector<512x128xbf16>
    %cst = arith.constant dense<0.000000e+00> : vector<512x128xf32>
    %7 = tpu.matmul %5, %6, %cst {dimension_numbers = #tpu.dot_dimension_numbers<[1], [0], [0], [1], [0, 0, 1, 1], [], []>} : vector<512x512xbf16>, vector<512x128xbf16>, vector<512x128xf32> -> vector<512x128xf32>
    %c0_5 = arith.constant 0 : index
    %c0_6 = arith.constant 0 : index
    %8 = vector.load %arg4[%c0_5, %c0_6] : memref<1x128xf32, #tpu.memory_space<vmem>>, vector<1x128xf32>
    %9 = vector.broadcast %8 : vector<1x128xf32> to vector<512x128xf32>
    %10 = arith.addf %7, %9 : vector<512x128xf32>
    %11 = math.tanh %10 : vector<512x128xf32>
    %c0_7 = arith.constant 0 : index
    %c0_8 = arith.constant 0 : index
    %12 = vector.load %arg5[%c0_7, %c0_8] : memref<1x128xf32, #tpu.memory_space<vmem>>, vector<1x128xf32>
    %cst_9 = arith.constant dense<0.000000e+00> : vector<1x512xf32>
    %13 = tpu.matmul %12, %11, %cst_9 {dimension_numbers = #tpu.dot_dimension_numbers<[1], [1], [0], [0], [0, 0, 1, 0], [], []>} : vector<1x128xf32>, vector<512x128xf32>, vector<1x512xf32> -> vector<1x512xf32>
    %c512_i32 = arith.constant 512 : i32
    %14 = arith.muli %arg0, %c512_i32 : i32
    %15 = tpu.iota {dimensions = array<i32: 1>} : vector<1x512xi32>
    %16 = vector.broadcast %14 : i32 to vector<1x512xi32>
    %17 = arith.addi %16, %15 : vector<1x512xi32>
    %18 = vector.broadcast %0 : i32 to vector<1x512xi32>
    %19 = arith.cmpi slt, %17, %18 : vector<1x512xi32>
    %cst_10 = arith.constant -1.000000e+30 : f32
    %20 = vector.broadcast %cst_10 : f32 to vector<1x512xf32>
    %21 = arith.select %19, %13, %20 : vector<1x512xi1>, vector<1x512xf32>
    %c512_i32_11 = arith.constant 512 : i32
    %22 = arith.muli %arg0, %c512_i32_11 : i32
    %23 = tpu.assume_multiple %22, 512 : i32
    %c0_12 = arith.constant 0 : index
    %24 = arith.index_cast %23 : i32 to index
    %25 = vector.load %arg10[%c0_12, %24] : memref<1x512xf32, #tpu.memory_space<vmem>>, vector<1x512xf32>
    tpu.vector_store %arg10[%c0_12, %24], %21 {strides = array<i32>} : memref<1x512xf32, #tpu.memory_space<vmem>>, vector<1x512xf32>,
    %c0_13 = arith.constant 0 : index
    %c0_14 = arith.constant 0 : index
    %26 = vector.load %arg12[%c0_13, %c0_14] : memref<1x1xf32, #tpu.memory_space<vmem>>, vector<1x1xf32>
    %cst_15 = arith.constant dense<0xFF800000> : vector<1xf32>
    %27 = vector.multi_reduction <maximumf>, %21, %cst_15 [1] : vector<1x512xf32> to vector<1xf32>
    %28 = vector.shape_cast %27 : vector<1xf32> to vector<1x1xf32>
    %29 = arith.maximumf %26, %28 : vector<1x1xf32>
    %30 = arith.subf %26, %29 : vector<1x1xf32>
    %31 = math.exp %30 : vector<1x1xf32>
    %32 = vector.broadcast %29 : vector<1x1xf32> to vector<1x512xf32>
    %33 = arith.subf %21, %32 : vector<1x512xf32>
    %34 = math.exp %33 : vector<1x512xf32>
    %c0_16 = arith.constant 0 : index
    %c0_17 = arith.constant 0 : index
    %35 = vector.load %arg13[%c0_16, %c0_17] : memref<1x1xf32, #tpu.memory_space<vmem>>, vector<1x1xf32>
    %36 = arith.mulf %31, %35 : vector<1x1xf32>
    %cst_18 = arith.constant dense<0.000000e+00> : vector<1xf32>
    %37 = vector.multi_reduction <add>, %34, %cst_18 [1] : vector<1x512xf32> to vector<1xf32>
    %38 = vector.shape_cast %37 : vector<1xf32> to vector<1x1xf32>
    %39 = arith.addf %36, %38 : vector<1x1xf32>
    %c0_19 = arith.constant 0 : index
    %c0_20 = arith.constant 0 : index
    %40 = vector.load %arg13[%c0_19, %c0_20] : memref<1x1xf32, #tpu.memory_space<vmem>>, vector<1x1xf32>
    tpu.vector_store %arg13[%c0_19, %c0_20], %39 {strides = array<i32>} : memref<1x1xf32, #tpu.memory_space<vmem>>, vector<1x1xf32>,
    %c0_21 = arith.constant 0 : index
    %c0_22 = arith.constant 0 : index
    %41 = vector.load %arg14[%c0_21, %c0_22] : memref<1x512xf32, #tpu.memory_space<vmem>>, vector<1x512xf32>
    %42 = vector.broadcast %31 : vector<1x1xf32> to vector<1x512xf32>
    %43 = arith.mulf %42, %41 : vector<1x512xf32>
    %44 = arith.truncf %34 : vector<1x512xf32> to vector<1x512xbf16>
    %cst_23 = arith.constant dense<0.000000e+00> : vector<1x512xf32>
    %45 = tpu.matmul %44, %5, %cst_23 {dimension_numbers = #tpu.dot_dimension_numbers<[1], [0], [0], [1], [0, 0, 1, 1], [], []>} : vector<1x512xbf16>, vector<512x512xbf16>, vector<1x512xf32> -> vector<1x512xf32>
    %46 = arith.addf %43, %45 : vector<1x512xf32>
    %c0_24 = arith.constant 0 : index
    %c0_25 = arith.constant 0 : index
    %47 = vector.load %arg14[%c0_24, %c0_25] : memref<1x512xf32, #tpu.memory_space<vmem>>, vector<1x512xf32>
    tpu.vector_store %arg14[%c0_24, %c0_25], %46 {strides = array<i32>} : memref<1x512xf32, #tpu.memory_space<vmem>>, vector<1x512xf32>,
    %c0_26 = arith.constant 0 : index
    %c0_27 = arith.constant 0 : index
    %48 = vector.load %arg12[%c0_26, %c0_27] : memref<1x1xf32, #tpu.memory_space<vmem>>, vector<1x1xf32>
    tpu.vector_store %arg12[%c0_26, %c0_27], %29 {strides = array<i32>} : memref<1x1xf32, #tpu.memory_space<vmem>>, vector<1x1xf32>,
    %c0_i32_28 = arith.constant 0 : i32
    %49 = arith.cmpi eq, %arg0, %c0_i32_28 : i32
    %50 = arith.extui %49 : i1 to i32
    %c0_i32_29 = arith.constant 0 : i32
    %51 = arith.cmpi ne, %50, %c0_i32_29 : i32
    scf.if %51 {
      %c0_30 = arith.constant 0 : index
      %c0_31 = arith.constant 0 : index
      %52 = vector.load %arg13[%c0_30, %c0_31] : memref<1x1xf32, #tpu.memory_space<vmem>>, vector<1x1xf32>
      %cst_32 = arith.constant 1.000000e+00 : f32
      %53 = vector.broadcast %cst_32 : f32 to vector<1x1xf32>
      %54 = arith.divf %53, %52 : vector<1x1xf32>
      %c0_33 = arith.constant 0 : index
      %c0_34 = arith.constant 0 : index
      %55 = vector.load %arg10[%c0_33, %c0_34] : memref<1x512xf32, #tpu.memory_space<vmem>>, vector<1x512xf32>
      %c0_35 = arith.constant 0 : index
      %c0_36 = arith.constant 0 : index
      %56 = vector.load %arg12[%c0_35, %c0_36] : memref<1x1xf32, #tpu.memory_space<vmem>>, vector<1x1xf32>
      %57 = vector.broadcast %56 : vector<1x1xf32> to vector<1x512xf32>
      %58 = arith.subf %55, %57 : vector<1x512xf32>
      %59 = math.exp %58 : vector<1x512xf32>
      %60 = vector.broadcast %54 : vector<1x1xf32> to vector<1x512xf32>
      %61 = arith.mulf %59, %60 : vector<1x512xf32>
      %c0_37 = arith.constant 0 : index
      %c0_38 = arith.constant 0 : index
      %62 = vector.load %arg10[%c0_37, %c0_38] : memref<1x512xf32, #tpu.memory_space<vmem>>, vector<1x512xf32>
      tpu.vector_store %arg10[%c0_37, %c0_38], %61 {strides = array<i32>} : memref<1x512xf32, #tpu.memory_space<vmem>>, vector<1x512xf32>,
      %c0_39 = arith.constant 0 : index
      %c0_40 = arith.constant 0 : index
      %63 = vector.load %arg14[%c0_39, %c0_40] : memref<1x512xf32, #tpu.memory_space<vmem>>, vector<1x512xf32>
      %64 = vector.broadcast %54 : vector<1x1xf32> to vector<1x512xf32>
      %65 = arith.mulf %63, %64 : vector<1x512xf32>
      %66 = arith.truncf %65 : vector<1x512xf32> to vector<1x512xbf16>
      %c0_41 = arith.constant 0 : index
      %c0_42 = arith.constant 0 : index
      %67 = vector.load %arg6[%c0_41, %c0_42] : memref<512x256xbf16, #tpu.memory_space<vmem>>, vector<512x256xbf16>
      %cst_43 = arith.constant dense<0.000000e+00> : vector<1x256xf32>
      %68 = tpu.matmul %66, %67, %cst_43 {dimension_numbers = #tpu.dot_dimension_numbers<[1], [0], [0], [1], [0, 0, 1, 1], [], []>} : vector<1x512xbf16>, vector<512x256xbf16>, vector<1x256xf32> -> vector<1x256xf32>
      %c0_44 = arith.constant 0 : index
      %c0_45 = arith.constant 0 : index
      %69 = vector.load %arg7[%c0_44, %c0_45] : memref<1x256xf32, #tpu.memory_space<vmem>>, vector<1x256xf32>
      %70 = arith.addf %68, %69 : vector<1x256xf32>
      %cst_46 = arith.constant 0.000000e+00 : f32
      %71 = vector.broadcast %cst_46 : f32 to vector<1x256xf32>
      %72 = arith.maximumf %70, %71 : vector<1x256xf32>
      %c0_47 = arith.constant 0 : index
      %c0_48 = arith.constant 0 : index
      %73 = vector.load %arg8[%c0_47, %c0_48] : memref<1x256xf32, #tpu.memory_space<vmem>>, vector<1x256xf32>
      %74 = arith.mulf %72, %73 : vector<1x256xf32>
      %cst_49 = arith.constant dense<0.000000e+00> : vector<1xf32>
      %75 = vector.multi_reduction <add>, %74, %cst_49 [1] : vector<1x256xf32> to vector<1xf32>
      %76 = vector.shape_cast %75 : vector<1xf32> to vector<1x1xf32>
      %c0_50 = arith.constant 0 : index
      %77 = memref.load %arg9[%c0_50] : memref<1xf32, #tpu.memory_space<smem>>
      %78 = vector.broadcast %77 : f32 to vector<1x1xf32>
      %79 = arith.addf %76, %78 : vector<1x1xf32>
      %cst_51 = arith.constant 0.000000e+00 : f32
      %80 = vector.broadcast %cst_51 : f32 to vector<1x1xf32>
      %81 = arith.subf %80, %79 : vector<1x1xf32>
      %82 = math.exp %81 : vector<1x1xf32>
      %cst_52 = arith.constant 1.000000e+00 : f32
      %83 = vector.broadcast %cst_52 : f32 to vector<1x1xf32>
      %84 = arith.addf %83, %82 : vector<1x1xf32>
      %cst_53 = arith.constant 1.000000e+00 : f32
      %85 = vector.broadcast %cst_53 : f32 to vector<1x1xf32>
      %86 = arith.divf %85, %84 : vector<1x1xf32>
      %cst_54 = arith.constant 5.000000e-01 : f32
      %87 = vector.broadcast %cst_54 : f32 to vector<1x1xf32>
      %88 = arith.cmpf oge, %86, %87 : vector<1x1xf32>
      %89 = arith.extui %88 : vector<1x1xi1> to vector<1x1xi32>
      %90 = arith.sitofp %89 : vector<1x1xi32> to vector<1x1xf32>
      %91 = tpu.iota {dimensions = array<i32: 1>} : vector<1x128xi32>
      %c0_i32_55 = arith.constant 0 : i32
      %92 = vector.broadcast %c0_i32_55 : i32 to vector<1x128xi32>
      %93 = arith.cmpi eq, %91, %92 : vector<1x128xi32>
      %c1_i32 = arith.constant 1 : i32
      %94 = vector.broadcast %c1_i32 : i32 to vector<1x128xi32>
      %95 = arith.cmpi eq, %91, %94 : vector<1x128xi32>
      %cst_56 = arith.constant 0.000000e+00 : f32
      %96 = vector.shape_cast %90 : vector<1x1xf32> to vector<1x1xf32>
      %97 = vector.broadcast %96 : vector<1x1xf32> to vector<1x128xf32>
      %98 = vector.broadcast %cst_56 : f32 to vector<1x128xf32>
      %99 = arith.select %95, %97, %98 : vector<1x128xi1>, vector<1x128xf32>
      %100 = vector.shape_cast %86 : vector<1x1xf32> to vector<1x1xf32>
      %101 = vector.broadcast %100 : vector<1x1xf32> to vector<1x128xf32>
      %102 = arith.select %93, %101, %99 : vector<1x128xi1>, vector<1x128xf32>
      %c0_57 = arith.constant 0 : index
      %c0_58 = arith.constant 0 : index
      %103 = vector.load %arg11[%c0_57, %c0_58] : memref<1x128xf32, #tpu.memory_space<vmem>>, vector<1x128xf32>
      tpu.vector_store %arg11[%c0_57, %c0_58], %102 {strides = array<i32>} : memref<1x128xf32, #tpu.memory_space<vmem>>, vector<1x128xf32>,
    } else {
    }
    return
  }
  func.func @transform_0(%arg0: i32, %arg1: memref<1xi32, #tpu.memory_space<smem>>) -> (i32, i32) {
    %c0_i32 = arith.constant 0 : i32
    %c0_i32_0 = arith.constant 0 : i32
    return %arg0, %c0_i32 : i32, i32
  }
  func.func @transform_1(%arg0: i32, %arg1: memref<1xi32, #tpu.memory_space<smem>>) -> (i32, i32) {
    %c0_i32 = arith.constant 0 : i32
    %c0_i32_0 = arith.constant 0 : i32
    %c0_i32_1 = arith.constant 0 : i32
    return %c0_i32, %c0_i32_0 : i32, i32
  }
  func.func @transform_2(%arg0: i32, %arg1: memref<1xi32, #tpu.memory_space<smem>>) -> (i32, i32) {
    %c0_i32 = arith.constant 0 : i32
    %c0_i32_0 = arith.constant 0 : i32
    %c0_i32_1 = arith.constant 0 : i32
    return %c0_i32, %c0_i32_0 : i32, i32
  }
  func.func @transform_3(%arg0: i32, %arg1: memref<1xi32, #tpu.memory_space<smem>>) -> (i32, i32) {
    %c0_i32 = arith.constant 0 : i32
    %c0_i32_0 = arith.constant 0 : i32
    %c0_i32_1 = arith.constant 0 : i32
    return %c0_i32, %c0_i32_0 : i32, i32
  }
  func.func @transform_4(%arg0: i32, %arg1: memref<1xi32, #tpu.memory_space<smem>>) -> (i32, i32) {
    %c0_i32 = arith.constant 0 : i32
    %c0_i32_0 = arith.constant 0 : i32
    %c0_i32_1 = arith.constant 0 : i32
    return %c0_i32, %c0_i32_0 : i32, i32
  }
  func.func @transform_5(%arg0: i32, %arg1: memref<1xi32, #tpu.memory_space<smem>>) -> (i32, i32) {
    %c0_i32 = arith.constant 0 : i32
    %c0_i32_0 = arith.constant 0 : i32
    %c0_i32_1 = arith.constant 0 : i32
    return %c0_i32, %c0_i32_0 : i32, i32
  }
  func.func @transform_6(%arg0: i32, %arg1: memref<1xi32, #tpu.memory_space<smem>>) -> (i32, i32) {
    %c0_i32 = arith.constant 0 : i32
    %c0_i32_0 = arith.constant 0 : i32
    %c0_i32_1 = arith.constant 0 : i32
    return %c0_i32, %c0_i32_0 : i32, i32
  }
  func.func @transform_7(%arg0: i32, %arg1: memref<1xi32, #tpu.memory_space<smem>>) -> i32 {
    %c0_i32 = arith.constant 0 : i32
    %c0_i32_0 = arith.constant 0 : i32
    return %c0_i32 : i32
  }
  func.func @transform_8(%arg0: i32, %arg1: memref<1xi32, #tpu.memory_space<smem>>) -> (i32, i32) {
    %c0_i32 = arith.constant 0 : i32
    %c0_i32_0 = arith.constant 0 : i32
    %c0_i32_1 = arith.constant 0 : i32
    return %c0_i32, %c0_i32_0 : i32, i32
  }
  func.func @transform_9(%arg0: i32, %arg1: memref<1xi32, #tpu.memory_space<smem>>) -> (i32, i32) {
    %c0_i32 = arith.constant 0 : i32
    %c0_i32_0 = arith.constant 0 : i32
    %c0_i32_1 = arith.constant 0 : i32
    return %c0_i32, %c0_i32_0 : i32, i32
  }
}

</mosaic_0001>

<bundles_post_ra>
// kernel: tpu_custom_call.1
= control target key start
LH: loop header
LB: loop body
LE: loop exit
PB: predicated region body
PF: predicated region fallthrough
CT: control target
= control target key end

     0   :  { %18 = vsyncpa [#allocation9], 0  ;;  %s3991_s0 = inlined_call_operand.<no memory space> [shape: s32[1], index: 0, kind: input, shape index: {}]   ;;  %s3992_s1 = inlined_call_operand.hbm [shape: f32[512,512], index: 1, kind: input, shape index: {}]   ;;  %s3993_s2 = inlined_call_operand.hbm [shape: bf16[512,128], index: 2, kind: input, shape index: {}]   ;;  %s3994_s3 = inlined_call_operand.vmem [shape: f32[1,128], index: 3, kind: input, shape index: {}]   ;;  %s3995_s4 = inlined_call_operand.vmem [shape: f32[1,128], index: 4, kind: input, shape index: {}]   ;;  %s3996_s5 = inlined_call_operand.hbm [shape: bf16[512,256], index: 5, kind: input, shape index: {}]   ;;  %s3997_s6 = inlined_call_operand.vmem [shape: f32[1,256], index: 6, kind: input, shape index: {}]   ;;  %s3998_s7 = inlined_call_operand.vmem [shape: f32[1,256], index: 7, kind: input, shape index: {}]   ;;  %s3999_s8 = inlined_call_operand.<no memory space> [shape: f32[1], index: 8, kind: input, shape index: {}]   ;;  %s4000_s9 = inlined_call_operand.hbm [shape: f32[1,512], index: 9, kind: output, shape index: {0}]   ;;  %s4001_s10 = inlined_call_operand.hbm [shape: f32[1,128], index: 10, kind: output, shape index: {1}]  }
   0x1   :  { %19 = vsyncpa [#allocation12], 0 }
   0x2   :  { %20 = vsyncpa [#allocation10], 0 }
   0x3   :  { %21 = vsyncpa [#allocation16], 0  ;;  %s3012_s13 = smov [#allocation11]  }
   0x4   :  { %s39_s14 = sshll.u32 %s3012_s13, 4  ;;  %s40_s14 = int_to_ptr.vmem [resolvable:$true] %s39_s14 }
   0x5   :  { %s2912_s15 = scalar_lea.vmem %s40_s14, 4096  ;;  %p2917_p1 = scmp.lt.s32.totalorder %s40_s14, %s40_s14 }
   0x6   :  { %p2913_p0 = scmp.ne.s32.totalorder %s40_s14, %s2912_s15  ;;  %p2918_p2 = scmp.lt.s32.totalorder %s2912_s15, %s2912_s15 }
   0x8   :  { %p2919_p3 = por %p2918_p2, %p2917_p1 }
   0xa   :  { %p2920_p4 = pnand %p2919_p3, %p2913_p0 }
   0xc   :  { %2923 = shalt.err (!%p2920_p4)
}
   0xd   :  { %s3013_s16 = smov 64   ;;  %s3014_s17 = smov 4  }
   0xe   :  { %45 = dma.hbm_to_vmem [thread:$0]  %s3993_s2, 4096, %s40_s14, [#allocation12], %s3013_s16, %s3013_s16, %s3014_s17  }
   0xf   :  { %s3015_s20 = smov [#allocation8]  }
  0x10   :  { %s27_s21 = sshll.u32 %s3015_s20, 4  ;;  %s28_s21 = int_to_ptr.vmem [resolvable:$true] %s27_s21 }
  0x11   :  { %s2932_s22 = scalar_lea.vmem %s28_s21, 32768  ;;  %p2937_p6 = scmp.lt.s32.totalorder %s28_s21, %s28_s21 }
  0x12   :  { %p2933_p5 = scmp.ne.s32.totalorder %s28_s21, %s2932_s22  ;;  %p2938_p7 = scmp.lt.s32.totalorder %s2932_s22, %s2932_s22 }
  0x14   :  { %p2939_p8 = por %p2938_p7, %p2937_p6 }
  0x16   :  { %p2940_p9 = pnand %p2939_p8, %p2933_p5 }
  0x18   :  { %2943 = shalt.err (!%p2940_p9)
}
  0x19   :  { %s3016_s23 = smov 512   ;;  %s3017_s24 = smov 32  }
  0x1a   :  { %33 = dma.hbm_to_vmem [thread:$0]  %s3992_s1, 32768, %s28_s21, [#allocation9], %s3016_s23, %s3016_s23, %s3017_s24  }
  0x1b   :  { %s3018_s27 = smov [#allocation13]  }
  0x1c   :  { %s55_s28 = sshll.u32 %s3018_s27, 4  ;;  %s56_s28 = int_to_ptr.vmem [resolvable:$true] %s55_s28 }
  0x1d   :  { %s2952_s2 = scalar_lea.vmem %s56_s28, 8192  ;;  %p2957_p11 = scmp.lt.s32.totalorder %s56_s28, %s56_s28 }
  0x1e   :  { %p2953_p10 = scmp.ne.s32.totalorder %s56_s28, %s2952_s2  ;;  %p2958_p12 = scmp.lt.s32.totalorder %s2952_s2, %s2952_s2 }
  0x20   :  { %p2959_p13 = por %p2958_p12, %p2957_p11 }
  0x22   :  { %p2960_p0 = pnand %p2959_p13, %p2953_p10 }
  0x24   :  { %2963 = shalt.err (!%p2960_p0)
}
  0x25   :  { %s3019_s29 = smov 128   ;;  %s3020_s30 = smov 8  }
  0x26   :  { %61 = dma.hbm_to_vmem [thread:$0]  %s3996_s5, 8192, %s56_s28, [#allocation12], %s3019_s29, %s3019_s29, %s3020_s30  }
  0x27   :  { %3004 = dma.done.wait [#allocation9], 32768  }
  0x28   :  { %3005 = vsyncadd [#allocation9], 4294934528 }
  0x29   :  { %3006 = dma.done.wait [#allocation12], 12288  }
  0x2a   :  { %3007 = vsyncadd [#allocation12], 4294955008  ;;  %v3021_v0 = vmov 0   ;;  %v2629_v1 = vld [vmem:[#allocation11 + $0x38] sm:$0xff]   ;;  %v2631_v3 = vld [vmem:[#allocation11 + $0x30] sm:$0xff]   ;;  %vm83_vm0 = vcmask 0  }
  0x2b   :  { %738 = vmatprep.subr.bf16.mxu0 %v3021_v0  ;;  %1027 = vmatprep.subr.bf16.mxu1 %v3021_v0  ;;  %v2630_v2 = vld [vmem:[#allocation11 + $0xb8] sm:$0xff]   ;;  %v2632_v4 = vld [vmem:[#allocation11 + $0xb0] sm:$0xff]   ;;  %v2633_v5 = vld [vmem:[#allocation11 + $0x28] sm:$0xff]   ;;  %vm1581_vm4 = vcmask 1040384  }
  0x2c   :  { %2627 = vset.pattern.permute.xlu0 %v3021_v0  ;;  %2628 = vset.pattern.permute.xlu1 %v3021_v0  ;;  %v2634_v6 = vld [vmem:[#allocation11 + $0xa8] sm:$0xff]   ;;  %v2635_v7 = vld [vmem:[#allocation11 + $0x20] sm:$0xff]   ;;  %v2637_v9 = vld [vmem:[#allocation11 + $0x18] sm:$0xff]  }
  0x2d   :  { %739 = vmatpush1.bf16.msra.mxu0 %v2629_v1  ;;  %1028 = vmatpush1.bf16.msra.mxu1 %v2630_v2  ;;  %v2636_v8 = vld [vmem:[#allocation11 + $0xa0] sm:$0xff]   ;;  %v2638_v10 = vld [vmem:[#allocation11 + $0x98] sm:$0xff]   ;;  %v2639_v11 = vld [vmem:[#allocation11 + $0x10] sm:$0xff]  }
  0x2e   :  { %740 = vmatprep.subr.bf16.mxu0 %v3021_v0  ;;  %1029 = vmatprep.subr.bf16.mxu1 %v3021_v0  ;;  %v2640_v12 = vld [vmem:[#allocation11 + $0x90] sm:$0xff]   ;;  %v2641_v13 = vld [vmem:[#allocation11 + $0x8] sm:$0xff]   ;;  %v2643_v15 = vld [vmem:[#allocation11] sm:$0xff]  }
  0x2f   :  { %v2642_v14 = vld [vmem:[#allocation11 + $0x88] sm:$0xff]   ;;  %v2644_v16 = vld [vmem:[#allocation11 + $0x80] sm:$0xff]   ;;  %v2645_v17 = vld [vmem:[#allocation11 + $0x78] sm:$0xff]  }
  0x30   :  { %v2646_v18 = vld [vmem:[#allocation11 + $0xf8] sm:$0xff]   ;;  %v92_v19 = vld [vmem:[#allocation8 + $0x8] sm:$0xff]  ;;  %v2647_v24 = vld [vmem:[#allocation11 + $0x70] sm:$0xff]  }
  0x31   :  { %741 = vmatpush1.bf16.msra.mxu0 %v2631_v3  ;;  %1030 = vmatpush1.bf16.msra.mxu1 %v2632_v4  ;;  %v96_v20 = vld [vmem:[#allocation8 + $0x28] sm:$0xff]  ;;  %v94_v21 = vld [vmem:[#allocation8 + $0x18] sm:$0xff]  ;;  %v2648_v26 = vld [vmem:[#allocation11 + $0xf0] sm:$0xff]  }
  0x32   :  { %742 = vmatprep.subr.bf16.mxu0 %v3021_v0  ;;  %1031 = vmatprep.subr.bf16.mxu1 %v3021_v0  ;;  %v3111_v22 = vpack.c.bf16 %v96_v20, %v92_v19  ;;  %v98_v23 = vld [vmem:[#allocation8 + $0x38] sm:$0xff]  ;;  %v2649_v27 = vld [vmem:[#allocation11 + $0x68] sm:$0xff]   ;;  %v2651_v29 = vld [vmem:[#allocation11 + $0x60] sm:$0xff]  }
  0x33   :  { %v3113_v25 = vpack.c.bf16 %v98_v23, %v94_v21  ;;  %v2650_v28 = vld [vmem:[#allocation11 + $0xe8] sm:$0xff]   ;;  %v2652_v30 = vld [vmem:[#allocation11 + $0xe0] sm:$0xff]   ;;  %v2653_v31 = vld [vmem:[#allocation11 + $0x58] sm:$0xff]  }
  0x34   :  { %4121 = vst [vmem:[#allocation21_spill] sm:$0xff] %v3111_v22  ;;  %770 = vmatprep.mubr.bf16.mxu0 %v3111_v22  ;;  %v2654_v32 = vld [vmem:[#allocation11 + $0xd8] sm:$0xff]   ;;  %v2655_v33 = vld [vmem:[#allocation11 + $0x50] sm:$0xff]   ;;  %v2657_v35 = vld [vmem:[#allocation11 + $0x48] sm:$0xff]  }
  0x35   :  { %743 = vmatpush1.bf16.msra.mxu0 %v2633_v5  ;;  %1032 = vmatpush1.bf16.msra.mxu1 %v2634_v6  ;;  %4122 = vst [vmem:[#allocation22_spill] sm:$0xff] %v3113_v25  ;;  %v2656_v34 = vld [vmem:[#allocation11 + $0xd0] sm:$0xff]   ;;  %v2658_v36 = vld [vmem:[#allocation11 + $0xc8] sm:$0xff]   ;;  %v2659_v37 = vld [vmem:[#allocation11 + $0x40] sm:$0xff]  }
  0x36   :  { %744 = vmatprep.subr.bf16.mxu0 %v3021_v0  ;;  %1033 = vmatprep.subr.bf16.mxu1 %v3021_v0  ;;  %v2660_v38 = vld [vmem:[#allocation11 + $0xc0] sm:$0xff]   ;;  %v93_v41 = vld [vmem:[#allocation8 + $0x10] sm:$0xff]  ;;  %v100_v43 = vld [vmem:[#allocation8 + $0x48] sm:$0xff] }
  0x37   :  { %1059 = vmatprep.mubr.bf16.mxu1 %v3113_v25  ;;  %v91_v39 = vld [vmem:[#allocation8] sm:$0xff]  ;;  %v97_v42 = vld [vmem:[#allocation8 + $0x30] sm:$0xff]  ;;  %v104_v44 = vld [vmem:[#allocation8 + $0x68] sm:$0xff] }
  0x38   :  { %v95_v40 = vld [vmem:[#allocation8 + $0x20] sm:$0xff]  ;;  %v102_v45 = vld [vmem:[#allocation8 + $0x58] sm:$0xff]  ;;  %v3133_v48 = vpack.c.bf16 %v97_v42, %v93_v41  ;;  %v3135_v49 = vpack.c.bf16 %v104_v44, %v100_v43  ;;  %v101_v53 = vld [vmem:[#allocation8 + $0x50] sm:$0xff] }
  0x39   :  { %745 = vmatpush1.bf16.msra.mxu0 %v2635_v7  ;;  %1034 = vmatpush1.bf16.msra.mxu1 %v2636_v8  ;;  %v106_v46 = vld [vmem:[#allocation8 + $0x78] sm:$0xff]  ;;  %v3131_v47 = vpack.c.bf16 %v95_v40, %v91_v39  ;;  %v99_v51 = vld [vmem:[#allocation8 + $0x40] sm:$0xff]  ;;  %v105_v54 = vld [vmem:[#allocation8 + $0x70] sm:$0xff] }
  0x3a   :  { %746 = vmatprep.subr.bf16.mxu0 %v3021_v0  ;;  %1035 = vmatprep.subr.bf16.mxu1 %v3021_v0  ;;  %4124 = vst [vmem:[#allocation24_spill] sm:$0xff] %v3133_v48  ;;  %4125 = vst [vmem:[#allocation25_spill] sm:$0xff] %v3135_v49  ;;  %v3137_v50 = vpack.c.bf16 %v106_v46, %v102_v45  ;;  %v103_v52 = vld [vmem:[#allocation8 + $0x60] sm:$0xff]  ;;  %v108_v55 = vld [vmem:[#allocation8 + $0x88] sm:$0xff]  ;;  %v3145_v60 = vpack.c.bf16 %v105_v54, %v101_v53 }
  0x3b   :  { %4123 = vst [vmem:[#allocation23_spill] sm:$0xff] %v3131_v47  ;;  %v112_v56 = vld [vmem:[#allocation8 + $0xa8] sm:$0xff]  ;;  %v110_v57 = vld [vmem:[#allocation8 + $0x98] sm:$0xff]  ;;  %v3143_v59 = vpack.c.bf16 %v103_v52, %v99_v51  ;;  %v107_v63 = vld [vmem:[#allocation8 + $0x80] sm:$0xff] }
  0x3c   :  { %4126 = vst [vmem:[#allocation26_spill] sm:$0xff] %v3137_v50  ;;  %v114_v58 = vld [vmem:[#allocation8 + $0xb8] sm:$0xff]  ;;  %4128 = vst [vmem:[#allocation28_spill] sm:$0xff] %v3145_v60  ;;  %v3147_v61 = vpack.c.bf16 %v112_v56, %v108_v55  ;;  %v109_v1 = vld [vmem:[#allocation8 + $0x90] sm:$0xff] }
  0x3d   :  { %747 = vmatpush1.bf16.msra.mxu0 %v2637_v9  ;;  %1036 = vmatpush1.bf16.msra.mxu1 %v2638_v10  ;;  %4127 = vst [vmem:[#allocation27_spill] sm:$0xff] %v3143_v59  ;;  %v3149_v62 = vpack.c.bf16 %v114_v58, %v110_v57  ;;  %v113_v2 = vld [vmem:[#allocation8 + $0xb0] sm:$0xff]  ;;  %v116_v3 = vld [vmem:[#allocation8 + $0xc8] sm:$0xff]  ;;  %v118_v5 = vld [vmem:[#allocation8 + $0xd8] sm:$0xff] }
  0x3e   :  { %748 = vmatprep.subr.bf16.mxu0 %v3021_v0  ;;  %1037 = vmatprep.subr.bf16.mxu1 %v3021_v0  ;;  %4129 = vst [vmem:[#allocation29_spill] sm:$0xff] %v3147_v61  ;;  %v120_v4 = vld [vmem:[#allocation8 + $0xe8] sm:$0xff]  ;;  %v122_v6 = vld [vmem:[#allocation8 + $0xf8] sm:$0xff]  ;;  %v3157_v8 = vpack.c.bf16 %v113_v2, %v109_v1  ;;  %v133_v39 = vld [vmem:[#allocation8 + $0x150] sm:$0xff] }
  0x3f   :  { %4130 = vst [vmem:[#allocation30_spill] sm:$0xff] %v3149_v62  ;;  %v3159_v9 = vpack.c.bf16 %v120_v4, %v116_v3  ;;  %v3161_v10 = vpack.c.bf16 %v122_v6, %v118_v5  ;;  %v137_v40 = vld [vmem:[#allocation8 + $0x170] sm:$0xff]  ;;  %v140_v41 = vld [vmem:[#allocation8 + $0x188] sm:$0xff]  ;;  %v142_v43 = vld [vmem:[#allocation8 + $0x198] sm:$0xff] }
  0x40   :  { %4132 = vst [vmem:[#allocation32_spill] sm:$0xff] %v3157_v8  ;;  %v144_v42 = vld [vmem:[#allocation8 + $0x1a8] sm:$0xff]  ;;  %v146_v44 = vld [vmem:[#allocation8 + $0x1b8] sm:$0xff]  ;;  %v3193_v46 = vpack.c.bf16 %v137_v40, %v133_v39  ;;  %v139_v53 = vld [vmem:[#allocation8 + $0x180] sm:$0xff] }
  0x41   :  { %749 = vmatpush1.bf16.msra.mxu0 %v2639_v11  ;;  %1038 = vmatpush1.bf16.msra.mxu1 %v2640_v12  ;;  %4133 = vst [vmem:[#allocation33_spill] sm:$0xff] %v3161_v10  ;;  %v115_v11 = vld [vmem:[#allocation8 + $0xc0] sm:$0xff]  ;;  %v3195_v51 = vpack.c.bf16 %v144_v42, %v140_v41  ;;  %v3197_v52 = vpack.c.bf16 %v146_v44, %v142_v43  ;;  %v141_v55 = vld [vmem:[#allocation8 + $0x190] sm:$0xff]  ;;  %v148_v57 = vld [vmem:[#allocation8 + $0x1c8] sm:$0xff] }
  0x42   :  { %750 = vmatprep.subr.bf16.mxu0 %v3021_v0  ;;  %1039 = vmatprep.subr.bf16.mxu1 %v3021_v0  ;;  %v119_v12 = vld [vmem:[#allocation8 + $0xe0] sm:$0xff]  ;;  %4139 = vst [vmem:[#allocation39_spill] sm:$0xff] %v3193_v46  ;;  %v145_v56 = vld [vmem:[#allocation8 + $0x1b0] sm:$0xff]  ;;  %v152_v58 = vld [vmem:[#allocation8 + $0x1e8] sm:$0xff] }
  0x43   :  { %v3167_v19 = vpack.c.bf16 %v119_v12, %v115_v11  ;;  %4140 = vst [vmem:[#allocation40_spill] sm:$0xff] %v3197_v52  ;;  %v143_v54 = vld [vmem:[#allocation8 + $0x1a0] sm:$0xff]  ;;  %v3205_v2 = vpack.c.bf16 %v145_v56, %v141_v55  ;;  %v3207_v3 = vpack.c.bf16 %v152_v58, %v148_v57  ;;  %v149_v11 = vld [vmem:[#allocation8 + $0x1d0] sm:$0xff]  ;;  %v172_v55 = vld [vmem:[#allocation8 + $0x288] sm:$0xff] }
  0x44   :  { %v3203_v1 = vpack.c.bf16 %v143_v54, %v139_v53  ;;  %v147_v5 = vld [vmem:[#allocation8 + $0x1c0] sm:$0xff]  ;;  %v153_v12 = vld [vmem:[#allocation8 + $0x1f0] sm:$0xff]  ;;  %v176_v56 = vld [vmem:[#allocation8 + $0x2a8] sm:$0xff] }
  0x45   :  { %751 = vmatpush1.bf16.msra.mxu0 %v2641_v13  ;;  %1040 = vmatpush1.bf16.msra.mxu1 %v2642_v14  ;;  %v117_v13 = vld [vmem:[#allocation8 + $0xd0] sm:$0xff]  ;;  %4134 = vst [vmem:[#allocation34_spill] sm:$0xff] %v3167_v19  ;;  %4141 = vst [vmem:[#allocation41_spill] sm:$0xff] %v3205_v2  ;;  %v151_v6 = vld [vmem:[#allocation8 + $0x1e0] sm:$0xff] }
  0x46   :  { %752 = vmatprep.subr.bf16.mxu0 %v3021_v0  ;;  %1041 = vmatprep.subr.bf16.mxu1 %v3021_v0  ;;  %v121_v14 = vld [vmem:[#allocation8 + $0xf0] sm:$0xff]  ;;  %v163_v43 = vld [vmem:[#allocation8 + $0x240] sm:$0xff]  ;;  %v174_v57 = vld [vmem:[#allocation8 + $0x298] sm:$0xff] }
  0x47   :  { %v3169_v20 = vpack.c.bf16 %v121_v14, %v117_v13  ;;  %v156_v13 = vld [vmem:[#allocation8 + $0x208] sm:$0xff]  ;;  %v167_v44 = vld [vmem:[#allocation8 + $0x260] sm:$0xff]  ;;  %v165_v53 = vld [vmem:[#allocation8 + $0x250] sm:$0xff] }
  0x48   :  { %v160_v14 = vld [vmem:[#allocation8 + $0x228] sm:$0xff]  ;;  %v169_v54 = vld [vmem:[#allocation8 + $0x270] sm:$0xff]  ;;  %v178_v58 = vld [vmem:[#allocation8 + $0x2b8] sm:$0xff] }
  0x49   :  { %753 = vmatpush1.bf16.msra.mxu0 %v2643_v15  ;;  %1042 = vmatpush1.bf16.msra.mxu1 %v2644_v16  ;;  %v124_v15 = vld [vmem:[#allocation8 + $0x108] sm:$0xff]  ;;  %4135 = vst [vmem:[#allocation35_spill] sm:$0xff] %v3169_v20  ;;  %v239_v25 = vld [vmem:[#allocation8 + $0x4a0] sm:$0xff] }
  0x4a   :  { %754 = vmatprep.subr.bf16.mxu0 %v3021_v0  ;;  %1043 = vmatprep.subr.bf16.mxu1 %v3021_v0  ;;  %v128_v16 = vld [vmem:[#allocation8 + $0x128] sm:$0xff] }
  0x4b   :  { %v3171_v21 = vpack.c.bf16 %v128_v16, %v124_v15  ;;  %v158_v15 = vld [vmem:[#allocation8 + $0x218] sm:$0xff] }
  0x4c   :  { %v162_v16 = vld [vmem:[#allocation8 + $0x238] sm:$0xff] }
  0x4d   :  { %755 = vmatpush2.bf16.msra.mxu0 %v2645_v17  ;;  %1044 = vmatpush2.bf16.msra.mxu1 %v2646_v18  ;;  %v126_v17 = vld [vmem:[#allocation8 + $0x118] sm:$0xff] }
  0x4e   :  { %756 = vmatprep.subr.bf16.mxu0 %v3021_v0  ;;  %1045 = vmatprep.subr.bf16.mxu1 %v3021_v0  ;;  %v130_v18 = vld [vmem:[#allocation8 + $0x138] sm:$0xff] }
  0x4f   :  { %v3173_v23 = vpack.c.bf16 %v130_v18, %v126_v17  ;;  %v3215_v17 = vpack.c.bf16 %v151_v6, %v147_v5  ;;  %v3217_v18 = vpack.c.bf16 %v153_v12, %v149_v11  ;;  %v3243_v5 = vpack.c.bf16 %v176_v56, %v172_v55  ;;  %v171_v11 = vld [vmem:[#allocation8 + $0x280] sm:$0xff]  ;;  %v190_v55 = vld [vmem:[#allocation8 + $0x318] sm:$0xff] }
  0x50   :  { %v3245_v6 = vpack.c.bf16 %v178_v58, %v174_v57  ;;  %v175_v12 = vld [vmem:[#allocation8 + $0x2a0] sm:$0xff]  ;;  %v194_v56 = vld [vmem:[#allocation8 + $0x338] sm:$0xff] }
  0x51   :  { %757 = vmatpush2.bf16.msra.mxu0 %v2647_v24  ;;  %1046 = vmatpush2.bf16.msra.mxu1 %v2648_v26  ;;  %4136 = vst [vmem:[#allocation36_spill] sm:$0xff] %v3173_v23  ;;  %v123_v24 = vld [vmem:[#allocation8 + $0x100] sm:$0xff]  ;;  %4143 = vst [vmem:[#allocation43_spill] sm:$0xff] %v3217_v18 }
  0x52   :  { %758 = vmatprep.subr.bf16.mxu0 %v3021_v0  ;;  %1047 = vmatprep.subr.bf16.mxu1 %v3021_v0  ;;  %v127_v26 = vld [vmem:[#allocation8 + $0x120] sm:$0xff]  ;;  %4152 = vst [vmem:[#allocation52_spill] sm:$0xff] %v3243_v5  ;;  %4153 = vst [vmem:[#allocation53_spill] sm:$0xff] %v3245_v6 }
  0x55   :  { %759 = vmatpush2.bf16.msra.mxu0 %v2649_v27  ;;  %1048 = vmatpush2.bf16.msra.mxu1 %v2650_v28  ;;  %v125_v27 = vld [vmem:[#allocation8 + $0x110] sm:$0xff] }
  0x56   :  { %760 = vmatprep.subr.bf16.mxu0 %v3021_v0  ;;  %1049 = vmatprep.subr.bf16.mxu1 %v3021_v0  ;;  %v129_v28 = vld [vmem:[#allocation8 + $0x130] sm:$0xff] }
  0x59   :  { %761 = vmatpush2.bf16.msra.mxu0 %v2651_v29  ;;  %1050 = vmatpush2.bf16.msra.mxu1 %v2652_v30  ;;  %v132_v29 = vld [vmem:[#allocation8 + $0x148] sm:$0xff] }
  0x5a   :  { %762 = vmatprep.subr.bf16.mxu0 %v3021_v0  ;;  %1051 = vmatprep.subr.bf16.mxu1 %v3021_v0  ;;  %v136_v30 = vld [vmem:[#allocation8 + $0x168] sm:$0xff] }
  0x5d   :  { %763 = vmatpush2.bf16.msra.mxu0 %v2653_v31  ;;  %1052 = vmatpush2.bf16.msra.mxu1 %v2654_v32  ;;  %v134_v31 = vld [vmem:[#allocation8 + $0x158] sm:$0xff] }
  0x5e   :  { %764 = vmatprep.subr.bf16.mxu0 %v3021_v0  ;;  %1053 = vmatprep.subr.bf16.mxu1 %v3021_v0  ;;  %v138_v32 = vld [vmem:[#allocation8 + $0x178] sm:$0xff] }
  0x61   :  { %765 = vmatpush2.bf16.msra.mxu0 %v2655_v33  ;;  %1054 = vmatpush2.bf16.msra.mxu1 %v2656_v34  ;;  %v3179_v33 = vpack.c.bf16 %v127_v26, %v123_v24  ;;  %v3181_v34 = vpack.c.bf16 %v129_v28, %v125_v27  ;;  %v3219_v24 = vpack.c.bf16 %v160_v14, %v156_v13  ;;  %v155_v27 = vld [vmem:[#allocation8 + $0x200] sm:$0xff]  ;;  %v173_v13 = vld [vmem:[#allocation8 + $0x290] sm:$0xff] }
  0x62   :  { %766 = vmatprep.subr.bf16.mxu0 %v3021_v0  ;;  %1055 = vmatprep.subr.bf16.mxu1 %v3021_v0  ;;  %v3221_v26 = vpack.c.bf16 %v162_v16, %v158_v15  ;;  %v159_v28 = vld [vmem:[#allocation8 + $0x220] sm:$0xff]  ;;  %v177_v14 = vld [vmem:[#allocation8 + $0x2b0] sm:$0xff]  ;;  %v180_v15 = vld [vmem:[#allocation8 + $0x2c8] sm:$0xff] }
  0x63   :  { %4137 = vst [vmem:[#allocation37_spill] sm:$0xff] %v3181_v34  ;;  %4144 = vst [vmem:[#allocation44_spill] sm:$0xff] %v3219_v24  ;;  %v3227_v39 = vpack.c.bf16 %v159_v28, %v155_v27  ;;  %v184_v16 = vld [vmem:[#allocation8 + $0x2e8] sm:$0xff]  ;;  %v182_v27 = vld [vmem:[#allocation8 + $0x2d8] sm:$0xff] }
  0x64   :  { %4145 = vst [vmem:[#allocation45_spill] sm:$0xff] %v3221_v26  ;;  %v186_v28 = vld [vmem:[#allocation8 + $0x2f8] sm:$0xff] }
  0x65   :  { %767 = vmatpush2.bf16.msra.mxu0 %v2657_v35  ;;  %1056 = vmatpush2.bf16.msra.mxu1 %v2658_v36  ;;  %v3183_v35 = vpack.c.bf16 %v136_v30, %v132_v29  ;;  %v3185_v36 = vpack.c.bf16 %v138_v32, %v134_v31  ;;  %v157_v29 = vld [vmem:[#allocation8 + $0x210] sm:$0xff]  ;;  %v164_v31 = vld [vmem:[#allocation8 + $0x248] sm:$0xff]  ;;  %4146 = vst [vmem:[#allocation46_spill] sm:$0xff] %v3227_v39 }
  0x66   :  { %768 = vmatprep.subr.bf16.mxu0 %v3021_v0  ;;  %1057 = vmatprep.subr.bf16.mxu1 %v3021_v0  ;;  %v111_v0 = vld [vmem:[#allocation8 + $0xa0] sm:$0xff]  ;;  %v161_v30 = vld [vmem:[#allocation8 + $0x230] sm:$0xff]  ;;  %v168_v32 = vld [vmem:[#allocation8 + $0x268] sm:$0xff] }
  0x67   :  { %v3155_v7 = vpack.c.bf16 %v111_v0, %v107_v63  ;;  %4138 = vst [vmem:[#allocation38_spill] sm:$0xff] %v3185_v36  ;;  %v150_v63 = vld [vmem:[#allocation8 + $0x1d8] sm:$0xff]  ;;  %v3229_v40 = vpack.c.bf16 %v161_v30, %v157_v29  ;;  %v3231_v41 = vpack.c.bf16 %v168_v32, %v164_v31  ;;  %v3251_v29 = vpack.c.bf16 %v175_v12, %v171_v11 }
  0x68   :  { %v154_v0 = vld [vmem:[#allocation8 + $0x1f8] sm:$0xff]  ;;  %v3253_v30 = vpack.c.bf16 %v177_v14, %v173_v13  ;;  %v3255_v31 = vpack.c.bf16 %v184_v16, %v180_v15  ;;  %v3257_v32 = vpack.c.bf16 %v186_v28, %v182_v27  ;;  %v3269_v12 = vpack.c.bf16 %v194_v56, %v190_v55  ;;  %v187_v13 = vld [vmem:[#allocation8 + $0x300] sm:$0xff]  ;;  %v189_v15 = vld [vmem:[#allocation8 + $0x310] sm:$0xff] }
  0x69   :  { %769 = vmatpush2.bf16.msra.mxu0 %v2659_v37  ;;  %1058 = vmatpush2.bf16.msra.mxu1 %v2660_v38  ;;  %4131 = vst [vmem:[#allocation31_spill] sm:$0xff] %v3155_v7  ;;  %v131_v37 = vld [vmem:[#allocation8 + $0x140] sm:$0xff]  ;;  %v3209_v4 = vpack.c.bf16 %v154_v0, %v150_v63  ;;  %4147 = vst [vmem:[#allocation47_spill] sm:$0xff] %v3229_v40  ;;  %v3239_v63 = vpack.c.bf16 %v167_v44, %v163_v43  ;;  %v181_v43 = vld [vmem:[#allocation8 + $0x2d0] sm:$0xff] }
  0x6a   :  { %v135_v38 = vld [vmem:[#allocation8 + $0x160] sm:$0xff]  ;;  %4148 = vst [vmem:[#allocation48_spill] sm:$0xff] %v3231_v41  ;;  %v3241_v0 = vpack.c.bf16 %v169_v54, %v165_v53  ;;  %4154 = vst [vmem:[#allocation54_spill] sm:$0xff] %v3251_v29  ;;  %v185_v44 = vld [vmem:[#allocation8 + $0x2f0] sm:$0xff] }
  0x6b   :  { %v3191_v45 = vpack.c.bf16 %v135_v38, %v131_v37  ;;  %4142 = vst [vmem:[#allocation42_spill] sm:$0xff] %v3209_v4  ;;  %v166_v37 = vld [vmem:[#allocation8 + $0x258] sm:$0xff]  ;;  %4150 = vst [vmem:[#allocation50_spill] sm:$0xff] %v3239_v63  ;;  %v188_v53 = vld [vmem:[#allocation8 + $0x308] sm:$0xff]  ;;  %v3265_v58 = vpack.c.bf16 %v185_v44, %v181_v43 }
  0x6c   :  { %771 = vmatmul.mubr.bf16.vlgmr.msra.gmra.mxu0 %v3131_v47  ;;  %1060 = vmatmul.mubr.bf16.vlgmr.msra.gmra.mxu1 %v3133_v48  ;;  %v170_v38 = vld [vmem:[#allocation8 + $0x278] sm:$0xff]  ;;  %4151 = vst [vmem:[#allocation51_spill] sm:$0xff] %v3241_v0  ;;  %4155 = vst [vmem:[#allocation55_spill] sm:$0xff] %v3253_v30  ;;  %v192_v54 = vld [vmem:[#allocation8 + $0x328] sm:$0xff] }
  0x6d   :  { %778 = vmatprep.mubr.bf16.mxu0 %v3135_v49  ;;  %1067 = vmatprep.mubr.bf16.mxu1 %v3137_v50  ;;  %v3233_v42 = vpack.c.bf16 %v170_v38, %v166_v37  ;;  %4156 = vst [vmem:[#allocation56_spill] sm:$0xff] %v3255_v31  ;;  %4157 = vst [vmem:[#allocation57_spill] sm:$0xff] %v3257_v32  ;;  %v179_v37 = vld [vmem:[#allocation8 + $0x2c0] sm:$0xff]  ;;  %v3267_v11 = vpack.c.bf16 %v192_v54, %v188_v53  ;;  %v193_v16 = vld [vmem:[#allocation8 + $0x330] sm:$0xff] }
  0x6e   :  { %v183_v38 = vld [vmem:[#allocation8 + $0x2e0] sm:$0xff]  ;;  %4159 = vst [vmem:[#allocation59_spill] sm:$0xff] %v3265_v58  ;;  %4161 = vst [vmem:[#allocation61_spill] sm:$0xff] %v3269_v12  ;;  %v196_v27 = vld [vmem:[#allocation8 + $0x348] sm:$0xff]  ;;  %v3277_v44 = vpack.c.bf16 %v193_v16, %v189_v15 }
  0x6f   :  { %4149 = vst [vmem:[#allocation49_spill] sm:$0xff] %v3233_v42  ;;  %v3263_v57 = vpack.c.bf16 %v183_v38, %v179_v37  ;;  %4160 = vst [vmem:[#allocation60_spill] sm:$0xff] %v3267_v11  ;;  %v191_v14 = vld [vmem:[#allocation8 + $0x320] sm:$0xff]  ;;  %v200_v28 = vld [vmem:[#allocation8 + $0x368] sm:$0xff] }
  0x70   :  { %v198_v37 = vld [vmem:[#allocation8 + $0x358] sm:$0xff]  ;;  %v3275_v43 = vpack.c.bf16 %v191_v14, %v187_v13  ;;  %4163 = vst [vmem:[#allocation63_spill] sm:$0xff] %v3277_v44  ;;  %v3279_v53 = vpack.c.bf16 %v200_v28, %v196_v27  ;;  %v195_v55 = vld [vmem:[#allocation8 + $0x340] sm:$0xff]  ;;  %v204_v13 = vld [vmem:[#allocation8 + $0x388] sm:$0xff] }
  0x71   :  { %4158 = vst [vmem:[#allocation58_spill] sm:$0xff] %v3263_v57  ;;  %v202_v38 = vld [vmem:[#allocation8 + $0x378] sm:$0xff]  ;;  %v199_v56 = vld [vmem:[#allocation8 + $0x360] sm:$0xff]  ;;  %v208_v14 = vld [vmem:[#allocation8 + $0x3a8] sm:$0xff] }
  0x72   :  { %4162 = vst [vmem:[#allocation62_spill] sm:$0xff] %v3275_v43  ;;  %4164 = vst [vmem:[#allocation64_spill] sm:$0xff] %v3279_v53  ;;  %v3281_v54 = vpack.c.bf16 %v202_v38, %v198_v37  ;;  %v206_v15 = vld [vmem:[#allocation8 + $0x398] sm:$0xff]  ;;  %v3287_v27 = vpack.c.bf16 %v199_v56, %v195_v55  ;;  %v3291_v37 = vpack.c.bf16 %v208_v14, %v204_v13  ;;  %v212_v55 = vld [vmem:[#allocation8 + $0x3c8] sm:$0xff] }
  0x73   :  { %v210_v16 = vld [vmem:[#allocation8 + $0x3b8] sm:$0xff]  ;;  %v216_v56 = vld [vmem:[#allocation8 + $0x3e8] sm:$0xff]  ;;  %v229_v48 = vld [vmem:[#allocation8 + $0x450] sm:$0xff] }
  0x74   :  { %779 = vmatmul.mubr.bf16.gmra.mxu0 %v3143_v59  ;;  %1068 = vmatmul.mubr.bf16.gmra.mxu1 %v3145_v60  ;;  %4165 = vst [vmem:[#allocation65_spill] sm:$0xff] %v3281_v54  ;;  %4166 = vst [vmem:[#allocation66_spill] sm:$0xff] %v3287_v27  ;;  %v3293_v38 = vpack.c.bf16 %v210_v16, %v206_v15  ;;  %v3303_v15 = vpack.c.bf16 %v216_v56, %v212_v55  ;;  %v237_v60 = vld [vmem:[#allocation8 + $0x490] sm:$0xff]  ;;  %v247_v50 = vld [vmem:[#allocation8 + $0x4e0] sm:$0xff] }
  0x75   :  { %786 = vmatprep.mubr.bf16.mxu0 %v3147_v61  ;;  %1075 = vmatprep.mubr.bf16.mxu1 %v3149_v62  ;;  %4168 = vst [vmem:[#allocation68_spill] sm:$0xff] %v3291_v37  ;;  %v255_v62 = vld [vmem:[#allocation8 + $0x520] sm:$0xff] }
  0x76   :  { %4169 = vst [vmem:[#allocation69_spill] sm:$0xff] %v3293_v38  ;;  %4172 = vst [vmem:[#allocation72_spill] sm:$0xff] %v3303_v15 }
  0x7c   :  { %787 = vmatmul.mubr.bf16.gmra.mxu0 %v3155_v7  ;;  %1076 = vmatmul.mubr.bf16.gmra.mxu1 %v3157_v8  ;;  %v245_v8 = vld [vmem:[#allocation8 + $0x4d0] sm:$0xff] }
  0x7d   :  { %794 = vmatprep.mubr.bf16.mxu0 %v3159_v9  ;;  %1083 = vmatprep.mubr.bf16.mxu1 %v3161_v10  ;;  %v263_v10 = vld [vmem:[#allocation8 + $0x560] sm:$0xff] }
  0x84   :  { %795 = vmatmul.mubr.bf16.gmra.mxu0 %v3167_v19  ;;  %1084 = vmatmul.mubr.bf16.gmra.mxu1 %v3169_v20  ;;  %v253_v20 = vld [vmem:[#allocation8 + $0x510] sm:$0xff] }
  0x85   :  { %802 = vmatprep.mubr.bf16.mxu0 %v3171_v21  ;;  %1091 = vmatprep.mubr.bf16.mxu1 %v3173_v23  ;;  %v271_v23 = vld [vmem:[#allocation8 + $0x5a0] sm:$0xff] }
  0x8c   :  { %803 = vmatmul.mubr.bf16.gmra.mxu0 %v3179_v33  ;;  %1092 = vmatmul.mubr.bf16.gmra.mxu1 %v3181_v34  ;;  %v261_v34 = vld [vmem:[#allocation8 + $0x550] sm:$0xff] }
  0x8d   :  { %810 = vmatprep.mubr.bf16.mxu0 %v3183_v35  ;;  %1099 = vmatprep.mubr.bf16.mxu1 %v3185_v36  ;;  %v279_v36 = vld [vmem:[#allocation8 + $0x5e0] sm:$0xff] }
  0x94   :  { %811 = vmatmul.mubr.bf16.gmra.mxu0 %v3191_v45  ;;  %1100 = vmatmul.mubr.bf16.gmra.mxu1 %v3193_v46  ;;  %v269_v46 = vld [vmem:[#allocation8 + $0x590] sm:$0xff] }
  0x95   :  { %818 = vmatprep.mubr.bf16.mxu0 %v3195_v51  ;;  %1107 = vmatprep.mubr.bf16.mxu1 %v3197_v52  ;;  %v287_v52 = vld [vmem:[#allocation8 + $0x620] sm:$0xff] }
  0x9c   :  { %819 = vmatmul.mubr.bf16.gmra.mxu0 %v3203_v1  ;;  %1108 = vmatmul.mubr.bf16.gmra.mxu1 %v3205_v2  ;;  %v277_v2 = vld [vmem:[#allocation8 + $0x5d0] sm:$0xff] }
  0x9d   :  { %826 = vmatprep.mubr.bf16.mxu0 %v3207_v3  ;;  %1115 = vmatprep.mubr.bf16.mxu1 %v3209_v4 }
  0xa4   :  { %827 = vmatmul.mubr.bf16.gmra.mxu0 %v3215_v17  ;;  %1116 = vmatmul.mubr.bf16.gmra.mxu1 %v3217_v18  ;;  %v285_v18 = vld [vmem:[#allocation8 + $0x610] sm:$0xff] }
  0xa5   :  { %834 = vmatprep.mubr.bf16.mxu0 %v3219_v24  ;;  %1123 = vmatprep.mubr.bf16.mxu1 %v3221_v26  ;;  %v201_v26 = vld [vmem:[#allocation8 + $0x370] sm:$0xff] }
  0xac   :  { %835 = vmatmul.mubr.bf16.gmra.mxu0 %v3227_v39  ;;  %1124 = vmatmul.mubr.bf16.gmra.mxu1 %v3229_v40  ;;  %v197_v40 = vld [vmem:[#allocation8 + $0x350] sm:$0xff] }
  0xad   :  { %842 = vmatprep.mubr.bf16.mxu0 %v3231_v41  ;;  %1131 = vmatprep.mubr.bf16.mxu1 %v3233_v42  ;;  %v3289_v28 = vpack.c.bf16 %v201_v26, %v197_v40  ;;  %v207_v42 = vld [vmem:[#allocation8 + $0x3a0] sm:$0xff]  ;;  %v214_v26 = vld [vmem:[#allocation8 + $0x3d8] sm:$0xff] }
  0xae   :  { %v218_v40 = vld [vmem:[#allocation8 + $0x3f8] sm:$0xff] }
  0xaf   :  { %4167 = vst [vmem:[#allocation67_spill] sm:$0xff] %v3289_v28  ;;  %v3305_v16 = vpack.c.bf16 %v218_v40, %v214_v26 }
  0xb1   :  { %4173 = vst [vmem:[#allocation73_spill] sm:$0xff] %v3305_v16 }
  0xb4   :  { %843 = vmatmul.mubr.bf16.gmra.mxu0 %v3239_v63  ;;  %1132 = vmatmul.mubr.bf16.gmra.mxu1 %v3241_v0  ;;  %v203_v0 = vld [vmem:[#allocation8 + $0x380] sm:$0xff] }
  0xb5   :  { %850 = vmatprep.mubr.bf16.mxu0 %v3243_v5  ;;  %1139 = vmatprep.mubr.bf16.mxu1 %v3245_v6  ;;  %v209_v6 = vld [vmem:[#allocation8 + $0x3b0] sm:$0xff]  ;;  %v3299_v13 = vpack.c.bf16 %v207_v42, %v203_v0  ;;  %v220_v42 = vld [vmem:[#allocation8 + $0x408] sm:$0xff] }
  0xb6   :  { %v224_v0 = vld [vmem:[#allocation8 + $0x428] sm:$0xff] }
  0xb7   :  { %4170 = vst [vmem:[#allocation70_spill] sm:$0xff] %v3299_v13  ;;  %v3315_v26 = vpack.c.bf16 %v224_v0, %v220_v42 }
  0xb9   :  { %4176 = vst [vmem:[#allocation76_spill] sm:$0xff] %v3315_v26 }
  0xbc   :  { %851 = vmatmul.mubr.bf16.gmra.mxu0 %v3251_v29  ;;  %1140 = vmatmul.mubr.bf16.gmra.mxu1 %v3253_v30  ;;  %v205_v30 = vld [vmem:[#allocation8 + $0x390] sm:$0xff] }
  0xbd   :  { %858 = vmatprep.mubr.bf16.mxu0 %v3255_v31  ;;  %1147 = vmatprep.mubr.bf16.mxu1 %v3257_v32  ;;  %v3301_v14 = vpack.c.bf16 %v209_v6, %v205_v30  ;;  %v215_v32 = vld [vmem:[#allocation8 + $0x3e0] sm:$0xff]  ;;  %v222_v6 = vld [vmem:[#allocation8 + $0x418] sm:$0xff] }
  0xbe   :  { %v226_v30 = vld [vmem:[#allocation8 + $0x438] sm:$0xff] }
  0xbf   :  { %4171 = vst [vmem:[#allocation71_spill] sm:$0xff] %v3301_v14  ;;  %v3317_v40 = vpack.c.bf16 %v226_v30, %v222_v6 }
  0xc1   :  { %4177 = vst [vmem:[#allocation77_spill] sm:$0xff] %v3317_v40 }
  0xc4   :  { %859 = vmatmul.mubr.bf16.gmra.mxu0 %v3263_v57  ;;  %1148 = vmatmul.mubr.bf16.gmra.mxu1 %v3265_v58  ;;  %v211_v58 = vld [vmem:[#allocation8 + $0x3c0] sm:$0xff] }
  0xc5   :  { %866 = vmatprep.mubr.bf16.mxu0 %v3267_v11  ;;  %1155 = vmatprep.mubr.bf16.mxu1 %v3269_v12  ;;  %v217_v12 = vld [vmem:[#allocation8 + $0x3f0] sm:$0xff]  ;;  %v3311_v55 = vpack.c.bf16 %v215_v32, %v211_v58  ;;  %v228_v32 = vld [vmem:[#allocation8 + $0x448] sm:$0xff] }
  0xc6   :  { %v232_v58 = vld [vmem:[#allocation8 + $0x468] sm:$0xff] }
  0xc7   :  { %4174 = vst [vmem:[#allocation74_spill] sm:$0xff] %v3311_v55  ;;  %v3327_v6 = vpack.c.bf16 %v232_v58, %v228_v32 }
  0xc9   :  { %4180 = vst [vmem:[#allocation80_spill] sm:$0xff] %v3327_v6 }
  0xcc   :  { %867 = vmatmul.mubr.bf16.gmra.mxu0 %v3275_v43  ;;  %1156 = vmatmul.mubr.bf16.gmra.mxu1 %v3277_v44  ;;  %v213_v44 = vld [vmem:[#allocation8 + $0x3d0] sm:$0xff] }
  0xcd   :  { %874 = vmatprep.mubr.bf16.mxu0 %v3279_v53  ;;  %1163 = vmatprep.mubr.bf16.mxu1 %v3281_v54  ;;  %v3313_v56 = vpack.c.bf16 %v217_v12, %v213_v44  ;;  %v223_v54 = vld [vmem:[#allocation8 + $0x420] sm:$0xff]  ;;  %v230_v12 = vld [vmem:[#allocation8 + $0x458] sm:$0xff] }
  0xce   :  { %v234_v44 = vld [vmem:[#allocation8 + $0x478] sm:$0xff] }
  0xcf   :  { %4175 = vst [vmem:[#allocation75_spill] sm:$0xff] %v3313_v56  ;;  %v3329_v30 = vpack.c.bf16 %v234_v44, %v230_v12 }
  0xd1   :  { %4181 = vst [vmem:[#allocation81_spill] sm:$0xff] %v3329_v30 }
  0xd4   :  { %875 = vmatmul.mubr.bf16.gmra.mxu0 %v3287_v27  ;;  %1164 = vmatmul.mubr.bf16.gmra.mxu1 %v3289_v28  ;;  %v219_v28 = vld [vmem:[#allocation8 + $0x400] sm:$0xff] }
  0xd5   :  { %882 = vmatprep.mubr.bf16.mxu0 %v3291_v37  ;;  %1171 = vmatprep.mubr.bf16.mxu1 %v3293_v38  ;;  %v225_v38 = vld [vmem:[#allocation8 + $0x430] sm:$0xff]  ;;  %v3323_v42 = vpack.c.bf16 %v223_v54, %v219_v28  ;;  %v236_v54 = vld [vmem:[#allocation8 + $0x488] sm:$0xff] }
  0xd6   :  { %v240_v28 = vld [vmem:[#allocation8 + $0x4a8] sm:$0xff] }
  0xd7   :  { %4178 = vst [vmem:[#allocation78_spill] sm:$0xff] %v3323_v42  ;;  %v3339_v12 = vpack.c.bf16 %v240_v28, %v236_v54 }
  0xd9   :  { %4184 = vst [vmem:[#allocation84_spill] sm:$0xff] %v3339_v12 }
  0xdc   :  { %883 = vmatmul.mubr.bf16.gmra.mxu0 %v3299_v13  ;;  %1172 = vmatmul.mubr.bf16.gmra.mxu1 %v3301_v14  ;;  %v221_v14 = vld [vmem:[#allocation8 + $0x410] sm:$0xff] }
  0xdd   :  { %890 = vmatprep.mubr.bf16.mxu0 %v3303_v15  ;;  %1179 = vmatprep.mubr.bf16.mxu1 %v3305_v16  ;;  %v3325_v0 = vpack.c.bf16 %v225_v38, %v221_v14  ;;  %v231_v16 = vld [vmem:[#allocation8 + $0x460] sm:$0xff]  ;;  %v238_v38 = vld [vmem:[#allocation8 + $0x498] sm:$0xff] }
  0xde   :  { %v242_v14 = vld [vmem:[#allocation8 + $0x4b8] sm:$0xff] }
  0xdf   :  { %4179 = vst [vmem:[#allocation79_spill] sm:$0xff] %v3325_v0  ;;  %v3341_v44 = vpack.c.bf16 %v242_v14, %v238_v38 }
  0xe1   :  { %4185 = vst [vmem:[#allocation85_spill] sm:$0xff] %v3341_v44 }
  0xe4   :  { %891 = vmatmul.mubr.bf16.gmra.mxu0 %v3311_v55  ;;  %1180 = vmatmul.mubr.bf16.gmra.mxu1 %v3313_v56  ;;  %v227_v56 = vld [vmem:[#allocation8 + $0x440] sm:$0xff] }
  0xe5   :  { %898 = vmatprep.mubr.bf16.mxu0 %v3315_v26  ;;  %1187 = vmatprep.mubr.bf16.mxu1 %v3317_v40  ;;  %v233_v40 = vld [vmem:[#allocation8 + $0x470] sm:$0xff]  ;;  %v3335_v32 = vpack.c.bf16 %v231_v16, %v227_v56  ;;  %v244_v16 = vld [vmem:[#allocation8 + $0x4c8] sm:$0xff] }
  0xe6   :  { %v3337_v58 = vpack.c.bf16 %v233_v40, %v229_v48  ;;  %v248_v56 = vld [vmem:[#allocation8 + $0x4e8] sm:$0xff]  ;;  %v246_v48 = vld [vmem:[#allocation8 + $0x4d8] sm:$0xff] }
  0xe7   :  { %4182 = vst [vmem:[#allocation82_spill] sm:$0xff] %v3335_v32  ;;  %v250_v40 = vld [vmem:[#allocation8 + $0x4f8] sm:$0xff]  ;;  %v3351_v38 = vpack.c.bf16 %v248_v56, %v244_v16 }
  0xe8   :  { %4183 = vst [vmem:[#allocation83_spill] sm:$0xff] %v3337_v58  ;;  %v3353_v14 = vpack.c.bf16 %v250_v40, %v246_v48 }
  0xe9   :  { %4188 = vst [vmem:[#allocation88_spill] sm:$0xff] %v3351_v38 }
  0xea   :  { %4189 = vst [vmem:[#allocation89_spill] sm:$0xff] %v3353_v14 }
  0xec   :  { %899 = vmatmul.mubr.bf16.gmra.mxu0 %v3323_v42  ;;  %1188 = vmatmul.mubr.bf16.gmra.mxu1 %v3325_v0  ;;  %v235_v0 = vld [vmem:[#allocation8 + $0x480] sm:$0xff] }
  0xed   :  { %906 = vmatprep.mubr.bf16.mxu0 %v3327_v6  ;;  %1195 = vmatprep.mubr.bf16.mxu1 %v3329_v30  ;;  %v241_v30 = vld [vmem:[#allocation8 + $0x4b0] sm:$0xff]  ;;  %v3347_v54 = vpack.c.bf16 %v239_v25, %v235_v0  ;;  %v252_v25 = vld [vmem:[#allocation8 + $0x508] sm:$0xff] }
  0xee   :  { %v3349_v28 = vpack.c.bf16 %v241_v30, %v237_v60  ;;  %v256_v0 = vld [vmem:[#allocation8 + $0x528] sm:$0xff]  ;;  %v254_v60 = vld [vmem:[#allocation8 + $0x518] sm:$0xff] }
  0xef   :  { %4186 = vst [vmem:[#allocation86_spill] sm:$0xff] %v3347_v54  ;;  %v258_v30 = vld [vmem:[#allocation8 + $0x538] sm:$0xff]  ;;  %v3363_v48 = vpack.c.bf16 %v256_v0, %v252_v25 }
  0xf0   :  { %4187 = vst [vmem:[#allocation87_spill] sm:$0xff] %v3349_v28  ;;  %v3365_v40 = vpack.c.bf16 %v258_v30, %v254_v60 }
  0xf1   :  { %4192 = vst [vmem:[#allocation92_spill] sm:$0xff] %v3363_v48 }
  0xf2   :  { %4193 = vst [vmem:[#allocation93_spill] sm:$0xff] %v3365_v40 }
  0xf4   :  { %907 = vmatmul.mubr.bf16.gmra.mxu0 %v3335_v32  ;;  %1196 = vmatmul.mubr.bf16.gmra.mxu1 %v3337_v58  ;;  %v243_v58 = vld [vmem:[#allocation8 + $0x4c0] sm:$0xff]  ;;  %v306_v32 = vld [vmem:[#allocation8 + $0x6b8] sm:$0xff] }
  0xf5   :  { %914 = vmatprep.mubr.bf16.mxu0 %v3339_v12  ;;  %1203 = vmatprep.mubr.bf16.mxu1 %v3341_v44  ;;  %v249_v44 = vld [vmem:[#allocation8 + $0x4f0] sm:$0xff]  ;;  %v3359_v16 = vpack.c.bf16 %v247_v50, %v243_v58  ;;  %v260_v50 = vld [vmem:[#allocation8 + $0x548] sm:$0xff] }
  0xf6   :  { %v3361_v56 = vpack.c.bf16 %v249_v44, %v245_v8  ;;  %v264_v58 = vld [vmem:[#allocation8 + $0x568] sm:$0xff]  ;;  %v262_v8 = vld [vmem:[#allocation8 + $0x558] sm:$0xff] }
  0xf7   :  { %4190 = vst [vmem:[#allocation90_spill] sm:$0xff] %v3359_v16  ;;  %v266_v44 = vld [vmem:[#allocation8 + $0x578] sm:$0xff]  ;;  %v3375_v60 = vpack.c.bf16 %v264_v58, %v260_v50 }
  0xf8   :  { %4191 = vst [vmem:[#allocation91_spill] sm:$0xff] %v3361_v56  ;;  %v3377_v30 = vpack.c.bf16 %v266_v44, %v262_v8 }
  0xf9   :  { %4196 = vst [vmem:[#allocation96_spill] sm:$0xff] %v3375_v60 }
  0xfa   :  { %4197 = vst [vmem:[#allocation97_spill] sm:$0xff] %v3377_v30 }
  0xfc   :  { %915 = vmatmul.mubr.bf16.gmra.mxu0 %v3347_v54  ;;  %1204 = vmatmul.mubr.bf16.gmra.mxu1 %v3349_v28  ;;  %v251_v28 = vld [vmem:[#allocation8 + $0x500] sm:$0xff] }
  0xfd   :  { %922 = vmatprep.mubr.bf16.mxu0 %v3351_v38  ;;  %1211 = vmatprep.mubr.bf16.mxu1 %v3353_v14  ;;  %v257_v14 = vld [vmem:[#allocation8 + $0x530] sm:$0xff]  ;;  %v3371_v25 = vpack.c.bf16 %v255_v62, %v251_v28  ;;  %v268_v62 = vld [vmem:[#allocation8 + $0x588] sm:$0xff] }
  0xfe   :  { %v3373_v0 = vpack.c.bf16 %v257_v14, %v253_v20  ;;  %v272_v28 = vld [vmem:[#allocation8 + $0x5a8] sm:$0xff]  ;;  %v270_v20 = vld [vmem:[#allocation8 + $0x598] sm:$0xff] }
  0xff   :  { %4194 = vst [vmem:[#allocation94_spill] sm:$0xff] %v3371_v25  ;;  %v274_v14 = vld [vmem:[#allocation8 + $0x5b8] sm:$0xff]  ;;  %v3387_v8 = vpack.c.bf16 %v272_v28, %v268_v62 }
 0x100   :  { %4195 = vst [vmem:[#allocation95_spill] sm:$0xff] %v3373_v0  ;;  %v3389_v44 = vpack.c.bf16 %v274_v14, %v270_v20 }
 0x101   :  { %4200 = vst [vmem:[#allocation100_spill] sm:$0xff] %v3387_v8 }
 0x102   :  { %4201 = vst [vmem:[#allocation101_spill] sm:$0xff] %v3389_v44 }
 0x104   :  { %923 = vmatmul.mubr.bf16.gmra.mxu0 %v3359_v16  ;;  %1212 = vmatmul.mubr.bf16.gmra.mxu1 %v3361_v56  ;;  %v259_v56 = vld [vmem:[#allocation8 + $0x540] sm:$0xff] }
 0x105   :  { %930 = vmatprep.mubr.bf16.mxu0 %v3363_v48  ;;  %1219 = vmatprep.mubr.bf16.mxu1 %v3365_v40  ;;  %v265_v40 = vld [vmem:[#allocation8 + $0x570] sm:$0xff]  ;;  %v3383_v50 = vpack.c.bf16 %v263_v10, %v259_v56  ;;  %v276_v10 = vld [vmem:[#allocation8 + $0x5c8] sm:$0xff] }
 0x106   :  { %v3385_v58 = vpack.c.bf16 %v265_v40, %v261_v34  ;;  %v280_v56 = vld [vmem:[#allocation8 + $0x5e8] sm:$0xff]  ;;  %v278_v34 = vld [vmem:[#allocation8 + $0x5d8] sm:$0xff] }
 0x107   :  { %4198 = vst [vmem:[#allocation98_spill] sm:$0xff] %v3383_v50  ;;  %v282_v40 = vld [vmem:[#allocation8 + $0x5f8] sm:$0xff]  ;;  %v3399_v20 = vpack.c.bf16 %v280_v56, %v276_v10 }
 0x108   :  { %4199 = vst [vmem:[#allocation99_spill] sm:$0xff] %v3385_v58  ;;  %v3401_v14 = vpack.c.bf16 %v282_v40, %v278_v34 }
 0x109   :  { %4204 = vst [vmem:[#allocation104_spill] sm:$0xff] %v3399_v20 }
 0x10a   :  { %4205 = vst [vmem:[#allocation105_spill] sm:$0xff] %v3401_v14 }
 0x10c   :  { %931 = vmatmul.mubr.bf16.gmra.mxu0 %v3371_v25  ;;  %1220 = vmatmul.mubr.bf16.gmra.mxu1 %v3373_v0  ;;  %v267_v0 = vld [vmem:[#allocation8 + $0x580] sm:$0xff] }
 0x10d   :  { %938 = vmatprep.mubr.bf16.mxu0 %v3375_v60  ;;  %1227 = vmatprep.mubr.bf16.mxu1 %v3377_v30  ;;  %v273_v30 = vld [vmem:[#allocation8 + $0x5b0] sm:$0xff]  ;;  %v3395_v62 = vpack.c.bf16 %v271_v23, %v267_v0  ;;  %v284_v23 = vld [vmem:[#allocation8 + $0x608] sm:$0xff] }
 0x10e   :  { %v3397_v28 = vpack.c.bf16 %v273_v30, %v269_v46  ;;  %v288_v0 = vld [vmem:[#allocation8 + $0x628] sm:$0xff]  ;;  %v286_v46 = vld [vmem:[#allocation8 + $0x618] sm:$0xff] }
 0x10f   :  { %4202 = vst [vmem:[#allocation102_spill] sm:$0xff] %v3395_v62  ;;  %v290_v30 = vld [vmem:[#allocation8 + $0x638] sm:$0xff]  ;;  %v3411_v34 = vpack.c.bf16 %v288_v0, %v284_v23 }
 0x110   :  { %4203 = vst [vmem:[#allocation103_spill] sm:$0xff] %v3397_v28  ;;  %v3413_v40 = vpack.c.bf16 %v290_v30, %v286_v46  ;;  %v3428_v30 = vld [vmem:[%s3994_s3] ss:$0 sm:$0xff] }
 0x111   :  { %4208 = vst [vmem:[#allocation108_spill] sm:$0xff] %v3411_v34 }
 0x112   :  { %4209 = vst [vmem:[#allocation109_spill] sm:$0xff] %v3413_v40 }
 0x114   :  { %939 = vmatmul.mubr.bf16.gmra.mxu0 %v3383_v50  ;;  %1228 = vmatmul.mubr.bf16.gmra.mxu1 %v3385_v58  ;;  %v275_v58 = vld [vmem:[#allocation8 + $0x5c0] sm:$0xff] }
 0x115   :  { %946 = vmatprep.mubr.bf16.mxu0 %v3387_v8  ;;  %1235 = vmatprep.mubr.bf16.mxu1 %v3389_v44  ;;  %v281_v44 = vld [vmem:[#allocation8 + $0x5f0] sm:$0xff]  ;;  %v3407_v10 = vpack.c.bf16 %v279_v36, %v275_v58  ;;  %v292_v36 = vld [vmem:[#allocation8 + $0x648] sm:$0xff] }
 0x116   :  { %v3409_v56 = vpack.c.bf16 %v281_v44, %v277_v2  ;;  %v296_v58 = vld [vmem:[#allocation8 + $0x668] sm:$0xff]  ;;  %v294_v2 = vld [vmem:[#allocation8 + $0x658] sm:$0xff] }
 0x117   :  { %4206 = vst [vmem:[#allocation106_spill] sm:$0xff] %v3407_v10  ;;  %v298_v44 = vld [vmem:[#allocation8 + $0x678] sm:$0xff]  ;;  %v3423_v46 = vpack.c.bf16 %v296_v58, %v292_v36  ;;  %v297_v36 = vld [vmem:[#allocation8 + $0x670] sm:$0xff]  ;;  %v300_v58 = vld [vmem:[#allocation8 + $0x688] sm:$0xff] }
 0x118   :  { %4207 = vst [vmem:[#allocation107_spill] sm:$0xff] %v3409_v56 }
 0x119   :  { %4212 = vst [vmem:[#allocation112_spill] sm:$0xff] %v3423_v46 }
 0x11c   :  { %947 = vmatmul.mubr.bf16.gmra.mxu0 %v3395_v62  ;;  %1236 = vmatmul.mubr.bf16.gmra.mxu1 %v3397_v28  ;;  %v283_v28 = vld [vmem:[#allocation8 + $0x600] sm:$0xff] }
 0x11d   :  { %954 = vmatprep.mubr.bf16.mxu0 %v3399_v20  ;;  %1243 = vmatprep.mubr.bf16.mxu1 %v3401_v14  ;;  %v289_v14 = vld [vmem:[#allocation8 + $0x630] sm:$0xff]  ;;  %v3419_v23 = vpack.c.bf16 %v287_v52, %v283_v28  ;;  %v291_v52 = vld [vmem:[#allocation8 + $0x640] sm:$0xff] }
 0x11e   :  { %v3421_v0 = vpack.c.bf16 %v289_v14, %v285_v18  ;;  %v295_v18 = vld [vmem:[#allocation8 + $0x660] sm:$0xff]  ;;  %v293_v28 = vld [vmem:[#allocation8 + $0x650] sm:$0xff] }
 0x11f   :  { %4210 = vst [vmem:[#allocation110_spill] sm:$0xff] %v3419_v23  ;;  %v3439_v6 = vpack.c.bf16 %v295_v18, %v291_v52  ;;  %v3442_v54 = vpack.c.bf16 %v297_v36, %v293_v28  ;;  %v299_v18 = vld [vmem:[#allocation8 + $0x680] sm:$0xff]  ;;  %v301_v36 = vld [vmem:[#allocation8 + $0x690] sm:$0xff] }
 0x120   :  { %4211 = vst [vmem:[#allocation111_spill] sm:$0xff] %v3421_v0  ;;  %v303_v28 = vld [vmem:[#allocation8 + $0x6a0] sm:$0xff] }
 0x121   :  { %4214 = vst [vmem:[#allocation114_spill] sm:$0xff] %v3439_v6  ;;  %4215 = vst [vmem:[#allocation115_spill] sm:$0xff] %v3442_v54 }
 0x124   :  { %955 = vmatmul.mubr.bf16.gmra.mxu0 %v3407_v10  ;;  %1244 = vmatmul.mubr.bf16.gmra.mxu1 %v3409_v56  ;;  %v3430_v56 = vpack.c.bf16 %v298_v44, %v294_v2  ;;  %v304_v2 = vld [vmem:[#allocation8 + $0x6a8] sm:$0xff] }
 0x125   :  { %962 = vmatprep.mubr.bf16.mxu0 %v3411_v34  ;;  %1251 = vmatprep.mubr.bf16.mxu1 %v3413_v40  ;;  %v3444_v12 = vpack.c.bf16 %v304_v2, %v300_v58 }
 0x126   :  { %4213 = vst [vmem:[#allocation113_spill] sm:$0xff] %v3430_v56 }
 0x127   :  { %4216 = vst [vmem:[#allocation116_spill] sm:$0xff] %v3444_v12 }
 0x12c   :  { %v772_v34 = vpop.f32.mrf.mxu0  ;;  %963 = vmatmul.mubr.bf16.gmra.mxu0 %v3419_v23  ;;  %v1061_v42 = vpop.f32.mrf.mxu1  ;;  %1252 = vmatmul.mubr.bf16.gmra.mxu1 %v3421_v0  ;;  %v302_v23 = vld [vmem:[#allocation8 + $0x698] sm:$0xff] }
 0x12d   :  { %v773_v40 = vadd.f32 %v3428_v30, %v772_v34  ;;  %970 = vmatprep.mubr.bf16.mxu0 %v3423_v46  ;;  %1259 = vmatprep.mubr.bf16.mxu1 %v3430_v56  ;;  %v3446_v56 = vpack.c.bf16 %v306_v32, %v302_v23  ;;  %v305_v32 = vld [vmem:[#allocation8 + $0x6b0] sm:$0xff]  ;;  %v308_v23 = vld [vmem:[#allocation8 + $0x6c8] sm:$0xff] }
 0x12e   :  { %v774_v14 = vpop.f32.mrf.mxu0  ;;  %v1063_v26 = vpop.f32.mrf.mxu1 }
 0x12f   :  { %v3437_v44 = vadd.f32 %v1061_v42, %v773_v40  ;;  %4217 = vst [vmem:[#allocation117_spill] sm:$0xff] %v3446_v56 }
 0x130   :  { %v775_v34 = vpop.f32.mrf.mxu0  ;;  %v1064_v46 = vpop.f32.mrf.mxu1 }
 0x131   :  { %v776_v0 = vadd.f32 %v3428_v30, %v775_v34  ;;  %v310_v34 = vld [vmem:[#allocation8 + $0x6d8] sm:$0xff] }
 0x132   :  { %v777_v14 = vpop.f32.mrf.mxu0  ;;  %v1066_v42 = vpop.f32.mrf.mxu1 }
 0x133   :  { %v3448_v16 = vadd.f32 %v1064_v46, %v776_v0  ;;  %v312_v0 = vld [vmem:[#allocation8 + $0x6e8] sm:$0xff]  ;;  %v314_v14 = vld [vmem:[#allocation8 + $0x6f8] sm:$0xff] }
 0x134   :  { %v780_v40 = vpop.f32.mrf.mxu0  ;;  %971 = vmatmul.mubr.bf16.gmra.mxu0 %v3439_v6  ;;  %v1069_v52 = vpop.f32.mrf.mxu1  ;;  %1260 = vmatmul.mubr.bf16.gmra.mxu1 %v3442_v54  ;;  %v3462_v38 = vpack.c.bf16 %v312_v0, %v308_v23  ;;  %v313_v0 = vld [vmem:[#allocation8 + $0x6f0] sm:$0xff] }
 0x135   :  { %v781_v26 = vadd.f32 %v3428_v30, %v780_v40  ;;  %978 = vmatprep.mubr.bf16.mxu0 %v3444_v12  ;;  %1267 = vmatprep.mubr.bf16.mxu1 %v3446_v56  ;;  %v3457_v40 = vpack.c.bf16 %v303_v28, %v299_v18  ;;  %v3460_v12 = vpack.c.bf16 %v305_v32, %v301_v36  ;;  %v307_v28 = vld [vmem:[#allocation8 + $0x6c0] sm:$0xff]  ;;  %v309_v32 = vld [vmem:[#allocation8 + $0x6d0] sm:$0xff] }
 0x136   :  { %v782_v58 = vpop.f32.mrf.mxu0  ;;  %v1071_v2 = vpop.f32.mrf.mxu1  ;;  %4220 = vst [vmem:[#allocation120_spill] sm:$0xff] %v3462_v38  ;;  %v3464_v56 = vpack.c.bf16 %v314_v14, %v310_v34  ;;  %v311_v36 = vld [vmem:[#allocation8 + $0x6e0] sm:$0xff] }
 0x137   :  { %v3455_v46 = vadd.f32 %v1069_v52, %v781_v26  ;;  %4218 = vst [vmem:[#allocation118_spill] sm:$0xff] %v3457_v40  ;;  %4219 = vst [vmem:[#allocation119_spill] sm:$0xff] %v3460_v12 }
 0x138   :  { %v783_v42 = vpop.f32.mrf.mxu0  ;;  %v1072_v6 = vpop.f32.mrf.mxu1  ;;  %4221 = vst [vmem:[#allocation121_spill] sm:$0xff] %v3464_v56 }
 0x139   :  { %v784_v54 = vadd.f32 %v3428_v30, %v783_v42  ;;  %v318_v42 = vld [vmem:[#allocation8 + $0x718] sm:$0xff] }
 0x13a   :  { %v785_v58 = vpop.f32.mrf.mxu0  ;;  %v1074_v26 = vpop.f32.mrf.mxu1 }
 0x13b   :  { %v3466_v25 = vadd.f32 %v1072_v6, %v784_v54  ;;  %v316_v6 = vld [vmem:[#allocation8 + $0x708] sm:$0xff]  ;;  %v322_v58 = vld [vmem:[#allocation8 + $0x738] sm:$0xff] }
 0x13c   :  { %v788_v52 = vpop.f32.mrf.mxu0  ;;  %979 = vmatmul.mubr.bf16.gmra.mxu0 %v3457_v40  ;;  %v1077_v18 = vpop.f32.mrf.mxu1  ;;  %1268 = vmatmul.mubr.bf16.gmra.mxu1 %v3460_v12  ;;  %v320_v54 = vld [vmem:[#allocation8 + $0x728] sm:$0xff] }
 0x13d   :  { %v789_v2 = vadd.f32 %v3428_v30, %v788_v52  ;;  %986 = vmatprep.mubr.bf16.mxu0 %v3462_v38  ;;  %1275 = vmatprep.mubr.bf16.mxu1 %v3464_v56  ;;  %v3475_v52 = vpack.c.bf16 %v311_v36, %v307_v28  ;;  %v3478_v38 = vpack.c.bf16 %v313_v0, %v309_v32  ;;  %v315_v36 = vld [vmem:[#allocation8 + $0x700] sm:$0xff]  ;;  %v317_v0 = vld [vmem:[#allocation8 + $0x710] sm:$0xff] }
 0x13e   :  { %v790_v23 = vpop.f32.mrf.mxu0  ;;  %v1079_v14 = vpop.f32.mrf.mxu1  ;;  %v3480_v48 = vpack.c.bf16 %v320_v54, %v316_v6  ;;  %v3482_v56 = vpack.c.bf16 %v322_v58, %v318_v42  ;;  %v319_v32 = vld [vmem:[#allocation8 + $0x720] sm:$0xff]  ;;  %v321_v54 = vld [vmem:[#allocation8 + $0x730] sm:$0xff] }
 0x13f   :  { %v3473_v34 = vadd.f32 %v1077_v18, %v789_v2  ;;  %4222 = vst [vmem:[#allocation122_spill] sm:$0xff] %v3475_v52  ;;  %4223 = vst [vmem:[#allocation123_spill] sm:$0xff] %v3478_v38 }
 0x140   :  { %v791_v26 = vpop.f32.mrf.mxu0  ;;  %v1080_v40 = vpop.f32.mrf.mxu1  ;;  %4224 = vst [vmem:[#allocation124_spill] sm:$0xff] %v3480_v48  ;;  %4225 = vst [vmem:[#allocation125_spill] sm:$0xff] %v3482_v56 }
 0x141   :  { %v792_v12 = vadd.f32 %v3428_v30, %v791_v26  ;;  %v326_v26 = vld [vmem:[#allocation8 + $0x758] sm:$0xff] }
 0x142   :  { %v793_v23 = vpop.f32.mrf.mxu0  ;;  %v1082_v2 = vpop.f32.mrf.mxu1 }
 0x143   :  { %v3484_v50 = vadd.f32 %v1080_v40, %v792_v12  ;;  %v324_v12 = vld [vmem:[#allocation8 + $0x748] sm:$0xff]  ;;  %v330_v23 = vld [vmem:[#allocation8 + $0x778] sm:$0xff] }
 0x144   :  { %v796_v18 = vpop.f32.mrf.mxu0  ;;  %987 = vmatmul.mubr.bf16.gmra.mxu0 %v3475_v52  ;;  %v1085_v28 = vpop.f32.mrf.mxu1  ;;  %1276 = vmatmul.mubr.bf16.gmra.mxu1 %v3478_v38  ;;  %v328_v40 = vld [vmem:[#allocation8 + $0x768] sm:$0xff] }
 0x145   :  { %v797_v14 = vadd.f32 %v3428_v30, %v796_v18  ;;  %994 = vmatprep.mubr.bf16.mxu0 %v3480_v48  ;;  %1283 = vmatprep.mubr.bf16.mxu1 %v3482_v56  ;;  %v3493_v18 = vpack.c.bf16 %v319_v32, %v315_v36  ;;  %v3496_v48 = vpack.c.bf16 %v321_v54, %v317_v0  ;;  %v323_v32 = vld [vmem:[#allocation8 + $0x740] sm:$0xff]  ;;  %v325_v54 = vld [vmem:[#allocation8 + $0x750] sm:$0xff] }
 0x146   :  { %v798_v6 = vpop.f32.mrf.mxu0  ;;  %v1087_v58 = vpop.f32.mrf.mxu1  ;;  %v3498_v60 = vpack.c.bf16 %v328_v40, %v324_v12  ;;  %v3500_v56 = vpack.c.bf16 %v330_v23, %v326_v26  ;;  %v327_v0 = vld [vmem:[#allocation8 + $0x760] sm:$0xff]  ;;  %v329_v40 = vld [vmem:[#allocation8 + $0x770] sm:$0xff] }
 0x147   :  { %v3491_v42 = vadd.f32 %v1085_v28, %v797_v14  ;;  %4226 = vst [vmem:[#allocation126_spill] sm:$0xff] %v3493_v18  ;;  %4227 = vst [vmem:[#allocation127_spill] sm:$0xff] %v3496_v48 }
 0x148   :  { %v799_v2 = vpop.f32.mrf.mxu0  ;;  %v1088_v52 = vpop.f32.mrf.mxu1  ;;  %4228 = vst [vmem:[#allocation128_spill] sm:$0xff] %v3498_v60  ;;  %4229 = vst [vmem:[#allocation129_spill] sm:$0xff] %v3500_v56 }
 0x149   :  { %v800_v38 = vadd.f32 %v3428_v30, %v799_v2  ;;  %v334_v2 = vld [vmem:[#allocation8 + $0x798] sm:$0xff] }
 0x14a   :  { %v801_v6 = vpop.f32.mrf.mxu0  ;;  %v1090_v14 = vpop.f32.mrf.mxu1 }
 0x14b   :  { %v3502_v62 = vadd.f32 %v1088_v52, %v800_v38  ;;  %v332_v38 = vld [vmem:[#allocation8 + $0x788] sm:$0xff]  ;;  %v338_v6 = vld [vmem:[#allocation8 + $0x7b8] sm:$0xff] }
 0x14c   :  { %v804_v28 = vpop.f32.mrf.mxu0  ;;  %995 = vmatmul.mubr.bf16.gmra.mxu0 %v3493_v18  ;;  %v1093_v36 = vpop.f32.mrf.mxu1  ;;  %1284 = vmatmul.mubr.bf16.gmra.mxu1 %v3496_v48  ;;  %v336_v52 = vld [vmem:[#allocation8 + $0x7a8] sm:$0xff] }
 0x14d   :  { %v805_v58 = vadd.f32 %v3428_v30, %v804_v28  ;;  %1002 = vmatprep.mubr.bf16.mxu0 %v3498_v60  ;;  %1291 = vmatprep.mubr.bf16.mxu1 %v3500_v56  ;;  %v3511_v28 = vpack.c.bf16 %v327_v0, %v323_v32  ;;  %v3514_v60 = vpack.c.bf16 %v329_v40, %v325_v54  ;;  %v331_v0 = vld [vmem:[#allocation8 + $0x780] sm:$0xff]  ;;  %v333_v40 = vld [vmem:[#allocation8 + $0x790] sm:$0xff] }
 0x14e   :  { %v806_v12 = vpop.f32.mrf.mxu0  ;;  %v1095_v23 = vpop.f32.mrf.mxu1  ;;  %v3516_v8 = vpack.c.bf16 %v336_v52, %v332_v38  ;;  %v3518_v56 = vpack.c.bf16 %v338_v6, %v334_v2  ;;  %v335_v54 = vld [vmem:[#allocation8 + $0x7a0] sm:$0xff]  ;;  %v337_v52 = vld [vmem:[#allocation8 + $0x7b0] sm:$0xff] }
 0x14f   :  { %v3509_v26 = vadd.f32 %v1093_v36, %v805_v58  ;;  %4230 = vst [vmem:[#allocation130_spill] sm:$0xff] %v3511_v28  ;;  %4231 = vst [vmem:[#allocation131_spill] sm:$0xff] %v3514_v60 }
 0x150   :  { %v807_v14 = vpop.f32.mrf.mxu0  ;;  %v1096_v18 = vpop.f32.mrf.mxu1  ;;  %4232 = vst [vmem:[#allocation132_spill] sm:$0xff] %v3516_v8  ;;  %4233 = vst [vmem:[#allocation133_spill] sm:$0xff] %v3518_v56 }
 0x151   :  { %v808_v48 = vadd.f32 %v3428_v30, %v807_v14  ;;  %v342_v14 = vld [vmem:[#allocation8 + $0x7d8] sm:$0xff] }
 0x152   :  { %v809_v12 = vpop.f32.mrf.mxu0  ;;  %v1098_v58 = vpop.f32.mrf.mxu1 }
 0x153   :  { %v3520_v10 = vadd.f32 %v1096_v18, %v808_v48  ;;  %v340_v48 = vld [vmem:[#allocation8 + $0x7c8] sm:$0xff]  ;;  %v346_v12 = vld [vmem:[#allocation8 + $0x7f8] sm:$0xff] }
 0x154   :  { %v812_v36 = vpop.f32.mrf.mxu0  ;;  %1003 = vmatmul.mubr.bf16.gmra.mxu0 %v3511_v28  ;;  %v1101_v32 = vpop.f32.mrf.mxu1  ;;  %1292 = vmatmul.mubr.bf16.gmra.mxu1 %v3514_v60  ;;  %v344_v18 = vld [vmem:[#allocation8 + $0x7e8] sm:$0xff] }
 0x155   :  { %v813_v23 = vadd.f32 %v3428_v30, %v812_v36  ;;  %1010 = vmatprep.mubr.bf16.mxu0 %v3516_v8  ;;  %1299 = vmatprep.mubr.bf16.mxu1 %v3518_v56  ;;  %v3529_v36 = vpack.c.bf16 %v335_v54, %v331_v0  ;;  %v3532_v8 = vpack.c.bf16 %v337_v52, %v333_v40  ;;  %v339_v54 = vld [vmem:[#allocation8 + $0x7c0] sm:$0xff] }
 0x156   :  { %v814_v38 = vpop.f32.mrf.mxu0  ;;  %v1103_v6 = vpop.f32.mrf.mxu1  ;;  %v3534_v20 = vpack.c.bf16 %v344_v18, %v340_v48  ;;  %v3536_v56 = vpack.c.bf16 %v346_v12, %v342_v14  ;;  %v343_v40 = vld [vmem:[#allocation8 + $0x7e0] sm:$0xff]  ;;  %v341_v48 = vld [vmem:[#allocation8 + $0x7d0] sm:$0xff] }
 0x157   :  { %v3527_v2 = vadd.f32 %v1101_v32, %v813_v23  ;;  %4234 = vst [vmem:[#allocation134_spill] sm:$0xff] %v3529_v36  ;;  %4235 = vst [vmem:[#allocation135_spill] sm:$0xff] %v3532_v8  ;;  %v345_v18 = vld [vmem:[#allocation8 + $0x7f0] sm:$0xff]  ;;  %v3547_v12 = vpack.c.bf16 %v343_v40, %v339_v54 }
 0x158   :  { %v815_v58 = vpop.f32.mrf.mxu0  ;;  %v1104_v28 = vpop.f32.mrf.mxu1  ;;  %4236 = vst [vmem:[#allocation136_spill] sm:$0xff] %v3534_v20  ;;  %4237 = vst [vmem:[#allocation137_spill] sm:$0xff] %v3536_v56 }
 0x159   :  { %v816_v60 = vadd.f32 %v3428_v30, %v815_v58  ;;  %4238 = vst [vmem:[#allocation138_spill] sm:$0xff] %v3547_v12 }
 0x15a   :  { %v817_v38 = vpop.f32.mrf.mxu0  ;;  %v1106_v23 = vpop.f32.mrf.mxu1 }
 0x15b   :  { %v3538_v4 = vadd.f32 %v1104_v28, %v816_v60  ;;  %v3550_v23 = vpack.c.bf16 %v345_v18, %v341_v48 }
 0x15c   :  { %v820_v32 = vpop.f32.mrf.mxu0  ;;  %1011 = vmatmul.mubr.bf16.gmra.mxu0 %v3529_v36  ;;  %v1109_v0 = vpop.f32.mrf.mxu1  ;;  %1300 = vmatmul.mubr.bf16.gmra.mxu1 %v3532_v8 }
 0x15d   :  { %v821_v6 = vadd.f32 %v3428_v30, %v820_v32  ;;  %1018 = vmatprep.mubr.bf16.mxu0 %v3534_v20  ;;  %1307 = vmatprep.mubr.bf16.mxu1 %v3536_v56  ;;  %4239 = vst [vmem:[#allocation139_spill] sm:$0xff] %v3550_v23 }
 0x15e   :  { %v822_v52 = vpop.f32.mrf.mxu0  ;;  %v1111_v28 = vpop.f32.mrf.mxu1 }
 0x15f   :  { %v3545_v60 = vadd.f32 %v1109_v0, %v821_v6 }
 0x160   :  { %v823_v14 = vpop.f32.mrf.mxu0  ;;  %v1112_v38 = vpop.f32.mrf.mxu1 }
 0x161   :  { %v824_v58 = vadd.f32 %v3428_v30, %v823_v14 }
 0x162   :  { %v825_v32 = vpop.f32.mrf.mxu0  ;;  %v1114_v36 = vpop.f32.mrf.mxu1 }
 0x163   :  { %v3552_v8 = vadd.f32 %v1112_v38, %v824_v58 }
 0x164   :  { %v828_v52 = vpop.f32.mrf.mxu0  ;;  %1019 = vmatmul.mubr.bf16.gmra.mxu0 %v3547_v12  ;;  %v1117_v6 = vpop.f32.mrf.mxu1  ;;  %1308 = vmatmul.mubr.bf16.gmra.mxu1 %v3550_v23 }
 0x165   :  { %v829_v56 = vadd.f32 %v3428_v30, %v828_v52 }
 0x166   :  { %v830_v0 = vpop.f32.mrf.mxu0  ;;  %v1119_v40 = vpop.f32.mrf.mxu1 }
 0x167   :  { %v3557_v54 = vadd.f32 %v1117_v6, %v829_v56 }
 0x168   :  { %v831_v28 = vpop.f32.mrf.mxu0  ;;  %v1120_v18 = vpop.f32.mrf.mxu1 }
 0x169   :  { %v832_v48 = vadd.f32 %v3428_v30, %v831_v28 }
 0x16a   :  { %v833_v14 = vpop.f32.mrf.mxu0  ;;  %v1122_v36 = vpop.f32.mrf.mxu1 }
 0x16b   :  { %v3560_v58 = vadd.f32 %v1120_v18, %v832_v48 }
 0x16c   :  { %v836_v38 = vpop.f32.mrf.mxu0  ;;  %v1125_v12 = vpop.f32.mrf.mxu1 }
 0x16d   :  { %v837_v32 = vadd.f32 %v3428_v30, %v836_v38 }
 0x16e   :  { %v838_v52 = vpop.f32.mrf.mxu0  ;;  %v1127_v23 = vpop.f32.mrf.mxu1 }
 0x16f   :  { %v3563_v20 = vadd.f32 %v1125_v12, %v837_v32 }
 0x170   :  { %v839_v0 = vpop.f32.mrf.mxu0  ;;  %v1128_v6 = vpop.f32.mrf.mxu1 }
 0x171   :  { %v840_v56 = vadd.f32 %v3428_v30, %v839_v0 }
 0x172   :  { %v841_v40 = vpop.f32.mrf.mxu0  ;;  %v1130_v28 = vpop.f32.mrf.mxu1 }
 0x173   :  { %v3566_v39 = vadd.f32 %v1128_v6, %v840_v56 }
 0x174   :  { %v844_v14 = vpop.f32.mrf.mxu0  ;;  %v1133_v18 = vpop.f32.mrf.mxu1 }
 0x175   :  { %v845_v48 = vadd.f32 %v3428_v30, %v844_v14 }
 0x176   :  { %v846_v36 = vpop.f32.mrf.mxu0  ;;  %v1135_v38 = vpop.f32.mrf.mxu1 }
 0x177   :  { %v3569_v24 = vadd.f32 %v1133_v18, %v845_v48 }
 0x178   :  { %v847_v52 = vpop.f32.mrf.mxu0  ;;  %v1136_v23 = vpop.f32.mrf.mxu1 }
 0x179   :  { %v848_v12 = vadd.f32 %v3428_v30, %v847_v52 }
 0x17a   :  { %v849_v32 = vpop.f32.mrf.mxu0  ;;  %v1138_v0 = vpop.f32.mrf.mxu1 }
 0x17b   :  { %v3572_v63 = vadd.f32 %v1136_v23, %v848_v12 }
 0x17c   :  { %v852_v40 = vpop.f32.mrf.mxu0  ;;  %v1141_v6 = vpop.f32.mrf.mxu1 }
 0x17d   :  { %v853_v56 = vadd.f32 %v3428_v30, %v852_v40 }
 0x17e   :  { %v854_v28 = vpop.f32.mrf.mxu0  ;;  %v1143_v14 = vpop.f32.mrf.mxu1 }
 0x17f   :  { %v3575_v41 = vadd.f32 %v1141_v6, %v853_v56 }
 0x180   :  { %v855_v36 = vpop.f32.mrf.mxu0  ;;  %v1144_v18 = vpop.f32.mrf.mxu1 }
 0x181   :  { %v856_v48 = vadd.f32 %v3428_v30, %v855_v36 }
 0x182   :  { %v857_v38 = vpop.f32.mrf.mxu0  ;;  %v1146_v52 = vpop.f32.mrf.mxu1 }
 0x183   :  { %v3578_v29 = vadd.f32 %v1144_v18, %v856_v48 }
 0x184   :  { %v860_v32 = vpop.f32.mrf.mxu0  ;;  %v1149_v23 = vpop.f32.mrf.mxu1 }
 0x185   :  { %v861_v12 = vadd.f32 %v3428_v30, %v860_v32 }
 0x186   :  { %v862_v0 = vpop.f32.mrf.mxu0  ;;  %v1151_v40 = vpop.f32.mrf.mxu1 }
 0x187   :  { %v3581_v5 = vadd.f32 %v1149_v23, %v861_v12 }
 0x188   :  { %v3583_v28 = vpop.f32.mrf.mxu0  ;;  %v3585_v56 = vpop.f32.mrf.mxu1 }
 0x18a   :  { %v865_v6 = vpop.f32.mrf.mxu0  ;;  %v1154_v14 = vpop.f32.mrf.mxu1 }
 0x18c   :  { %v3587_v36 = vpop.f32.mrf.mxu0  ;;  %v3589_v38 = vpop.f32.mrf.mxu1 }
 0x18e   :  { %v870_v48 = vpop.f32.mrf.mxu0  ;;  %v1159_v18 = vpop.f32.mrf.mxu1 }
 0x190   :  { %v3591_v52 = vpop.f32.mrf.mxu0  ;;  %v3593_v32 = vpop.f32.mrf.mxu1 }
 0x192   :  { %v873_v0 = vpop.f32.mrf.mxu0  ;;  %v1162_v12 = vpop.f32.mrf.mxu1 }
 0x194   :  { %v876_v23 = vpop.f32.mrf.mxu0  ;;  %v3595_v40 = vpop.f32.mrf.mxu1 }
 0x196   :  { %v878_v57 = vpop.f32.mrf.mxu0  ;;  %v1167_v31 = vpop.f32.mrf.mxu1 }
 0x198   :  { %v879_v43 = vpop.f32.mrf.mxu0  ;;  %v1168_v6 = vpop.f32.mrf.mxu1 }
 0x19a   :  { %v881_v14 = vpop.f32.mrf.mxu0  ;;  %v1170_v11 = vpop.f32.mrf.mxu1 }
 0x19c   :  { %v884_v27 = vpop.f32.mrf.mxu0  ;;  %v1173_v53 = vpop.f32.mrf.mxu1 }
 0x19e   :  { %v886_v13 = vpop.f32.mrf.mxu0  ;;  %v1175_v48 = vpop.f32.mrf.mxu1 }
 0x1a0   :  { %v887_v18 = vpop.f32.mrf.mxu0  ;;  %v1176_v37 = vpop.f32.mrf.mxu1 }
 0x1a1   :  { %v888_v11 = vadd.f32 %v3428_v30, %v887_v18 }
 0x1a2   :  { %v889_v55 = vpop.f32.mrf.mxu0  ;;  %v1178_v15 = vpop.f32.mrf.mxu1 }
 0x1a4   :  { %v892_v47 = vpop.f32.mrf.mxu0  ;;  %v1181_v0 = vpop.f32.mrf.mxu1 }
 0x1a5   :  { %v893_v22 = vadd.f32 %v3428_v30, %v892_v47  ;;  %v885_v47 = vadd.f32 %v3428_v30, %v884_v27 }
 0x1a6   :  { %v894_v12 = vpop.f32.mrf.mxu0  ;;  %v1183_v59 = vpop.f32.mrf.mxu1 }
 0x1a7   :  { %v1182_v7 = vadd.f32 %v1181_v0, %v893_v22  ;;  %v1177_v59 = vadd.f32 %v1176_v37, %v888_v11  ;;  %v1174_v0 = vadd.f32 %v1173_v53, %v885_v47 }
 0x1a8   :  { %v895_v57 = vpop.f32.mrf.mxu0  ;;  %v1184_v49 = vpop.f32.mrf.mxu1 }
 0x1a9   :  { %v896_v31 = vadd.f32 %v3428_v30, %v895_v57 }
 0x1aa   :  { %v897_v14 = vpop.f32.mrf.mxu0  ;;  %v1186_v48 = vpop.f32.mrf.mxu1 }
 0x1ab   :  { %v1185_v13 = vadd.f32 %v1184_v49, %v896_v31 }
 0x1ac   :  { %v900_v61 = vpop.f32.mrf.mxu0  ;;  %v1189_v55 = vpop.f32.mrf.mxu1 }
 0x1ad   :  { %2757 = vtanh.f32 %v1185_v13  ;;  %v901_v15 = vadd.f32 %v3428_v30, %v900_v61  ;;  %v880_v61 = vadd.f32 %v3428_v30, %v879_v43 }
 0x1ae   :  { %2759 = vtanh.f32 %v3560_v58  ;;  %v902_v12 = vpop.f32.mrf.mxu0  ;;  %v1191_v14 = vpop.f32.mrf.mxu1 }
 0x1af   :  { %2761 = vtanh.f32 %v1182_v7  ;;  %v3603_v57 = vadd.f32 %v1189_v55, %v901_v15  ;;  %v1169_v13 = vadd.f32 %v1168_v6, %v880_v61 }
 0x1b0   :  { %v903_v19 = vpop.f32.mrf.mxu0  ;;  %v1192_v49 = vpop.f32.mrf.mxu1  ;;  %2763 = vtanh.f32 %v3557_v54 }
 0x1b1   :  { %v904_v22 = vadd.f32 %v3428_v30, %v903_v19  ;;  %2765 = vtanh.f32 %v1177_v59  ;;  %v877_v19 = vadd.f32 %v3428_v30, %v876_v23 }
 0x1b2   :  { %v905_v18 = vpop.f32.mrf.mxu0  ;;  %v1194_v31 = vpop.f32.mrf.mxu1  ;;  %2767 = vtanh.f32 %v3552_v8  ;;  %v872_v8 = vadd.f32 %v3428_v30, %v3591_v52  ;;  %v869_v52 = vadd.f32 %v3428_v30, %v3587_v36  ;;  %v864_v36 = vadd.f32 %v3428_v30, %v3583_v28 }
 0x1b3   :  { %v3608_v58 = vadd.f32 %v1192_v49, %v904_v22  ;;  %2769 = vtanh.f32 %v1174_v0  ;;  %v1166_v59 = vadd.f32 %v3595_v40, %v877_v19 }
 0x1b4   :  { %v908_v27 = vpop.f32.mrf.mxu0  ;;  %v1197_v37 = vpop.f32.mrf.mxu1  ;;  %2771 = vtanh.f32 %v3545_v60  ;;  %v1161_v40 = vadd.f32 %v3593_v32, %v872_v8  ;;  %v1158_v32 = vadd.f32 %v3589_v38, %v869_v52 }
 0x1b5   :  { %v909_v7 = vadd.f32 %v3428_v30, %v908_v27  ;;  %2773 = vtanh.f32 %v1169_v13 }
 0x1b6   :  { %v910_v11 = vpop.f32.mrf.mxu0  ;;  %v1199_v48 = vpop.f32.mrf.mxu1  ;;  %2775 = vtanh.f32 %v3538_v4 }
 0x1b7   :  { %v3613_v54 = vadd.f32 %v1197_v37, %v909_v7  ;;  %2777 = vtanh.f32 %v1166_v59 }
 0x1b8   :  { %v911_v43 = vpop.f32.mrf.mxu0  ;;  %v1200_v15 = vpop.f32.mrf.mxu1  ;;  %2779 = vtanh.f32 %v3527_v2 }
 0x1b9   :  { %v912_v53 = vadd.f32 %v3428_v30, %v911_v43  ;;  %2781 = vtanh.f32 %v1161_v40 }
 0x1ba   :  { %v2758_v55 = vpop.eup %2757  ;;  %v913_v12 = vpop.f32.mrf.mxu0  ;;  %2783 = vtanh.f32 %v3520_v10 }
 0x1bb   :  { %v2760_v47 = vpop.eup %2759  ;;  %v3620_v23 = vadd.f32 %v1200_v15, %v912_v53  ;;  %v1202_v6 = vpop.f32.mrf.mxu1  ;;  %2544 = vmatprep.subr.mxu0 %v2758_v55  ;;  %2785 = vtanh.f32 %v1158_v32 }
 0x1bc   :  { %v2762_v14 = vpop.eup %2761  ;;  %v916_v22 = vpop.f32.mrf.mxu0  ;;  %2545 = vmatpush3.xpose.msra.mxu0 %v2760_v47  ;;  %v1153_v47 = vadd.f32 %v3585_v56, %v864_v36  ;;  %2787 = vtanh.f32 %v3509_v26 }
 0x1bd   :  { %v917_v49 = vadd.f32 %v3428_v30, %v916_v22  ;;  %v1205_v18 = vpop.f32.mrf.mxu1  ;;  %2546 = vmatprep.subr.mxu0 %v2762_v14  ;;  %v2764_v61 = vpop.eup %2763 }
 0x1be   :  { %v918_v60 = vpop.f32.mrf.mxu0  ;;  %v2766_v27 = vpop.eup %2765  ;;  %2789 = vtanh.f32 %v1153_v47 }
 0x1bf   :  { %v3627_v0 = vadd.f32 %v1205_v18, %v917_v49  ;;  %v1207_v31 = vpop.f32.mrf.mxu1  ;;  %v2768_v19 = vpop.eup %2767  ;;  %2791 = vtanh.f32 %v3502_v62 }
 0x1c0   :  { %v919_v7 = vpop.f32.mrf.mxu0  ;;  %2547 = vmatpush3.xpose.msra.mxu0 %v2764_v61  ;;  %v2770_v43 = vpop.eup %2769  ;;  %2793 = vtanh.f32 %v3581_v5 }
 0x1c1   :  { %v920_v37 = vadd.f32 %v3428_v30, %v919_v7  ;;  %v1208_v11 = vpop.f32.mrf.mxu1  ;;  %2548 = vmatprep.subr.mxu0 %v2766_v27  ;;  %v2772_v12 = vpop.eup %2771  ;;  %2795 = vtanh.f32 %v3491_v42 }
 0x1c2   :  { %v921_v4 = vpop.f32.mrf.mxu0  ;;  %v2774_v8 = vpop.eup %2773  ;;  %2797 = vtanh.f32 %v3578_v29 }
 0x1c3   :  { %v3634_v13 = vadd.f32 %v1208_v11, %v920_v37  ;;  %v1210_v48 = vpop.f32.mrf.mxu1  ;;  %v2776_v49 = vpop.eup %2775  ;;  %2799 = vtanh.f32 %v3484_v50 }
 0x1c4   :  { %v924_v53 = vpop.f32.mrf.mxu0  ;;  %2549 = vmatpush3.xpose.msra.mxu0 %v2768_v19  ;;  %v2778_v56 = vpop.eup %2777  ;;  %2801 = vtanh.f32 %v3575_v41 }
 0x1c5   :  { %v925_v15 = vadd.f32 %v3428_v30, %v924_v53  ;;  %v1213_v55 = vpop.f32.mrf.mxu1  ;;  %2550 = vmatprep.subr.mxu0 %v2770_v43  ;;  %v2780_v31 = vpop.eup %2779  ;;  %2803 = vtanh.f32 %v3473_v34 }
 0x1c6   :  { %v926_v2 = vpop.f32.mrf.mxu0  ;;  %v2782_v7 = vpop.eup %2781  ;;  %2805 = vtanh.f32 %v3572_v63 }
 0x1c7   :  { %v3639_v28 = vadd.f32 %v1213_v55, %v925_v15  ;;  %v1215_v38 = vpop.f32.mrf.mxu1  ;;  %v2784_v36 = vpop.eup %2783  ;;  %2807 = vtanh.f32 %v3466_v25 }
 0x1c8   :  { %v927_v59 = vpop.f32.mrf.mxu0  ;;  %2551 = vmatpush3.xpose.msra.mxu0 %v2772_v12  ;;  %v2786_v5 = vpop.eup %2785  ;;  %2809 = vtanh.f32 %v3569_v24 }
 0x1c9   :  { %v928_v6 = vadd.f32 %v3428_v30, %v927_v59  ;;  %v1216_v14 = vpop.f32.mrf.mxu1  ;;  %2552 = vmatprep.subr.mxu0 %v2774_v8  ;;  %v2788_v55 = vpop.eup %2787  ;;  %2811 = vtanh.f32 %v3455_v46 }
 0x1ca   :  { %v929_v22 = vpop.f32.mrf.mxu0  ;;  %2813 = vtanh.f32 %v3566_v39 }
 0x1cb   :  { %v3643_v10 = vadd.f32 %v1216_v14, %v928_v6  ;;  %v1218_v18 = vpop.f32.mrf.mxu1  ;;  %v2790_v29 = vpop.eup %2789  ;;  %2815 = vtanh.f32 %v3448_v16 }
 0x1cc   :  { %v932_v60 = vpop.f32.mrf.mxu0  ;;  %2553 = vmatpush3.xpose.msra.mxu0 %v2776_v49  ;;  %v2792_v59 = vpop.eup %2791  ;;  %2817 = vtanh.f32 %v3563_v20 }
 0x1cd   :  { %v933_v61 = vadd.f32 %v3428_v30, %v932_v60  ;;  %v1221_v52 = vpop.f32.mrf.mxu1  ;;  %2554 = vmatprep.subr.mxu0 %v2778_v56  ;;  %v2794_v41 = vpop.eup %2793  ;;  %2819 = vtanh.f32 %v3437_v44 }
 0x1ce   :  { %v934_v40 = vpop.f32.mrf.mxu0  ;;  %v2796_v56 = vpop.eup %2795 }
 0x1cf   :  { %v3648_v26 = vadd.f32 %v1221_v52, %v933_v61  ;;  %v1223_v27 = vpop.f32.mrf.mxu1  ;;  %v2798_v63 = vpop.eup %2797 }
 0x1d0   :  { %v935_v37 = vpop.f32.mrf.mxu0  ;;  %2555 = vmatpush3.xpose.msra.mxu0 %v2780_v31  ;;  %v2800_v27 = vpop.eup %2799 }
 0x1d1   :  { %v936_v11 = vadd.f32 %v3428_v30, %v935_v37  ;;  %v1224_v4 = vpop.f32.mrf.mxu1  ;;  %2556 = vmatprep.subr.mxu0 %v2782_v7  ;;  %v2802_v24 = vpop.eup %2801 }
 0x1d2   :  { %v937_v19 = vpop.f32.mrf.mxu0 }
 0x1d3   :  { %v3653_v62 = vadd.f32 %v1224_v4, %v936_v11  ;;  %v1226_v32 = vpop.f32.mrf.mxu1 }
 0x1d4   :  { %v940_v48 = vpop.f32.mrf.mxu0  ;;  %2557 = vmatpush3.xpose.msra.mxu0 %v2784_v36  ;;  %v2804_v36 = vpop.eup %2803 }
 0x1d5   :  { %v941_v43 = vadd.f32 %v3428_v30, %v940_v48  ;;  %v1229_v53 = vpop.f32.mrf.mxu1  ;;  %2558 = vmatprep.subr.mxu0 %v2786_v5  ;;  %v2806_v39 = vpop.eup %2805 }
 0x1d6   :  { %v942_v15 = vpop.f32.mrf.mxu0 }
 0x1d7   :  { %v3658_v42 = vadd.f32 %v1229_v53, %v941_v43  ;;  %v1231_v2 = vpop.f32.mrf.mxu1  ;;  %v2808_v15 = vpop.eup %2807 }
 0x1d8   :  { %v943_v12 = vpop.f32.mrf.mxu0  ;;  %2559 = vmatpush3.xpose.msra.mxu0 %v2788_v55  ;;  %v2810_v2 = vpop.eup %2809 }
 0x1d9   :  { %v944_v47 = vadd.f32 %v3428_v30, %v943_v12  ;;  %v1232_v38 = vpop.f32.mrf.mxu1  ;;  %2560 = vmatprep.subr.mxu0 %v2790_v29 }
 0x1da   :  { %v945_v8 = vpop.f32.mrf.mxu0 }
 0x1db   :  { %v3663_v50 = vadd.f32 %v1232_v38, %v944_v47  ;;  %v1234_v6 = vpop.f32.mrf.mxu1  ;;  %v2812_v38 = vpop.eup %2811 }
 0x1dc   :  { %v948_v14 = vpop.f32.mrf.mxu0  ;;  %2561 = vmatpush3.xpose.msra.mxu0 %v2792_v59  ;;  %v2814_v6 = vpop.eup %2813 }
 0x1dd   :  { %v949_v22 = vadd.f32 %v3428_v30, %v948_v14  ;;  %v1237_v49 = vpop.f32.mrf.mxu1  ;;  %2562 = vmatprep.subr.mxu0 %v2794_v41 }
 0x1de   :  { %v950_v18 = vpop.f32.mrf.mxu0 }
 0x1df   :  { %v3668_v34 = vadd.f32 %v1237_v49, %v949_v22  ;;  %v1239_v60 = vpop.f32.mrf.mxu1  ;;  %v2816_v49 = vpop.eup %2815 }
 0x1e0   :  { %v951_v61 = vpop.f32.mrf.mxu0  ;;  %2563 = vmatpush3.xpose.msra.mxu0 %v2796_v56  ;;  %v2818_v60 = vpop.eup %2817 }
 0x1e1   :  { %v952_v52 = vadd.f32 %v3428_v30, %v951_v61  ;;  %v1240_v40 = vpop.f32.mrf.mxu1  ;;  %2564 = vmatprep.subr.mxu0 %v2798_v63 }
 0x1e2   :  { %v953_v31 = vpop.f32.mrf.mxu0 }
 0x1e3   :  { %v3673_v25 = vadd.f32 %v1240_v40, %v952_v52  ;;  %v1242_v7 = vpop.f32.mrf.mxu1  ;;  %v2820_v31 = vpop.eup %2819 }
 0x1e4   :  { %v956_v37 = vpop.f32.mrf.mxu0  ;;  %2565 = vmatpush3.xpose.msra.mxu0 %v2800_v27 }
 0x1e5   :  { %v957_v11 = vadd.f32 %v3428_v30, %v956_v37  ;;  %v1245_v4 = vpop.f32.mrf.mxu1  ;;  %2566 = vmatprep.subr.mxu0 %v2802_v24  ;;  %v3696_v37 = vld [vmem:[%s3995_s4] sm:$0x1] }
 0x1e6   :  { %v958_v19 = vpop.f32.mrf.mxu0  ;;  %2576 = vmatprep.mubr.f32.mxu0 %v3696_v37  ;;  %2610 = vmatprep.mubr.f32.mxu1 %v3696_v37 }
 0x1e7   :  { %v3678_v46 = vadd.f32 %v1245_v4, %v957_v11  ;;  %v1247_v32 = vpop.f32.mrf.mxu1  ;;  %v3701_v11 = vld [vmem:[%s3994_s3] ss:$0 sm:$0xff] }
 0x1e8   :  { %v959_v5 = vpop.f32.mrf.mxu0  ;;  %2567 = vmatpush3.xpose.msra.mxu0 %v2804_v36 }
 0x1e9   :  { %v960_v48 = vadd.f32 %v3428_v30, %v959_v5  ;;  %v1248_v43 = vpop.f32.mrf.mxu1  ;;  %2568 = vmatprep.subr.mxu0 %v2806_v39 }
 0x1ea   :  { %v961_v53 = vpop.f32.mrf.mxu0 }
 0x1eb   :  { %v3682_v55 = vadd.f32 %v1248_v43, %v960_v48  ;;  %v1250_v16 = vpop.f32.mrf.mxu1 }
 0x1ec   :  { %v964_v29 = vpop.f32.mrf.mxu0  ;;  %2569 = vmatpush3.xpose.msra.mxu0 %v2808_v15 }
 0x1ed   :  { %v965_v20 = vadd.f32 %v3428_v30, %v964_v29  ;;  %v1253_v12 = vpop.f32.mrf.mxu1  ;;  %2570 = vmatprep.subr.mxu0 %v2810_v2 }
 0x1ee   :  { %v966_v47 = vpop.f32.mrf.mxu0 }
 0x1ef   :  { %v3685_v8 = vadd.f32 %v1253_v12, %v965_v20  ;;  %v1255_v59 = vpop.f32.mrf.mxu1 }
 0x1f0   :  { %v967_v41 = vpop.f32.mrf.mxu0  ;;  %2571 = vmatpush3.xpose.msra.mxu0 %v2812_v38 }
 0x1f1   :  { %v968_v44 = vadd.f32 %v3428_v30, %v967_v41  ;;  %v1256_v14 = vpop.f32.mrf.mxu1  ;;  %2572 = vmatprep.subr.mxu0 %v2814_v6 }
 0x1f2   :  { %v969_v22 = vpop.f32.mrf.mxu0 }
 0x1f3   :  { %v3688_v18 = vadd.f32 %v1256_v14, %v968_v44  ;;  %v1258_v56 = vpop.f32.mrf.mxu1  ;;  %v4240_v14 = vld [vmem:[#allocation34_spill] sm:$0xff] }
 0x1f4   :  { %v972_v63 = vpop.f32.mrf.mxu0  ;;  %2573 = vmatpush3.xpose.msra.mxu0 %v2816_v49 }
 0x1f5   :  { %v973_v61 = vadd.f32 %v3428_v30, %v972_v63  ;;  %v1261_v52 = vpop.f32.mrf.mxu1  ;;  %2574 = vmatprep.subr.mxu0 %v2818_v60  ;;  %v4242_v63 = vld [vmem:[#allocation31_spill] sm:$0xff] }
 0x1f6   :  { %v974_v40 = vpop.f32.mrf.mxu0 }
 0x1f7   :  { %v3691_v27 = vadd.f32 %v1261_v52, %v973_v61  ;;  %v1263_v7 = vpop.f32.mrf.mxu1  ;;  %v4243_v61 = vld [vmem:[#allocation25_spill] sm:$0xff] }
 0x1f8   :  { %v975_v24 = vpop.f32.mrf.mxu0  ;;  %2575 = vmatpush3.xpose.msra.mxu0 %v2820_v31  ;;  %v4244_v31 = vld [vmem:[#allocation27_spill] sm:$0xff] }
 0x1f9   :  { %v976_v30 = vadd.f32 %v3701_v11, %v975_v24  ;;  %v1264_v4 = vpop.f32.mrf.mxu1  ;;  %1645 = vmatprep.subr.bf16.mxu0 %v3207_v3  ;;  %v4245_v24 = vld [vmem:[#allocation21_spill] sm:$0xff] }
 0x1fa   :  { %v977_v19 = vpop.f32.mrf.mxu0 }
 0x1fb   :  { %v3707_v36 = vadd.f32 %v1264_v4, %v976_v30  ;;  %v1266_v32 = vpop.f32.mrf.mxu1  ;;  %2577 = vmatmul.mubr.f32.vlgmr.msra.gmra.mxu0 %v3696_v37 }
 0x1fc   :  { %v980_v39 = vpop.f32.mrf.mxu0  ;;  %1646 = vmatpush1.bf16.msra.mxu0 %v3215_v17  ;;  %v4246_v32 = vld [vmem:[#allocation23_spill] sm:$0xff] }
 0x1fd   :  { %v981_v5 = vadd.f32 %v3701_v11, %v980_v39  ;;  %v1269_v48 = vpop.f32.mrf.mxu1  ;;  %1647 = vmatprep.subr.bf16.mxu0 %v3195_v51 }
 0x1fe   :  { %v982_v43 = vpop.f32.mrf.mxu0 }
 0x1ff   :  { %v3713_v53 = vadd.f32 %v1269_v48, %v981_v5  ;;  %v1271_v15 = vpop.f32.mrf.mxu1  ;;  %v4247_v5 = vld [vmem:[#allocation72_spill] sm:$0xff] }
 0x200   :  { %v983_v16 = vpop.f32.mrf.mxu0  ;;  %1648 = vmatpush1.bf16.msra.mxu0 %v3203_v1 }
 0x201   :  { %v984_v3 = vadd.f32 %v3701_v11, %v983_v16  ;;  %v1272_v2 = vpop.f32.mrf.mxu1  ;;  %1649 = vmatprep.subr.bf16.mxu0 %v3183_v35  ;;  %v4248_v16 = vld [vmem:[#allocation74_spill] sm:$0xff] }
 0x202   :  { %v985_v29 = vpop.f32.mrf.mxu0 }
 0x203   :  { %v3718_v20 = vadd.f32 %v1272_v2, %v984_v3  ;;  %v1274_v17 = vpop.f32.mrf.mxu1  ;;  %v4249_v2 = vld [vmem:[#allocation68_spill] sm:$0xff] }
 0x204   :  { %v988_v12 = vpop.f32.mrf.mxu0  ;;  %1650 = vmatpush1.bf16.msra.mxu0 %v3191_v45 }
 0x205   :  { %v989_v51 = vadd.f32 %v3701_v11, %v988_v12  ;;  %v1277_v47 = vpop.f32.mrf.mxu1  ;;  %1651 = vmatprep.subr.bf16.mxu0 %v3171_v21  ;;  %v4241_v21 = vld [vmem:[#allocation29_spill] sm:$0xff] }
 0x206   :  { %v990_v38 = vpop.f32.mrf.mxu0 }
 0x207   :  { %v3723_v59 = vadd.f32 %v1277_v47, %v989_v51  ;;  %v1279_v1 = vpop.f32.mrf.mxu1  ;;  %v4250_v51 = vld [vmem:[#allocation70_spill] sm:$0xff]  ;;  %v4251_v38 = vld [vmem:[#allocation64_spill] sm:$0xff] }
 0x208   :  { %v3725_v6 = vpop.f32.mrf.mxu0  ;;  %1652 = vmatpush1.bf16.msra.mxu0 %v3179_v33 }
 0x209   :  { %v3728_v35 = vpop.f32.mrf.mxu1  ;;  %1653 = vmatprep.subr.bf16.mxu0 %v3159_v9 }
 0x20a   :  { %v993_v41 = vpop.f32.mrf.mxu0 }
 0x20b   :  { %v1282_v44 = vpop.f32.mrf.mxu1 }
 0x20c   :  { %v3731_v45 = vpop.f32.mrf.mxu0  ;;  %1654 = vmatpush1.bf16.msra.mxu0 %v4240_v14  ;;  %v4252_v14 = vld [vmem:[#allocation66_spill] sm:$0xff] }
 0x20d   :  { %v3734_v22 = vpop.f32.mrf.mxu1  ;;  %1655 = vmatprep.subr.bf16.mxu0 %v4241_v21 }
 0x20e   :  { %v998_v49 = vpop.f32.mrf.mxu0 }
 0x20f   :  { %v1287_v56 = vpop.f32.mrf.mxu1  ;;  %v4253_v49 = vld [vmem:[#allocation60_spill] sm:$0xff] }
 0x210   :  { %v3737_v60 = vpop.f32.mrf.mxu0  ;;  %1656 = vmatpush1.bf16.msra.mxu0 %v4242_v63 }
 0x211   :  { %v3740_v33 = vpop.f32.mrf.mxu1  ;;  %1657 = vmatprep.subr.bf16.mxu0 %v4243_v61 }
 0x212   :  { %v1001_v9 = vpop.f32.mrf.mxu0 }
 0x213   :  { %v1290_v52 = vpop.f32.mrf.mxu1 }
 0x214   :  { %v1004_v40 = vpop.f32.mrf.mxu0  ;;  %1658 = vmatpush1.bf16.msra.mxu0 %v4244_v31  ;;  %v4254_v52 = vld [vmem:[#allocation62_spill] sm:$0xff] }
 0x215   :  { %v3744_v7 = vpop.f32.mrf.mxu1  ;;  %1659 = vmatprep.subr.bf16.mxu0 %v4245_v24 }
 0x216   :  { %v1006_v30 = vpop.f32.mrf.mxu0 }
 0x217   :  { %v1295_v4 = vpop.f32.mrf.mxu1  ;;  %v4255_v30 = vld [vmem:[#allocation56_spill] sm:$0xff] }
 0x218   :  { %v1007_v19 = vpop.f32.mrf.mxu0  ;;  %1660 = vmatpush1.bf16.msra.mxu0 %v4246_v32 }
 0x219   :  { %v1296_v39 = vpop.f32.mrf.mxu1  ;;  %1661 = vmatprep.subr.bf16.mxu0 %v4247_v5 }
 0x21a   :  { %v1009_v48 = vpop.f32.mrf.mxu0 }
 0x21b   :  { %v1298_v43 = vpop.f32.mrf.mxu1 }
 0x21c   :  { %v1012_v15 = vpop.f32.mrf.mxu0  ;;  %1662 = vmatpush2.bf16.msra.mxu0 %v4248_v16  ;;  %v4256_v16 = vld [vmem:[#allocation58_spill] sm:$0xff] }
 0x21d   :  { %v1301_v3 = vpop.f32.mrf.mxu1  ;;  %1663 = vmatprep.subr.bf16.mxu0 %v4249_v2  ;;  %v4257_v2 = vld [vmem:[#allocation52_spill] sm:$0xff] }
 0x21e   :  { %v1014_v29 = vpop.f32.mrf.mxu0 }
 0x21f   :  { %v1303_v17 = vpop.f32.mrf.mxu1  ;;  %v1013_v29 = vadd.f32 %v3701_v11, %v1012_v15 }
 0x220   :  { %v1015_v12 = vpop.f32.mrf.mxu0  ;;  %1664 = vmatpush2.bf16.msra.mxu0 %v4250_v51  ;;  %v4258_v51 = vld [vmem:[#allocation54_spill] sm:$0xff] }
 0x221   :  { %v1304_v47 = vpop.f32.mrf.mxu1  ;;  %1665 = vmatprep.subr.bf16.mxu0 %v4251_v38  ;;  %v1016_v32 = vadd.f32 %v3701_v11, %v1015_v12  ;;  %v4259_v38 = vld [vmem:[#allocation48_spill] sm:$0xff]  ;;  %v1008_v12 = vadd.f32 %v3701_v11, %v1007_v19  ;;  %v1000_v19 = vadd.f32 %v3701_v11, %v3737_v60 }
 0x222   :  { %v1017_v1 = vpop.f32.mrf.mxu0 }
 0x223   :  { %v1306_v41 = vpop.f32.mrf.mxu1  ;;  %v1305_v17 = vadd.f32 %v1304_v47, %v1016_v32  ;;  %v1302_v1 = vadd.f32 %v1301_v3, %v1013_v29  ;;  %v1297_v15 = vadd.f32 %v1296_v39, %v1008_v12  ;;  %v4262_v47 = vld [vmem:[#allocation46_spill] sm:$0xff]  ;;  %v997_v39 = vadd.f32 %v3701_v11, %v3731_v45  ;;  %v4270_v32 = vld [vmem:[#allocation92_spill] sm:$0xff] }
 0x224   :  { %v1020_v44 = vpop.f32.mrf.mxu0  ;;  %1666 = vmatpush2.bf16.msra.mxu0 %v4252_v14  ;;  %v4260_v41 = vld [vmem:[#allocation50_spill] sm:$0xff] }
 0x225   :  { %v1309_v21 = vpop.f32.mrf.mxu1  ;;  %1667 = vmatprep.subr.bf16.mxu0 %v4253_v49  ;;  %v1021_v63 = vadd.f32 %v3701_v11, %v1020_v44  ;;  %v4261_v44 = vld [vmem:[#allocation44_spill] sm:$0xff]  ;;  %v4263_v14 = vld [vmem:[#allocation42_spill] sm:$0xff]  ;;  %v1289_v49 = vadd.f32 %v3740_v33, %v1000_v19 }
 0x226   :  { %v1022_v56 = vpop.f32.mrf.mxu0  ;;  %v4277_v29 = vld [vmem:[#allocation82_spill] sm:$0xff] }
 0x227   :  { %v1311_v61 = vpop.f32.mrf.mxu1  ;;  %v1310_v5 = vadd.f32 %v1309_v21, %v1021_v63  ;;  %v1286_v56 = vadd.f32 %v3734_v22, %v997_v39  ;;  %v4281_v12 = vld [vmem:[#allocation138_spill] sm:$0xff] }
 0x228   :  { %v1023_v9 = vpop.f32.mrf.mxu0  ;;  %1668 = vmatpush2.bf16.msra.mxu0 %v4254_v52  ;;  %v4291_v19 = vld [vmem:[#allocation118_spill] sm:$0xff] }
 0x229   :  { %v1024_v31 = vadd.f32 %v3701_v11, %v1023_v9  ;;  %v1312_v24 = vpop.f32.mrf.mxu1  ;;  %1669 = vmatprep.subr.bf16.mxu0 %v4255_v30  ;;  %v4268_v30 = vld [vmem:[#allocation96_spill] sm:$0xff]  ;;  %v4295_v39 = vld [vmem:[#allocation110_spill] sm:$0xff] }
 0x22a   :  { %v1025_v4 = vpop.f32.mrf.mxu0 }
 0x22b   :  { %v1313_v48 = vadd.f32 %v1312_v24, %v1024_v31  ;;  %v1314_v43 = vpop.f32.mrf.mxu1  ;;  %v4265_v31 = vld [vmem:[#allocation106_spill] sm:$0xff] }
 0x22c   :  { %1670 = vmatpush2.bf16.msra.mxu0 %v4256_v16  ;;  %v4267_v24 = vld [vmem:[#allocation102_spill] sm:$0xff]  ;;  %v4274_v16 = vld [vmem:[#allocation84_spill] sm:$0xff] }
 0x22d   :  { %2821 = vtanh.f32 %v1313_v48  ;;  %1671 = vmatprep.subr.bf16.mxu0 %v4257_v2  ;;  %v4269_v4 = vld [vmem:[#allocation98_spill] sm:$0xff]  ;;  %v4272_v48 = vld [vmem:[#allocation88_spill] sm:$0xff] }
 0x22e   :  { %2823 = vtanh.f32 %v3682_v55  ;;  %v1005_v55 = vadd.f32 %v3701_v11, %v1004_v40  ;;  %v4273_v43 = vld [vmem:[#allocation90_spill] sm:$0xff]  ;;  %v4276_v2 = vld [vmem:[#allocation80_spill] sm:$0xff] }
 0x22f   :  { %2825 = vtanh.f32 %v1310_v5  ;;  %v4271_v5 = vld [vmem:[#allocation94_spill] sm:$0xff] }
 0x230   :  { %1672 = vmatpush2.bf16.msra.mxu0 %v4258_v51  ;;  %2827 = vtanh.f32 %v3678_v46  ;;  %v1294_v3 = vadd.f32 %v3744_v7, %v1005_v55  ;;  %v992_v7 = vadd.f32 %v3701_v11, %v3725_v6  ;;  %v4279_v51 = vld [vmem:[#allocation78_spill] sm:$0xff] }
 0x231   :  { %1673 = vmatprep.subr.bf16.mxu0 %v4259_v38  ;;  %2829 = vtanh.f32 %v1305_v17  ;;  %v4278_v17 = vld [vmem:[#allocation76_spill] sm:$0xff]  ;;  %v4285_v55 = vld [vmem:[#allocation130_spill] sm:$0xff] }
 0x232   :  { %2831 = vtanh.f32 %v3673_v25  ;;  %v1281_v33 = vadd.f32 %v3728_v35, %v992_v7  ;;  %v4280_v38 = vld [vmem:[#allocation136_spill] sm:$0xff] }
 0x233   :  { %2833 = vtanh.f32 %v1302_v1  ;;  %v4282_v1 = vld [vmem:[#allocation132_spill] sm:$0xff] }
 0x234   :  { %1674 = vmatpush2.bf16.msra.mxu0 %v4260_v41  ;;  %2835 = vtanh.f32 %v3668_v34  ;;  %v4283_v41 = vld [vmem:[#allocation134_spill] sm:$0xff] }
 0x235   :  { %1675 = vmatprep.subr.bf16.mxu0 %v4261_v44  ;;  %2837 = vtanh.f32 %v1297_v15  ;;  %v4284_v44 = vld [vmem:[#allocation128_spill] sm:$0xff] }
 0x236   :  { %2839 = vtanh.f32 %v3663_v50  ;;  %v4286_v15 = vld [vmem:[#allocation124_spill] sm:$0xff] }
 0x237   :  { %2841 = vtanh.f32 %v1294_v3  ;;  %v4292_v3 = vld [vmem:[#allocation112_spill] sm:$0xff] }
 0x238   :  { %1676 = vmatpush2.bf16.msra.mxu0 %v4262_v47  ;;  %2843 = vtanh.f32 %v3658_v42  ;;  %v4287_v47 = vld [vmem:[#allocation126_spill] sm:$0xff] }
 0x239   :  { %1727 = vmatprep.subr.bf16.mxu0 %v4263_v14  ;;  %2845 = vtanh.f32 %v1289_v49  ;;  %v4288_v14 = vld [vmem:[#allocation120_spill] sm:$0xff]  ;;  %v4296_v49 = vld [vmem:[#allocation105_spill] sm:$0xff] }
 0x23a   :  { %v2822_v21 = vpop.eup %2821  ;;  %2847 = vtanh.f32 %v3653_v62 }
 0x23b   :  { %v2824_v46 = vpop.eup %2823  ;;  %2578 = vmatprep.subr.mxu1 %v2822_v21  ;;  %2849 = vtanh.f32 %v1286_v56  ;;  %v4289_v21 = vld [vmem:[#allocation122_spill] sm:$0xff] }
 0x23c   :  { %v2826_v25 = vpop.eup %2825  ;;  %2579 = vmatpush3.xpose.msra.mxu1 %v2824_v46  ;;  %2851 = vtanh.f32 %v3648_v26  ;;  %v4290_v46 = vld [vmem:[#allocation116_spill] sm:$0xff] }
 0x23d   :  { %2580 = vmatprep.subr.mxu1 %v2826_v25  ;;  %v2828_v40 = vpop.eup %2827  ;;  %2853 = vtanh.f32 %v1281_v33  ;;  %v4293_v25 = vld [vmem:[#allocation114_spill] sm:$0xff] }
 0x23e   :  { %v2830_v34 = vpop.eup %2829  ;;  %2855 = vtanh.f32 %v3643_v10 }
 0x23f   :  { %v2832_v60 = vpop.eup %2831  ;;  %2857 = vtanh.f32 %v3723_v59 }
 0x240   :  { %2581 = vmatpush3.xpose.msra.mxu1 %v2828_v40  ;;  %v2834_v50 = vpop.eup %2833  ;;  %2859 = vtanh.f32 %v3639_v28  ;;  %v4294_v40 = vld [vmem:[#allocation108_spill] sm:$0xff] }
 0x241   :  { %2582 = vmatprep.subr.mxu1 %v2830_v34  ;;  %v2836_v45 = vpop.eup %2835  ;;  %2861 = vtanh.f32 %v3718_v20  ;;  %v3022_v34 = vmov -1e+30  }
 0x242   :  { %v2838_v63 = vpop.eup %2837  ;;  %2863 = vtanh.f32 %v3634_v13  ;;  %84 = vst.msk [vmem:[#allocation2] sm:$0x1] %vm83_vm0, %v3022_v34  ;;  %v4299_v34 = vld [vmem:[#allocation43_spill] sm:$0xff] }
 0x243   :  { %v2840_v42 = vpop.eup %2839  ;;  %2865 = vtanh.f32 %v3713_v53 }
 0x244   :  { %2583 = vmatpush3.xpose.msra.mxu1 %v2832_v60  ;;  %v2842_v11 = vpop.eup %2841  ;;  %2867 = vtanh.f32 %v3627_v0  ;;  %v86_v60 = vlaneseq }
 0x245   :  { %2584 = vmatprep.subr.mxu1 %v2834_v50  ;;  %v2844_v6 = vpop.eup %2843  ;;  %2869 = vtanh.f32 %v3707_v36 }
 0x246   :  { %v2846_v62 = vpop.eup %2845  ;;  %2871 = vtanh.f32 %v3620_v23  ;;  %v3839_v7 = vand.u32 127, %v86_v60  ;;  %vm3859_vm6 = vcmp.lt.s32.totalorder %v86_v60, 512 }
 0x247   :  { %v2848_v35 = vpop.eup %2847  ;;  %2873 = vtanh.f32 %v3691_v27 }
 0x248   :  { %2585 = vmatpush3.xpose.msra.mxu1 %v2836_v45  ;;  %v2850_v22 = vpop.eup %2849  ;;  %2875 = vtanh.f32 %v3613_v54  ;;  %v1526_v50 = vadd.s32 128, %v3839_v7  ;;  %v1534_v45 = vstv %s3991_s0  ;;  %v1527_v33 = vadd.s32 256, %v3839_v7 }
 0x249   :  { %2586 = vmatprep.subr.mxu1 %v2838_v63  ;;  %v2852_v26 = vpop.eup %2851  ;;  %2877 = vtanh.f32 %v3688_v18  ;;  %v3023_v63 = vmov 1966171168   ;;  %vm1535_vm1 = vcmp.lt.s32.totalorder %v3839_v7, %v1534_v45 }
 0x24a   :  { %v2854_v10 = vpop.eup %2853  ;;  %2879 = vtanh.f32 %v3608_v58  ;;  %vm1536_vm2 = vcmp.lt.s32.totalorder %v1526_v50, %v1534_v45  ;;  %vm1537_vm3 = vcmp.lt.s32.totalorder %v1527_v33, %v1534_v45  ;;  %v4300_v50 = vld [vmem:[#allocation107_spill] sm:$0xff]  ;;  %v4301_v33 = vld [vmem:[#allocation40_spill] sm:$0xff] }
 0x24b   :  { %v2856_v59 = vpop.eup %2855  ;;  %2881 = vtanh.f32 %v3685_v8  ;;  %v4264_v8 = vld [vmem:[#allocation104_spill] sm:$0xff] }
 0x24c   :  { %2587 = vmatpush3.xpose.msra.mxu1 %v2840_v42  ;;  %v2858_v28 = vpop.eup %2857  ;;  %2883 = vtanh.f32 %v3603_v57  ;;  %v4266_v57 = vld [vmem:[#allocation100_spill] sm:$0xff]  ;;  %v1550_v42 = vunpack.c.l.s4 %v3023_v63  ;;  %v4302_v63 = vld [vmem:[#allocation101_spill] sm:$0xff] }
 0x24d   :  { %2588 = vmatprep.subr.mxu1 %v2842_v11  ;;  %v2860_v20 = vpop.eup %2859 }
 0x24e   :  { %v2862_v13 = vpop.eup %2861 }
 0x24f   :  { %v2864_v53 = vpop.eup %2863 }
 0x250   :  { %2589 = vmatpush3.xpose.msra.mxu1 %v2844_v6  ;;  %v2866_v0 = vpop.eup %2865  ;;  %v1528_v6 = vadd.s32 384, %v3839_v7 }
 0x251   :  { %2590 = vmatprep.subr.mxu1 %v2846_v62  ;;  %v2868_v36 = vpop.eup %2867  ;;  %v3848_v62 = vshrl.u32 %v86_v60, 7 }
 0x252   :  { %v2870_v23 = vpop.eup %2869  ;;  %vm1538_vm5 = vcmp.lt.s32.totalorder %v1528_v6, %v1534_v45  ;;  %v4305_v6 = vld [vmem:[#allocation103_spill] sm:$0xff] }
 0x253   :  { %v2872_v27 = vpop.eup %2871 }
 0x254   :  { %2591 = vmatpush3.xpose.msra.mxu1 %v2848_v35  ;;  %v2874_v61 = vpop.eup %2873  ;;  %v1551_v35 = vunpack.c.0.s8 %v1550_v42  ;;  %v4303_v42 = vld [vmem:[#allocation41_spill] sm:$0xff] }
 0x255   :  { %2592 = vmatprep.subr.mxu1 %v2850_v22  ;;  %v2876_v54 = vpop.eup %2875 }
 0x256   :  { %v2878_v9 = vpop.eup %2877 }
 0x257   :  { %v2880_v18 = vpop.eup %2879 }
 0x258   :  { %2593 = vmatpush3.xpose.msra.mxu1 %v2852_v26  ;;  %v2882_v52 = vpop.eup %2881 }
 0x259   :  { %2594 = vmatprep.subr.mxu1 %v2854_v10  ;;  %v2884_v58 = vpop.eup %2883 }
 0x25c   :  { %2595 = vmatpush3.xpose.msra.mxu1 %v2856_v59 }
 0x25d   :  { %2596 = vmatprep.subr.mxu1 %v2858_v28 }
 0x260   :  { %2597 = vmatpush3.xpose.msra.mxu1 %v2860_v20 }
 0x261   :  { %2598 = vmatprep.subr.mxu1 %v2862_v13  ;;  %v3852_v13 = vsub.s32 %v1551_v35, %v3848_v62  ;;  %v4306_v35 = vld [vmem:[#allocation97_spill] sm:$0xff] }
 0x264   :  { %2599 = vmatpush3.xpose.msra.mxu1 %v2864_v53 }
 0x265   :  { %2600 = vmatprep.subr.mxu1 %v2866_v0 }
 0x268   :  { %2601 = vmatpush3.xpose.msra.mxu1 %v2868_v36 }
 0x269   :  { %2602 = vmatprep.subr.mxu1 %v2870_v23 }
 0x26c   :  { %2603 = vmatpush3.xpose.msra.mxu1 %v2872_v27 }
 0x26d   :  { %2604 = vmatprep.subr.mxu1 %v2874_v61 }
 0x270   :  { %2605 = vmatpush3.xpose.msra.mxu1 %v2876_v54 }
 0x271   :  { %2606 = vmatprep.subr.mxu1 %v2878_v9 }
 0x274   :  { %2607 = vmatpush3.xpose.msra.mxu1 %v2880_v18 }
 0x275   :  { %2608 = vmatprep.subr.mxu1 %v2882_v52 }
 0x278   :  { %2609 = vmatpush3.xpose.msra.mxu1 %v2884_v58 }
 0x279   :  { %1686 = vmatprep.subr.bf16.mxu1 %v4264_v8 }
 0x27b   :  { %2611 = vmatmul.mubr.f32.vlgmr.msra.gmra.mxu1 %v3696_v37  ;;  %v4275_v37 = vld [vmem:[#allocation86_spill] sm:$0xff] }
 0x27c   :  { %1687 = vmatpush1.bf16.msra.mxu1 %v4265_v31 }
 0x27d   :  { %1688 = vmatprep.subr.bf16.mxu1 %v4266_v57 }
 0x280   :  { %1689 = vmatpush1.bf16.msra.mxu1 %v4267_v24  ;;  %v3024_v24 = vmov 0.0  }
 0x281   :  { %1690 = vmatprep.subr.bf16.mxu1 %v4268_v30  ;;  %85 = vst.msk [vmem:[#allocation3] sm:$0x1] %vm83_vm0, %v3024_v24  ;;  %v1580_v30 = vld [vmem:[#allocation2] sm:$0x1] }
 0x282   :  { %90 = vst.msk [vmem:[#allocation4] sm:$0xf] %vm3859_vm6, %v3024_v24 }
 0x284   :  { %1691 = vmatpush1.bf16.msra.mxu1 %v4269_v4 }
 0x285   :  { %1692 = vmatprep.subr.bf16.mxu1 %v4270_v32 }
 0x288   :  { %1693 = vmatpush1.bf16.msra.mxu1 %v4271_v5 }
 0x289   :  { %1694 = vmatprep.subr.bf16.mxu1 %v4272_v48 }
 0x28c   :  { %1695 = vmatpush1.bf16.msra.mxu1 %v4273_v43  ;;  %v3873_v43 = vsub.s32 0, %v3848_v62 }
 0x28d   :  { %1696 = vmatprep.subr.bf16.mxu1 %v4274_v16 }
 0x290   :  { %1697 = vmatpush1.bf16.msra.mxu1 %v4275_v37 }
 0x291   :  { %1698 = vmatprep.subr.bf16.mxu1 %v4276_v2 }
 0x294   :  { %1699 = vmatpush1.bf16.msra.mxu1 %v4277_v29 }
 0x295   :  { %1700 = vmatprep.subr.bf16.mxu1 %v4278_v17 }
 0x298   :  { %1701 = vmatpush1.bf16.msra.mxu1 %v4279_v51 }
 0x299   :  { %1702 = vmatprep.subr.bf16.mxu1 %v4280_v38 }
 0x29c   :  { %1703 = vmatpush2.bf16.msra.mxu1 %v4281_v12 }
 0x29d   :  { %1704 = vmatprep.subr.bf16.mxu1 %v4282_v1 }
 0x2a0   :  { %1705 = vmatpush2.bf16.msra.mxu1 %v4283_v41 }
 0x2a1   :  { %1706 = vmatprep.subr.bf16.mxu1 %v4284_v44 }
 0x2a4   :  { %1707 = vmatpush2.bf16.msra.mxu1 %v4285_v55 }
 0x2a5   :  { %1708 = vmatprep.subr.bf16.mxu1 %v4286_v15 }
 0x2a8   :  { %1709 = vmatpush2.bf16.msra.mxu1 %v4287_v47 }
 0x2a9   :  { %1710 = vmatprep.subr.bf16.mxu1 %v4288_v14 }
 0x2ac   :  { %1711 = vmatpush2.bf16.msra.mxu1 %v4289_v21 }
 0x2ad   :  { %1712 = vmatprep.subr.bf16.mxu1 %v4290_v46 }
 0x2b0   :  { %1713 = vmatpush2.bf16.msra.mxu1 %v4291_v19 }
 0x2b1   :  { %1714 = vmatprep.subr.bf16.mxu1 %v4292_v3 }
 0x2b4   :  { %1715 = vmatpush2.bf16.msra.mxu1 %v4293_v25 }
 0x2b5   :  { %1716 = vmatprep.subr.bf16.mxu1 %v4294_v40 }
 0x2b8   :  { %1717 = vmatpush2.bf16.msra.mxu1 %v4295_v39 }
 0x2b9   :  { %1768 = vmatprep.subr.bf16.mxu1 %v4296_v49 }
 0x2bb   :  { %v1447_v56 = vpop.f32.mrf.mxu0 }
 0x2bc   :  { %v1539_v22 = vsel %vm1535_vm1, %v1447_v56, -1e+30 }
 0x2bd   :  { %v1449_v11 = vpop.f32.mrf.mxu0  ;;  %v1582_v28 = vsel %vm1581_vm4, %v1539_v22, -inf }
 0x2be   :  { %v1540_v26 = vsel %vm1536_vm2, %v1449_v11, -1e+30  ;;  %v4304_v11 = vld [vmem:[#allocation38_spill] sm:$0xff] }
 0x2bf   :  { %v1547_v20 = vcombine.low %v1539_v22, %v1540_v26  ;;  %v1583_v53 = vsel %vm1581_vm4, %v1540_v26, -inf }
 0x2c0   :  { %v1586_v54 = vmax.f32 %v1582_v28, %v1583_v53  ;;  %v4311_v28 = vld [vmem:[#allocation37_spill] sm:$0xff]  ;;  %v4313_v53 = vld [vmem:[#allocation95_spill] sm:$0xff] }
 0x2c1   :  { %v1555_v18 = vrot.slane %v1547_v20, %v3852_v13  ;;  %v4312_v20 = vld [vmem:[#allocation33_spill] sm:$0xff] }
 0x33b   :  { %v1518_v10 = vpop.f32.mrf.mxu1 }
 0x33c   :  { %v1541_v59 = vsel %vm1537_vm3, %v1518_v10, -1e+30  ;;  %v4309_v10 = vld [vmem:[#allocation99_spill] sm:$0xff] }
 0x33d   :  { %v1520_v0 = vpop.f32.mrf.mxu1  ;;  %v1584_v23 = vsel %vm1581_vm4, %v1541_v59, -inf }
 0x33e   :  { %v1542_v36 = vsel %vm1538_vm5, %v1520_v0, -1e+30  ;;  %v4314_v0 = vld [vmem:[#allocation89_spill] sm:$0xff] }
 0x33f   :  { %v1548_v27 = vcombine.low %v1541_v59, %v1542_v36  ;;  %v1585_v61 = vsel %vm1581_vm4, %v1542_v36, -inf }
 0x340   :  { %v1587_v9 = vmax.f32 %v1584_v23, %v1585_v61  ;;  %v4316_v23 = vld [vmem:[#allocation30_spill] sm:$0xff]  ;;  %v4318_v61 = vld [vmem:[#allocation85_spill] sm:$0xff] }
 0x341   :  { %v1562_v52 = vrot.slane %v1548_v27, %v3852_v13  ;;  %v4317_v27 = vld [vmem:[#allocation91_spill] sm:$0xff] }
 0x342   :  { %v1588_v58 = vmax.f32 %v1586_v54, %v1587_v9  ;;  %v4319_v9 = vld [vmem:[#allocation32_spill] sm:$0xff] }
 0x343   :  { %v1563_v8 = vcombine.low %v1555_v18, %v1562_v52  ;;  %v4320_v18 = vld [vmem:[#allocation26_spill] sm:$0xff]  ;;  %v4321_v52 = vld [vmem:[#allocation87_spill] sm:$0xff] }
 0x344   :  { %1589 = vmax.xlane.f32.xlu0 %v1588_v58  ;;  %v4322_v58 = vld [vmem:[#allocation81_spill] sm:$0xff] }
 0x345   :  { %v1570_v57 = vrot.slane %v1563_v8, %v3852_v13  ;;  %v4323_v8 = vld [vmem:[#allocation28_spill] sm:$0xff] }
 0x347   :  { %1579 = vst.msk [vmem:[#allocation14] sm:$0xf] %vm3859_vm6, %v1570_v57  ;;  %v4324_v57 = vld [vmem:[#allocation22_spill] sm:$0xff] }
 0x3cd   :  { %v1590_v4 = vpop.xlane.xlu0 %1589 }
 0x3ce   :  { %v1591_v32 = vmax.f32 %v1580_v30, %v1590_v4  ;;  %v4326_v4 = vld [vmem:[#allocation77_spill] sm:$0xff] }
 0x3d0   :  { %v1592_v5 = vsub.f32 %v1580_v30, %v1591_v32  ;;  %1840 = vst.msk [vmem:[#allocation2] sm:$0x1] %vm83_vm0, %v1591_v32  ;;  %1597 = vperm.xlu0 %2627, %v1591_v32   ;;  %v4325_v30 = vld [vmem:[#allocation83_spill] sm:$0xff]  ;;  %v4327_v32 = vld [vmem:[#allocation24_spill] sm:$0xff] }
 0x3d2   :  { %v1593_v45 = vmul.f32 1.442695, %v1592_v5  ;;  %v4328_v5 = vld [vmem:[#allocation73_spill] sm:$0xff] }
 0x3d7   :  { %v1848_v48 = vld [vmem:[#allocation2] sm:$0x1] }
 0x3d8   :  { %1851 = vperm.xlu0 %2627, %v1848_v48   ;;  %v4329_v48 = vld [vmem:[#allocation79_spill] sm:$0xff] }
 0x44b   :  { %v1598_v16 = vpop.permute.xlu0 %1597 }
 0x44c   :  { %v1603_v37 = vrot.slane %v1598_v16, %v3873_v43  ;;  %v4330_v16 = vld [vmem:[#allocation137_spill] sm:$0xff] }
 0x44e   :  { %v1604_v2 = vsub.f32 %v1539_v22, %v1603_v37  ;;  %v1605_v29 = vsub.f32 %v1540_v26, %v1603_v37  ;;  %v1606_v17 = vsub.f32 %v1541_v59, %v1603_v37  ;;  %v1607_v51 = vsub.f32 %v1542_v36, %v1603_v37  ;;  %v4307_v22 = vld [vmem:[#allocation39_spill] sm:$0xff]  ;;  %v4308_v26 = vld [vmem:[#allocation36_spill] sm:$0xff]  ;;  %v4310_v59 = vld [vmem:[#allocation93_spill] sm:$0xff] }
 0x44f   :  { %v4315_v36 = vld [vmem:[#allocation35_spill] sm:$0xff] }
 0x450   :  { %v1608_v38 = vmul.f32 1.442695, %v1604_v2  ;;  %v1610_v12 = vmul.f32 1.442695, %v1605_v29  ;;  %v1612_v1 = vmul.f32 1.442695, %v1606_v17 }
 0x451   :  { %v1614_v41 = vmul.f32 1.442695, %v1607_v51  ;;  %v4331_v37 = vld [vmem:[#allocation75_spill] sm:$0xff]  ;;  %v4332_v2 = vld [vmem:[#allocation69_spill] sm:$0xff] }
 0x452   :  { %2885 = vpow2.f32 %v1608_v38  ;;  %v4333_v29 = vld [vmem:[#allocation139_spill] sm:$0xff]  ;;  %v4334_v17 = vld [vmem:[#allocation133_spill] sm:$0xff] }
 0x453   :  { %2887 = vpow2.f32 %v1610_v12  ;;  %v4335_v51 = vld [vmem:[#allocation71_spill] sm:$0xff]  ;;  %v4336_v38 = vld [vmem:[#allocation65_spill] sm:$0xff] }
 0x454   :  { %2889 = vpow2.f32 %v1612_v1  ;;  %v4337_v12 = vld [vmem:[#allocation135_spill] sm:$0xff]  ;;  %v4338_v1 = vld [vmem:[#allocation129_spill] sm:$0xff] }
 0x455   :  { %2891 = vpow2.f32 %v1614_v41  ;;  %v4339_v41 = vld [vmem:[#allocation67_spill] sm:$0xff] }
 0x456   :  { %2893 = vpow2.f32 %v1593_v45  ;;  %v4355_v45 = vld [vmem:[#allocation51_spill] sm:$0xff] }
 0x45f   :  { %v2886_v44 = vpop.eup %2885 }
 0x460   :  { %v2888_v55 = vpop.eup %2887  ;;  %v3876_v15 = vpack.c.bf16 %v2886_v44, %v2886_v44  ;;  %v1618_v47 = vsel %vm1581_vm4, %v2886_v44, 0.0  ;;  %v4340_v44 = vld [vmem:[#allocation61_spill] sm:$0xff] }
 0x461   :  { %v2890_v14 = vpop.eup %2889  ;;  %v1642_v21 = vpack.c.bf16 %v2888_v55, %v2888_v55  ;;  %v1619_v46 = vsel %vm1581_vm4, %v2888_v55, 0.0  ;;  %v4341_v55 = vld [vmem:[#allocation131_spill] sm:$0xff] }
 0x462   :  { %v2892_v19 = vpop.eup %2891  ;;  %v3880_v3 = vpack.c.bf16 %v2890_v14, %v2890_v14  ;;  %v1620_v25 = vadd.f32 %v1619_v46, %v1618_v47  ;;  %v1621_v39 = vsel %vm1581_vm4, %v2890_v14, 0.0  ;;  %v4342_v47 = vld [vmem:[#allocation125_spill] sm:$0xff]  ;;  %v4343_v14 = vld [vmem:[#allocation63_spill] sm:$0xff] }
 0x463   :  { %1677 = vmatprep.mubr.bf16.mxu0 %v1642_v21  ;;  %v1644_v40 = vpack.c.bf16 %v2892_v19, %v2892_v19  ;;  %v1623_v60 = vsel %vm1581_vm4, %v2892_v19, 0.0  ;;  %v3906_v54 = vpop.eup %2893  ;;  %v4345_v46 = vld [vmem:[#allocation127_spill] sm:$0xff]  ;;  %v4346_v19 = vld [vmem:[#allocation121_spill] sm:$0xff] }
 0x464   :  { %1678 = vmatmul.mubr.bf16.vlgmr.msra.gmra.mxu0 %v3876_v15  ;;  %v1622_v49 = vadd.f32 %v1621_v39, %v1620_v25  ;;  %v4347_v25 = vld [vmem:[#allocation59_spill] sm:$0xff] }
 0x465   :  { %1718 = vmatprep.mubr.bf16.mxu1 %v1644_v40  ;;  %1728 = vmatpush1.bf16.msra.mxu0 %v4299_v34  ;;  %v4349_v39 = vld [vmem:[#allocation123_spill] sm:$0xff] }
 0x466   :  { %1719 = vmatmul.mubr.bf16.vlgmr.msra.gmra.mxu1 %v3880_v3  ;;  %1759 = vmatprep.mubr.bf16.mxu0 %v1642_v21  ;;  %v1624_v56 = vadd.f32 %v1623_v60, %v1622_v49  ;;  %v4344_v21 = vld [vmem:[#allocation57_spill] sm:$0xff]  ;;  %v4351_v34 = vld [vmem:[#allocation55_spill] sm:$0xff] }
 0x467   :  { %1769 = vmatpush1.bf16.msra.mxu1 %v4300_v50  ;;  %1800 = vmatprep.mubr.bf16.mxu1 %v1644_v40  ;;  %v4348_v40 = vld [vmem:[#allocation53_spill] sm:$0xff] }
 0x468   :  { %1729 = vmatprep.subr.bf16.mxu0 %v4301_v33  ;;  %1770 = vmatprep.subr.bf16.mxu1 %v4302_v63  ;;  %v4350_v49 = vld [vmem:[#allocation117_spill] sm:$0xff]  ;;  %v4357_v63 = vld [vmem:[#allocation115_spill] sm:$0xff] }
 0x469   :  { %1730 = vmatpush1.bf16.msra.mxu0 %v4303_v42  ;;  %1625 = vadd.xlane.f32.xlu1 %v1624_v56  ;;  %v4352_v60 = vld [vmem:[#allocation49_spill] sm:$0xff]  ;;  %v4353_v56 = vld [vmem:[#allocation119_spill] sm:$0xff] }
 0x46a   :  { %1731 = vmatprep.subr.bf16.mxu0 %v4304_v11  ;;  %v4354_v50 = vld [vmem:[#allocation113_spill] sm:$0xff]  ;;  %v4359_v11 = vld [vmem:[#allocation47_spill] sm:$0xff] }
 0x46b   :  { %1771 = vmatpush1.bf16.msra.mxu1 %v4305_v6  ;;  %v4356_v33 = vld [vmem:[#allocation45_spill] sm:$0xff]  ;;  %v4360_v6 = vld [vmem:[#allocation111_spill] sm:$0xff] }
 0x46c   :  { %1772 = vmatprep.subr.bf16.mxu1 %v4306_v35  ;;  %v4358_v42 = vld [vmem:[#allocation109_spill] sm:$0xff]  ;;  %v2661_v35 = vld [vmem:[#allocation13 + $0x70] ss:$8 sps:$4 sm:$0xff]  }
 0x46d   :  { %1732 = vmatpush1.bf16.msra.mxu0 %v4307_v22  ;;  %v2663_v22 = vld [vmem:[#allocation13 + $0x74] ss:$8 sps:$4 sm:$0xff]  }
 0x46e   :  { %1733 = vmatprep.subr.bf16.mxu0 %v4308_v26  ;;  %v2664_v26 = vld [vmem:[#allocation13 + $0x170] ss:$8 sps:$4 sm:$0xff]  }
 0x46f   :  { %1773 = vmatpush1.bf16.msra.mxu1 %v4309_v10  ;;  %v2666_v10 = vld [vmem:[#allocation13 + $0x174] ss:$8 sps:$4 sm:$0xff]  }
 0x470   :  { %1774 = vmatprep.subr.bf16.mxu1 %v4310_v59  ;;  %v2669_v59 = vld [vmem:[#allocation13 + $0x64] ss:$8 sps:$4 sm:$0xff]  }
 0x471   :  { %1734 = vmatpush1.bf16.msra.mxu0 %v4311_v28  ;;  %v2672_v28 = vld [vmem:[#allocation13 + $0x164] ss:$8 sps:$4 sm:$0xff]  }
 0x472   :  { %1735 = vmatprep.subr.bf16.mxu0 %v4312_v20  ;;  %v2667_v20 = vld [vmem:[#allocation13 + $0x60] ss:$8 sps:$4 sm:$0xff]  }
 0x473   :  { %1775 = vmatpush1.bf16.msra.mxu1 %v4313_v53  ;;  %v2670_v53 = vld [vmem:[#allocation13 + $0x160] ss:$8 sps:$4 sm:$0xff]  }
 0x474   :  { %1776 = vmatprep.subr.bf16.mxu1 %v4314_v0  ;;  %v2675_v0 = vld [vmem:[#allocation13 + $0x54] ss:$8 sps:$4 sm:$0xff]  }
 0x475   :  { %1736 = vmatpush1.bf16.msra.mxu0 %v4315_v36  ;;  %v2678_v36 = vld [vmem:[#allocation13 + $0x154] ss:$8 sps:$4 sm:$0xff]  }
 0x476   :  { %1737 = vmatprep.subr.bf16.mxu0 %v4316_v23  ;;  %v2681_v23 = vld [vmem:[#allocation13 + $0x44] ss:$8 sps:$4 sm:$0xff]  }
 0x477   :  { %1777 = vmatpush1.bf16.msra.mxu1 %v4317_v27  ;;  %v2684_v27 = vld [vmem:[#allocation13 + $0x144] ss:$8 sps:$4 sm:$0xff]  }
 0x478   :  { %1778 = vmatprep.subr.bf16.mxu1 %v4318_v61  ;;  %v2679_v61 = vld [vmem:[#allocation13 + $0x40] ss:$8 sps:$4 sm:$0xff]  }
 0x479   :  { %1738 = vmatpush1.bf16.msra.mxu0 %v4319_v9  ;;  %v2682_v9 = vld [vmem:[#allocation13 + $0x140] ss:$8 sps:$4 sm:$0xff]  }
 0x47a   :  { %1739 = vmatprep.subr.bf16.mxu0 %v4320_v18  ;;  %1633 = vperm.xlu1 %2628, %v3906_v54   ;;  %v2687_v18 = vld [vmem:[#allocation13 + $0x34] ss:$8 sps:$4 sm:$0xff]  }
 0x47b   :  { %1779 = vmatpush1.bf16.msra.mxu1 %v4321_v52  ;;  %v2690_v52 = vld [vmem:[#allocation13 + $0x134] ss:$8 sps:$4 sm:$0xff]  }
 0x47c   :  { %1780 = vmatprep.subr.bf16.mxu1 %v4322_v58  ;;  %v2685_v58 = vld [vmem:[#allocation13 + $0x30] ss:$8 sps:$4 sm:$0xff]  }
 0x47d   :  { %1740 = vmatpush1.bf16.msra.mxu0 %v4323_v8  ;;  %v2688_v8 = vld [vmem:[#allocation13 + $0x130] ss:$8 sps:$4 sm:$0xff]  }
 0x47e   :  { %1741 = vmatprep.subr.bf16.mxu0 %v4324_v57  ;;  %v2693_v57 = vld [vmem:[#allocation13 + $0x24] ss:$8 sps:$4 sm:$0xff]  }
 0x47f   :  { %1781 = vmatpush1.bf16.msra.mxu1 %v4325_v30  ;;  %v2696_v30 = vld [vmem:[#allocation13 + $0x124] ss:$8 sps:$4 sm:$0xff]  }
 0x480   :  { %1782 = vmatprep.subr.bf16.mxu1 %v4326_v4  ;;  %v2691_v4 = vld [vmem:[#allocation13 + $0x20] ss:$8 sps:$4 sm:$0xff]  }
 0x481   :  { %1742 = vmatpush1.bf16.msra.mxu0 %v4327_v32  ;;  %v2694_v32 = vld [vmem:[#allocation13 + $0x120] ss:$8 sps:$4 sm:$0xff]  }
 0x482   :  { %1743 = vmatprep.subr.bf16.mxu0 %v4328_v5  ;;  %v2699_v5 = vld [vmem:[#allocation13 + $0x14] ss:$8 sps:$4 sm:$0xff]  }
 0x483   :  { %1783 = vmatpush1.bf16.msra.mxu1 %v4329_v48  ;;  %v2702_v48 = vld [vmem:[#allocation13 + $0x114] ss:$8 sps:$4 sm:$0xff]  }
 0x484   :  { %1784 = vmatprep.subr.bf16.mxu1 %v4330_v16  ;;  %v2697_v16 = vld [vmem:[#allocation13 + $0x10] ss:$8 sps:$4 sm:$0xff]  }
 0x485   :  { %1744 = vmatpush2.bf16.msra.mxu0 %v4331_v37  ;;  %v2700_v37 = vld [vmem:[#allocation13 + $0x110] ss:$8 sps:$4 sm:$0xff]  }
 0x486   :  { %1745 = vmatprep.subr.bf16.mxu0 %v4332_v2  ;;  %v2705_v2 = vld [vmem:[#allocation13 + $0x4] ss:$8 sps:$4 sm:$0xff]  }
 0x487   :  { %1785 = vmatpush2.bf16.msra.mxu1 %v4333_v29  ;;  %v2708_v29 = vld [vmem:[#allocation13 + $0x104] ss:$8 sps:$4 sm:$0xff]  }
 0x488   :  { %1786 = vmatprep.subr.bf16.mxu1 %v4334_v17  ;;  %v2703_v17 = vld [vmem:[#allocation13] ss:$8 sps:$4 sm:$0xff]  }
 0x489   :  { %1746 = vmatpush2.bf16.msra.mxu0 %v4335_v51  ;;  %v2706_v51 = vld [vmem:[#allocation13 + $0x100] ss:$8 sps:$4 sm:$0xff]  }
 0x48a   :  { %1747 = vmatprep.subr.bf16.mxu0 %v4336_v38  ;;  %v1616_v38 = vld [vmem:[#allocation3] sm:$0x1] }
 0x48b   :  { %1787 = vmatpush2.bf16.msra.mxu1 %v4337_v12  ;;  %v2711_v12 = vld [vmem:[#allocation13 + $0xf4] ss:$8 sps:$4 sm:$0xff]  }
 0x48c   :  { %1788 = vmatprep.subr.bf16.mxu1 %v4338_v1  ;;  %v2714_v1 = vld [vmem:[#allocation13 + $0x1f4] ss:$8 sps:$4 sm:$0xff]  }
 0x48d   :  { %1748 = vmatpush2.bf16.msra.mxu0 %v4339_v41  ;;  %v1617_v41 = vmul.f32 %v3906_v54, %v1616_v38  ;;  %v2721_v54 = vld [vmem:[#allocation13 + $0xd0] ss:$8 sps:$4 sm:$0xff]  }
 0x48e   :  { %1749 = vmatprep.subr.bf16.mxu0 %v4340_v44  ;;  %v2709_v44 = vld [vmem:[#allocation13 + $0xf0] ss:$8 sps:$4 sm:$0xff]  }
 0x48f   :  { %1789 = vmatpush2.bf16.msra.mxu1 %v4341_v55  ;;  %v2712_v55 = vld [vmem:[#allocation13 + $0x1f0] ss:$8 sps:$4 sm:$0xff]  }
 0x490   :  { %1790 = vmatprep.subr.bf16.mxu1 %v4342_v47 }
 0x491   :  { %1750 = vmatpush2.bf16.msra.mxu0 %v4343_v14 }
 0x492   :  { %1751 = vmatprep.subr.bf16.mxu0 %v4344_v21  ;;  %v2717_v21 = vld [vmem:[#allocation13 + $0xe4] ss:$8 sps:$4 sm:$0xff]  }
 0x493   :  { %1791 = vmatpush2.bf16.msra.mxu1 %v4345_v46  ;;  %v2720_v46 = vld [vmem:[#allocation13 + $0x1e4] ss:$8 sps:$4 sm:$0xff]  }
 0x494   :  { %1792 = vmatprep.subr.bf16.mxu1 %v4346_v19  ;;  %v2715_v19 = vld [vmem:[#allocation13 + $0xe0] ss:$8 sps:$4 sm:$0xff]  }
 0x495   :  { %1752 = vmatpush2.bf16.msra.mxu0 %v4347_v25  ;;  %v2718_v25 = vld [vmem:[#allocation13 + $0x1e0] ss:$8 sps:$4 sm:$0xff]  }
 0x496   :  { %1753 = vmatprep.subr.bf16.mxu0 %v4348_v40  ;;  %v2723_v40 = vld [vmem:[#allocation13 + $0xd4] ss:$8 sps:$4 sm:$0xff]  }
 0x497   :  { %1793 = vmatpush2.bf16.msra.mxu1 %v4349_v39  ;;  %v2726_v39 = vld [vmem:[#allocation13 + $0x1d4] ss:$8 sps:$4 sm:$0xff]  }
 0x498   :  { %1794 = vmatprep.subr.bf16.mxu1 %v4350_v49  ;;  %v2724_v49 = vld [vmem:[#allocation13 + $0x1d0] ss:$8 sps:$4 sm:$0xff]  }
 0x499   :  { %1754 = vmatpush2.bf16.msra.mxu0 %v4351_v34  ;;  %v2729_v34 = vld [vmem:[#allocation13 + $0xc4] ss:$8 sps:$4 sm:$0xff]  }
 0x49a   :  { %1755 = vmatprep.subr.bf16.mxu0 %v4352_v60  ;;  %v2732_v60 = vld [vmem:[#allocation13 + $0x1c4] ss:$8 sps:$4 sm:$0xff]  }
 0x49b   :  { %1795 = vmatpush2.bf16.msra.mxu1 %v4353_v56  ;;  %v2727_v56 = vld [vmem:[#allocation13 + $0xc0] ss:$8 sps:$4 sm:$0xff]  }
 0x49c   :  { %1796 = vmatprep.subr.bf16.mxu1 %v4354_v50  ;;  %v2730_v50 = vld [vmem:[#allocation13 + $0x1c0] ss:$8 sps:$4 sm:$0xff]  }
 0x49d   :  { %1756 = vmatpush2.bf16.msra.mxu0 %v4355_v45 }
 0x49e   :  { %1757 = vmatprep.subr.bf16.mxu0 %v4356_v33  ;;  %v2735_v33 = vld [vmem:[#allocation13 + $0xb4] ss:$8 sps:$4 sm:$0xff]  }
 0x49f   :  { %1797 = vmatpush2.bf16.msra.mxu1 %v4357_v63  ;;  %v2738_v63 = vld [vmem:[#allocation13 + $0x1b4] ss:$8 sps:$4 sm:$0xff]  }
 0x4a0   :  { %1798 = vmatprep.subr.bf16.mxu1 %v4358_v42  ;;  %v2733_v42 = vld [vmem:[#allocation13 + $0xb0] ss:$8 sps:$4 sm:$0xff]  }
 0x4a1   :  { %1758 = vmatpush2.bf16.msra.mxu0 %v4359_v11  ;;  %v2736_v11 = vld [vmem:[#allocation13 + $0x1b0] ss:$8 sps:$4 sm:$0xff]  }
 0x4a2   :  { %2295 = vmatprep.subr.bf16.mxu0 %v2663_v22  ;;  %v2739_v22 = vld [vmem:[#allocation13 + $0xa0] ss:$8 sps:$4 sm:$0xff]  }
 0x4a3   :  { %1799 = vmatpush2.bf16.msra.mxu1 %v4360_v6  ;;  %v2741_v6 = vld [vmem:[#allocation13 + $0xa4] ss:$8 sps:$4 sm:$0xff]  }
 0x4a4   :  { %1760 = vmatmul.mubr.bf16.vlgmr.msra.gmra.mxu0 %v3876_v15  ;;  %2336 = vmatprep.subr.bf16.mxu1 %v2666_v10  ;;  %v2673_v15 = vld [vmem:[#allocation13 + $0x50] ss:$8 sps:$4 sm:$0xff]   ;;  %v2747_v10 = vld [vmem:[#allocation13 + $0x94] ss:$8 sps:$4 sm:$0xff]  }
 0x4a5   :  { %2296 = vmatpush1.bf16.msra.mxu0 %v2661_v35  ;;  %v2744_v35 = vld [vmem:[#allocation13 + $0x1a4] ss:$8 sps:$4 sm:$0xff]  }
 0x4a6   :  { %1801 = vmatmul.mubr.bf16.vlgmr.msra.gmra.mxu1 %v3880_v3  ;;  %2297 = vmatprep.subr.bf16.mxu0 %v2669_v59  ;;  %v2676_v3 = vld [vmem:[#allocation13 + $0x150] ss:$8 sps:$4 sm:$0xff]   ;;  %v2750_v59 = vld [vmem:[#allocation13 + $0x194] ss:$8 sps:$4 sm:$0xff]  }
 0x4a7   :  { %2337 = vmatpush1.bf16.msra.mxu1 %v2664_v26  ;;  %v2742_v26 = vld [vmem:[#allocation13 + $0x1a0] ss:$8 sps:$4 sm:$0xff]  }
 0x4a8   :  { %2338 = vmatprep.subr.bf16.mxu1 %v2672_v28  ;;  %v2745_v28 = vld [vmem:[#allocation13 + $0x90] ss:$8 sps:$4 sm:$0xff]  }
 0x4a9   :  { %2298 = vmatpush1.bf16.msra.mxu0 %v2667_v20  ;;  %v2748_v20 = vld [vmem:[#allocation13 + $0x190] ss:$8 sps:$4 sm:$0xff]  }
 0x4aa   :  { %2299 = vmatprep.subr.bf16.mxu0 %v2675_v0  ;;  %v2753_v0 = vld [vmem:[#allocation13 + $0x84] ss:$8 sps:$4 sm:$0xff]  }
 0x4ab   :  { %2339 = vmatpush1.bf16.msra.mxu1 %v2670_v53 }
 0x4ac   :  { %2340 = vmatprep.subr.bf16.mxu1 %v2678_v36  ;;  %v2756_v36 = vld [vmem:[#allocation13 + $0x184] ss:$8 sps:$4 sm:$0xff]  }
 0x4ad   :  { %2300 = vmatpush1.bf16.msra.mxu0 %v2673_v15  ;;  %v2751_v15 = vld [vmem:[#allocation13 + $0x80] ss:$8 sps:$4 sm:$0xff]  }
 0x4ae   :  { %2301 = vmatprep.subr.bf16.mxu0 %v2681_v23 }
 0x4af   :  { %2341 = vmatpush1.bf16.msra.mxu1 %v2676_v3  ;;  %v2754_v3 = vld [vmem:[#allocation13 + $0x180] ss:$8 sps:$4 sm:$0xff]  }
 0x4b0   :  { %2342 = vmatprep.subr.bf16.mxu1 %v2684_v27 }
 0x4b1   :  { %2302 = vmatpush1.bf16.msra.mxu0 %v2679_v61 }
 0x4b2   :  { %2303 = vmatprep.subr.bf16.mxu0 %v2687_v18 }
 0x4b3   :  { %2343 = vmatpush1.bf16.msra.mxu1 %v2682_v9 }
 0x4b4   :  { %2344 = vmatprep.subr.bf16.mxu1 %v2690_v52 }
 0x4b5   :  { %2304 = vmatpush1.bf16.msra.mxu0 %v2685_v58 }
 0x4b6   :  { %2305 = vmatprep.subr.bf16.mxu0 %v2693_v57 }
 0x4b7   :  { %2345 = vmatpush1.bf16.msra.mxu1 %v2688_v8 }
 0x4b8   :  { %2346 = vmatprep.subr.bf16.mxu1 %v2696_v30 }
 0x4b9   :  { %2306 = vmatpush1.bf16.msra.mxu0 %v2691_v4 }
 0x4ba   :  { %2307 = vmatprep.subr.bf16.mxu0 %v2699_v5 }
 0x4bb   :  { %2347 = vmatpush1.bf16.msra.mxu1 %v2694_v32 }
 0x4bc   :  { %2348 = vmatprep.subr.bf16.mxu1 %v2702_v48 }
 0x4bd   :  { %2308 = vmatpush1.bf16.msra.mxu0 %v2697_v16 }
 0x4be   :  { %2309 = vmatprep.subr.bf16.mxu0 %v2705_v2 }
 0x4bf   :  { %2349 = vmatpush1.bf16.msra.mxu1 %v2700_v37 }
 0x4c0   :  { %2350 = vmatprep.subr.bf16.mxu1 %v2708_v29 }
 0x4c1   :  { %2310 = vmatpush1.bf16.msra.mxu0 %v2703_v17 }
 0x4c2   :  { %2311 = vmatprep.subr.bf16.mxu0 %v2711_v12 }
 0x4c3   :  { %2351 = vmatpush1.bf16.msra.mxu1 %v2706_v51 }
 0x4c4   :  { %2352 = vmatprep.subr.bf16.mxu1 %v2714_v1  ;;  %v1852_v1 = vpop.permute.xlu0 %1851 }
 0x4c5   :  { %2312 = vmatpush2.bf16.msra.mxu0 %v2709_v44 }
 0x4c6   :  { %2313 = vmatprep.subr.bf16.mxu0 %v2717_v21  ;;  %v1857_v21 = vrot.slane %v1852_v1, %v3873_v43 }
 0x4c7   :  { %2353 = vmatpush2.bf16.msra.mxu1 %v2712_v55 }
 0x4c8   :  { %2354 = vmatprep.subr.bf16.mxu1 %v2720_v46 }
 0x4c9   :  { %2314 = vmatpush2.bf16.msra.mxu0 %v2715_v19 }
 0x4ca   :  { %2315 = vmatprep.subr.bf16.mxu0 %v2723_v40  ;;  %v1847_v40 = vld [vmem:[#allocation14] sm:$0xf] }
 0x4cb   :  { %2355 = vmatpush2.bf16.msra.mxu1 %v2718_v25 }
 0x4cc   :  { %2356 = vmatprep.subr.bf16.mxu1 %v2726_v39  ;;  %v1858_v39 = vsub.f32 %v1847_v40, %v1857_v21 }
 0x4cd   :  { %2316 = vmatpush2.bf16.msra.mxu0 %v2721_v54 }
 0x4ce   :  { %2317 = vmatprep.subr.bf16.mxu0 %v2729_v34 }
 0x4cf   :  { %2357 = vmatpush2.bf16.msra.mxu1 %v2724_v49  ;;  %v1859_v49 = vmul.f32 1.442695, %v1858_v39 }
 0x4d0   :  { %2358 = vmatprep.subr.bf16.mxu1 %v2732_v60  ;;  %v1885_v60 = vsub.s32 2, %v3848_v62 }
 0x4d1   :  { %2318 = vmatpush2.bf16.msra.mxu0 %v2727_v56 }
 0x4d2   :  { %2319 = vmatprep.subr.bf16.mxu0 %v2735_v33 }
 0x4d3   :  { %2359 = vmatpush2.bf16.msra.mxu1 %v2730_v50  ;;  %v1881_v50 = vsub.s32 1, %v3848_v62 }
 0x4d4   :  { %2360 = vmatprep.subr.bf16.mxu1 %v2738_v63 }
 0x4d5   :  { %2320 = vmatpush2.bf16.msra.mxu0 %v2733_v42 }
 0x4d6   :  { %2321 = vmatprep.subr.bf16.mxu0 %v2741_v6 }
 0x4d7   :  { %2361 = vmatpush2.bf16.msra.mxu1 %v2736_v11 }
 0x4d8   :  { %2362 = vmatprep.subr.bf16.mxu1 %v2744_v35 }
 0x4d9   :  { %2322 = vmatpush2.bf16.msra.mxu0 %v2739_v22 }
 0x4da   :  { %2323 = vmatprep.subr.bf16.mxu0 %v2747_v10 }
 0x4db   :  { %2363 = vmatpush2.bf16.msra.mxu1 %v2742_v26 }
 0x4dc   :  { %2364 = vmatprep.subr.bf16.mxu1 %v2750_v59 }
 0x4dd   :  { %2324 = vmatpush2.bf16.msra.mxu0 %v2745_v28 }
 0x4de   :  { %2325 = vmatprep.subr.bf16.mxu0 %v2753_v0 }
 0x4df   :  { %2365 = vmatpush2.bf16.msra.mxu1 %v2748_v20 }
 0x4e0   :  { %2366 = vmatprep.subr.bf16.mxu1 %v2756_v36  ;;  %v2379_v36 = vld [vmem:[%s3998_s7] sm:$0x3] }
 0x4e1   :  { %2326 = vmatpush2.bf16.msra.mxu0 %v2751_v15 }
 0x4e3   :  { %2367 = vmatpush2.bf16.msra.mxu1 %v2754_v3 }
 0x4f2   :  { %v1626_v47 = vpop.xlane.xlu1 %1625 }
 0x4f3   :  { %v1627_v14 = vadd.f32 %v1626_v47, %v1617_v41 }
 0x4f5   :  { %1629 = vst.msk [vmem:[#allocation3] sm:$0x1] %vm83_vm0, %v1627_v14  ;;  %v1630_v14 = vld [vmem:[#allocation4] sm:$0xf] }
 0x4f6   :  { %v1634_v2 = vpop.permute.xlu1 %1633 }
 0x4f7   :  { %v1639_v44 = vrot.slane %v1634_v2, %v3873_v43 }
 0x4f9   :  { %v1640_v19 = vmul.f32 %v1639_v44, %v1630_v14 }
 0x4fc   :  { %v1844_v45 = vld [vmem:[#allocation3] sm:$0x1] }
 0x4fd   :  { %2895 = vrcp.f32 %v1844_v45  ;;  %v1889_v45 = vsub.s32 3, %v3848_v62  ;;  %v1963_v62 = vld [vmem:[%s3997_s6] sm:$0x3]  ;;  %s3025_s6 = smov [#allocation14]  }
 0x4fe   :  { %2897 = vpow2.f32 %v1859_v49  ;;  %v2288_v20 = vrot.slane %v1963_v62, %v3873_v43  ;;  %s2421_s7 = sshll.u32 %s3025_s6, 4  ;;  %s2422_s7 = int_to_ptr.vmem [resolvable:$true] %s2421_s7 }
 0x4ff   :  { %s2964_s20 = scalar_lea.vmem %s2422_s7, 64  ;;  %p2969_p2 = scmp.lt.s32.totalorder %s2422_s7, %s2422_s7 }
 0x500   :  { %p2965_p1 = scmp.ne.s32.totalorder %s2422_s7, %s2964_s20  ;;  %p2970_p3 = scmp.lt.s32.totalorder %s2964_s20, %s2964_s20 }
 0x502   :  { %p2971_p4 = por %p2970_p3, %p2969_p2 }
 0x504   :  { %p2972_p5 = pnand %p2971_p4, %p2965_p1 }
 0x50a   :  { %v2896_v53 = vpop.eup %2895 }
 0x50b   :  { %1863 = vperm.xlu1 %2628, %v2896_v53   ;;  %v2898_v33 = vpop.eup %2897  ;;  %v2292_v53 = vrot.slane %v1963_v62, %v1881_v50 }
 0x524   :  { %v1679_v23 = vpop.f32.mrf.mxu0 }
 0x526   :  { %v1720_v27 = vpop.f32.mrf.mxu1  ;;  %v1681_v61 = vpop.f32.mrf.mxu0 }
 0x527   :  { %v1721_v9 = vadd.f32 %v1720_v27, %v1679_v23 }
 0x528   :  { %v1722_v18 = vpop.f32.mrf.mxu1  ;;  %v1683_v52 = vpop.f32.mrf.mxu0 }
 0x529   :  { %v1723_v58 = vadd.f32 %v1722_v18, %v1681_v61  ;;  %v2384_v61 = vrot.slane %v2379_v36, %v3873_v43 }
 0x52a   :  { %v1724_v8 = vpop.f32.mrf.mxu1  ;;  %v1684_v57 = vpop.f32.mrf.mxu0 }
 0x52b   :  { %v1813_v30 = vcombine.low %v1721_v9, %v1723_v58  ;;  %v2388_v57 = vrot.slane %v2379_v36, %v1881_v50 }
 0x52c   :  { %v1725_v4 = vpop.f32.mrf.mxu1 }
 0x52d   :  { %v1821_v55 = vrot.slane %v1813_v30, %v3852_v13 }
 0x564   :  { %v1761_v32 = vpop.f32.mrf.mxu0 }
 0x566   :  { %v1802_v5 = vpop.f32.mrf.mxu1  ;;  %v1763_v48 = vpop.f32.mrf.mxu0 }
 0x567   :  { %v1803_v29 = vadd.f32 %v1802_v5, %v1761_v32 }
 0x568   :  { %v1804_v16 = vpop.f32.mrf.mxu1  ;;  %v1765_v37 = vpop.f32.mrf.mxu0 }
 0x569   :  { %v1805_v17 = vadd.f32 %v1804_v16, %v1763_v48 }
 0x56a   :  { %v1806_v51 = vpop.f32.mrf.mxu1  ;;  %v1766_v38 = vpop.f32.mrf.mxu0 }
 0x56b   :  { %v1814_v12 = vcombine.low %v1803_v29, %v1805_v17 }
 0x56c   :  { %v1807_v41 = vpop.f32.mrf.mxu1 }
 0x56d   :  { %v1828_v47 = vrot.slane %v1814_v12, %v3852_v13 }
 0x56f   :  { %v1829_v46 = vcombine.low %v1821_v55, %v1828_v47 }
 0x571   :  { %v1836_v25 = vrot.slane %v1829_v46, %v3852_v13 }
 0x573   :  { %v1838_v54 = vadd.f32 %v1836_v25, %v1640_v19 }
 0x575   :  { %1839 = vst.msk [vmem:[#allocation4] sm:$0xf] %vm3859_vm6, %v1838_v54 }
 0x57c   :  { %v1872_v63 = vld [vmem:[#allocation4] sm:$0xf] }
 0x586   :  { %v1864_v34 = vpop.permute.xlu1 %1863 }
 0x587   :  { %v1869_v56 = vrot.slane %v1864_v34, %v3873_v43 }
 0x589   :  { %v1870_v13 = vmul.f32 %v2898_v33, %v1869_v56  ;;  %v1873_v42 = vmul.f32 %v1872_v63, %v1869_v56 }
 0x58b   :  { %v1878_v11 = vrot.slane %v1873_v42, %v3873_v43  ;;  %v1886_v6 = vrot.slane %v1873_v42, %v1885_v60  ;;  %1871 = vst.msk [vmem:[#allocation14] sm:$0xf] %vm3859_vm6, %v1870_v13  ;;  %v1882_v35 = vrot.slane %v1873_v42, %v1881_v50  ;;  %v1890_v22 = vrot.slane %v1873_v42, %v1889_v45 }
 0x58d   :  { %v1895_v26 = vpack.c.bf16 %v1878_v11, %v1878_v11  ;;  %v1897_v10 = vpack.c.bf16 %v1886_v6, %v1886_v6  ;;  %v1896_v59 = vpack.c.bf16 %v1882_v35, %v1882_v35  ;;  %v1898_v28 = vpack.c.bf16 %v1890_v22, %v1890_v22 }
 0x58f   :  { %2327 = vmatprep.mubr.bf16.mxu0 %v1896_v59  ;;  %2368 = vmatprep.mubr.bf16.mxu1 %v1898_v28 }
 0x590   :  { %2328 = vmatmul.mubr.bf16.vlgmr.msra.gmra.mxu0 %v1895_v26  ;;  %2369 = vmatmul.mubr.bf16.vlgmr.msra.gmra.mxu1 %v1897_v10 }
 0x650   :  { %v2329_v0 = vpop.f32.mrf.mxu0  ;;  %v2370_v31 = vpop.f32.mrf.mxu1 }
 0x651   :  { %v2330_v15 = vadd.f32 %v2329_v0, %v2288_v20 }
 0x652   :  { %v2331_v3 = vpop.f32.mrf.mxu0  ;;  %v2372_v23 = vpop.f32.mrf.mxu1 }
 0x653   :  { %v2371_v27 = vadd.f32 %v2370_v31, %v2330_v15  ;;  %v2332_v9 = vadd.f32 %v2331_v3, %v2292_v53 }
 0x654   :  { %v2333_v18 = vpop.f32.mrf.mxu0  ;;  %v2374_v52 = vpop.f32.mrf.mxu1 }
 0x655   :  { %v2377_v58 = vmax.f32 %v2371_v27, 0.0  ;;  %v2373_v8 = vadd.f32 %v2372_v23, %v2332_v9 }
 0x656   :  { %v2334_v30 = vpop.f32.mrf.mxu0  ;;  %v2375_v4 = vpop.f32.mrf.mxu1 }
 0x657   :  { %v2391_v32 = vmul.f32 %v2384_v61, %v2377_v58  ;;  %v2378_v5 = vmax.f32 %v2373_v8, 0.0 }
 0x659   :  { %v2392_v48 = vmul.f32 %v2388_v57, %v2378_v5  ;;  %v2393_v16 = vsel %vm1581_vm4, %v2391_v32, 0.0 }
 0x65b   :  { %v2394_v37 = vsel %vm1581_vm4, %v2392_v48, 0.0 }
 0x65c   :  { %v2395_v2 = vadd.f32 %v2394_v37, %v2393_v16 }
 0x65e   :  { %2396 = vadd.xlane.f32.xlu1 %v2395_v2 }
 0x65f   :  { %2975 = shalt.err (!%p2972_p5)
}
 0x660   :  { %2424 = dma.vmem_to_hbm [thread:$0]  %s2422_s7, 64, %s4000_s9, [#allocation10]   ;;  %v2399_v43 = vstv %s3999_s8  ;;  %vm2411_vm7 = vcmp.eq.s32.totalorder %v3839_v7, 1  ;;  %vm2410_vm9 = vcmp.eq.s32.totalorder %v3839_v7, 0 }
 0x661   :  { %s3026_s25 = smov [#allocation15]  }
 0x662   :  { %s2431_s26 = sshll.u32 %s3026_s25, 4  ;;  %s2432_s26 = int_to_ptr.vmem [resolvable:$true] %s2431_s26 }
 0x663   :  { %s2984_s8 = scalar_lea.vmem %s2432_s26, 16  ;;  %s2988_s9 = scalar_lea.vmem %s2432_s26, 32 }
 0x664   :  { %p2985_p6 = scmp.ne.s32.totalorder %s2432_s26, %s2984_s8  ;;  %p2989_p7 = scmp.lt.s32.totalorder %s2432_s26, %s2432_s26 }
 0x665   :  { %p2990_p8 = scmp.lt.s32.totalorder %s2988_s9, %s2984_s8 }
 0x667   :  { %p2991_p9 = por %p2990_p8, %p2989_p7 }
 0x669   :  { %p2992_p10 = pnand %p2991_p9, %p2985_p6 }
 0x6e7   :  { %v2397_v29 = vpop.xlane.xlu1 %2396 }
 0x6e8   :  { %v2400_v17 = vadd.f32 %v2399_v43, %v2397_v29 }
 0x6ea   :  { %v2401_v51 = vsub.f32 0.0, %v2400_v17 }
 0x6ec   :  { %v2402_v38 = vmul.f32 1.442695, %v2401_v51 }
 0x6ee   :  { %2899 = vpow2.f32 %v2402_v38 }
 0x6fb   :  { %v2900_v12 = vpop.eup %2899 }
 0x6fc   :  { %v2404_v1 = vadd.f32 1.0, %v2900_v12 }
 0x6fe   :  { %2901 = vrcp.f32 %v2404_v1 }
 0x70b   :  { %v2902_v41 = vpop.eup %2901 }
 0x70c   :  { %vm2407_vm8 = vcmp.ge.f32.partialorder %v2902_v41, 0.5 }
 0x70d   :  { %v2543_v44 = vsel %vm2407_vm8, 1.0, %v3024_v24 }
 0x70e   :  { %v2412_v55 = vsel %vm2411_vm7, %v2543_v44, 0.0 }
 0x70f   :  { %v2413_v47 = vsel %vm2410_vm9, %v2902_v41, %v2412_v55 }
 0x710   :  { %2414 = vst [vmem:[#allocation15] sm:$0x1] %v2413_v47 }
 0x711   :  { %2995 = shalt.err (!%p2992_p10)
}
 0x712   :  { %2434 = dma.vmem_to_hbm [thread:$0]  %s2432_s26, 16, %s4001_s10, [#allocation16]  }
 0x713   :  { %3008 = dma.done.wait [#allocation10], 64  }
 0x714   :  { %3009 = vsyncadd [#allocation10], 4294967232 }
 0x715   :  { %3010 = dma.done.wait [#allocation16], 16  }
 0x716   :  { %3011 = vsyncadd [#allocation16], 4294967280 }
 0x717   :  { %2441 = vsyncpa [#allocation9], 1 }
 0x718   :  { %2442 = vsyncpa [#allocation12], 1 }
 0x719   :  { %2443 = vsyncpa [#allocation10], 1 }
 0x71a   :  { %2444 = vsyncpa [#allocation16], 1 }

</bundles_post_ra>
